<compile_context>
chip_gen: v5e
topology: v5e:2x2
jax: 0.10.0
libtpu: 0.0.40
codegen_flags: <defaults>
</compile_context>

<pallas_src>
import functools

import jax
import jax.numpy as jnp
from jax import lax
from jax.experimental import pallas as pl
from jax.experimental.pallas import tpu as pltpu

H, W = 6, 7            # board spatial size
HP, WP = 8, 9          # spatially padded size (pad=1 each side)
PPI = HP * WP          # padded pixels per image (72)
C_IN = 3
C_PAD = 128            # channels padded 126 -> 128 (lane-dense)
CZ = 8                 # padded output channels of the OutBlock 1x1 conv (3 real)
MARGIN = 16            # zero margin rows above/below the activation region
N_RES = 10
EPS = 1e-5


# ----------------------------- Pallas kernels ------------------------------

def _tower_kernel(x_ref, mask_ref, w_ref, b_ref, wc_ref, bc_ref, out_ref,
                  abuf, bbuf, *, m_pad, chunk_rows, n_res):
    """Fused conv tower for one batch tile.

    x_ref    : (m_pad, 128) bf16  input, flat padded layout, 3 real channels
    mask_ref : (144, 1)     f32   interior-pixel mask for up to 2 images
    w_ref    : (189, 128, 128) bf16  21 convs x 9 taps, BN scale folded in
    b_ref    : (21, 1, 128) f32   folded BN biases
    wc_ref   : (128, CZ) bf16     OutBlock 1x1 conv (BN folded), 3 real cols
    bc_ref   : (1, CZ)   f32
    out_ref  : (m_pad, CZ) f32    relu(bn(1x1 conv)) in flat padded layout
    abuf/bbuf: (m_pad + 2*MARGIN, 128) bf16 VMEM activation buffers
    """
    n_chunks = m_pad // chunk_rows
    zeros_margin = jnp.zeros((MARGIN, C_PAD), jnp.bfloat16)

    # The margins provide the conv zero-padding.  Only they need (re)zeroing:
    # every interior row is fully overwritten with masked values each grid
    # step, so this is correct even when the "parallel" batch axis is split
    # across TensorCores (each core's scratch gets its margins zeroed).
    abuf[pl.ds(0, MARGIN), :] = zeros_margin
    abuf[pl.ds(MARGIN + m_pad, MARGIN), :] = zeros_margin
    bbuf[pl.ds(0, MARGIN), :] = zeros_margin
    bbuf[pl.ds(MARGIN + m_pad, MARGIN), :] = zeros_margin

    # Interior-pixel mask for one chunk (pad pixels must stay exactly zero so
    # the next layer's shifted taps read zeros there).
    mask_c = mask_ref[pl.ds(0, chunk_rows), :]                 # (chunk, 1) f32

    # Place the (already zero-padded, bf16) input tile into bbuf's interior.
    bbuf[pl.ds(MARGIN, m_pad), :] = x_ref[...]

    def conv_layer(src, dst, layer, with_residual):
        # 3x3 conv = 9 shifted (chunk,128)x(128,128) MXU matmuls, f32 acc.
        # Chunking M keeps the f32 accumulator in vregs (no VMEM round-trip);
        # bias + (residual) + ReLU + mask + bf16 cast fused per chunk.
        def do_chunk(c):
            r0 = c * chunk_rows
            acc = jnp.zeros((chunk_rows, C_PAD), jnp.float32)
            for t in range(9):
                kh, kw = t // 3, t % 3
                s = (kh - 1) * WP + (kw - 1)                   # constant row shift
                a = src[pl.ds(MARGIN + r0 + s, chunk_rows), :]
                acc = acc + jnp.dot(a, w_ref[layer * 9 + t],
                                    preferred_element_type=jnp.float32)
            acc = acc + b_ref[layer]
            if with_residual:
                resid = dst[pl.ds(MARGIN + r0, chunk_rows), :]
                acc = acc + resid.astype(jnp.float32)
            y = jnp.maximum(acc, 0.0) * mask_c
            dst[pl.ds(MARGIN + r0, chunk_rows), :] = y.astype(jnp.bfloat16)

        if n_chunks == 1:
            do_chunk(0)
        else:
            def chunk_body(c, carry):
                do_chunk(c)
                return carry
            lax.fori_loop(0, n_chunks, chunk_body, 0)

    # ConvBlock: conv(3->126) + BN + ReLU  (layer 0), bbuf -> abuf.
    conv_layer(bbuf, abuf, 0, with_residual=False)

    # 10 residual blocks (weights indexed dynamically, taps/chunks unrolled
    # or chunk-looped inside).
    def res_block(i, carry):
        conv_layer(abuf, bbuf, 1 + 2 * i, with_residual=False)
        conv_layer(bbuf, abuf, 2 + 2 * i, with_residual=True)
        return carry

    lax.fori_loop(0, n_res, res_block, 0)

    # OutBlock 1x1 conv + BN + ReLU.  Pad-pixel rows are left unmasked here:
    # downstream they only ever multiply all-zero rows of the flatten-folded
    # fc1 weight, so they cannot affect the result.
    a_fin = abuf[pl.ds(MARGIN, m_pad), :]
    z = jnp.dot(a_fin, wc_ref[...], preferred_element_type=jnp.float32)
    out_ref[...] = jnp.maximum(z + bc_ref[...], 0.0).astype(out_ref.dtype)


def _mlp_kernel(x_ref, w1_ref, b1_ref, w2_ref, b2_ref, o_ref):
    # fc1 (with NCHW-flatten permutation folded into its rows) + ReLU + fc2.
    h = jnp.dot(x_ref[...], w1_ref[...], preferred_element_type=jnp.float32) + b1_ref[...]
    h = jnp.maximum(h, 0.0)
    y = jnp.dot(h, w2_ref[...], preferred_element_type=jnp.float32) + b2_ref[...]
    o_ref[...] = y.astype(o_ref.dtype)


# ------------------------------ parameter prep ------------------------------

def _fold_bn(bn_params, conv_bias=None):
    gamma, beta, mean, var = bn_params
    scale = gamma / jnp.sqrt(var + EPS)
    bias = beta - mean * scale
    if conv_bias is not None:
        bias = bias + conv_bias * scale
    return scale, bias


def _conv_taps(w_oihw, scale):
    """(O, I, 3, 3) + per-channel BN scale -> (9, 128, 128) tap matrices."""
    o, i_, _, _ = w_oihw.shape
    w = w_oihw * scale[:, None, None, None]
    w = jnp.transpose(w, (2, 3, 1, 0)).reshape(9, i_, o)        # tap t = kh*3+kw
    return jnp.pad(w, ((0, 0), (0, C_PAD - i_), (0, C_PAD - o)))


def make_params(seed=0):
    """Random parameters in PyTorch layout (eval-mode BN stats)."""
    key = jax.random.PRNGKey(seed)
    ctr = [0]

    def nk():
        ctr[0] += 1
        return jax.random.fold_in(key, ctr[0])

    def nrm(shape, std=0.05):
        return jax.random.normal(nk(), shape, jnp.float32) * std

    def bn(c):
        gamma = 1.0 + 0.1 * jax.random.normal(nk(), (c,), jnp.float32)
        beta = 0.05 * jax.random.normal(nk(), (c,), jnp.float32)
        mean = 0.05 * jax.random.normal(nk(), (c,), jnp.float32)
        var = 1.0 + 0.1 * jnp.abs(jax.random.normal(nk(), (c,), jnp.float32))
        return gamma, beta, mean, var

    raw = {"conv": {"w": nrm((126, 3, 3, 3)), "b": nrm((126,)), "bn": bn(126)}}
    for i in range(10):
        raw["res%d" % i] = {"w1": nrm((126, 126, 3, 3)), "bn1": bn(126),
                            "w2": nrm((126, 126, 3, 3)), "bn2": bn(126)}
    raw["out"] = {"wc": nrm((3, 126, 1, 1)), "bn": bn(3),
                  "fc1_w": nrm((42, 126)), "fc1_b": nrm((42,)),
                  "fc2_w": nrm((7, 42)), "fc2_b": nrm((7,))}
    return raw


def prep_params(raw):
    """Fold BN, pad channels, stack weights into kernel-ready arrays."""
    taps, biases = [], []

    s, b = _fold_bn(raw["conv"]["bn"], conv_bias=raw["conv"]["b"])
    taps.append(_conv_taps(raw["conv"]["w"], s))
    biases.append(jnp.pad(b, (0, C_PAD - 126)))

    for i in range(10):
        blk = raw["res%d" % i]
        s1, b1 = _fold_bn(blk["bn1"])
        s2, b2 = _fold_bn(blk["bn2"])
        taps.append(_conv_taps(blk["w1"], s1))
        biases.append(jnp.pad(b1, (0, C_PAD - 126)))
        taps.append(_conv_taps(blk["w2"], s2))
        biases.append(jnp.pad(b2, (0, C_PAD - 126)))

    w_all = jnp.concatenate(taps, axis=0).astype(jnp.bfloat16)      # (189,128,128)
    b_all = jnp.stack(biases, axis=0).reshape(21, 1, C_PAD)         # (21,1,128) f32

    # OutBlock 1x1 conv + BN folded, padded to (128, CZ).
    so, bo = _fold_bn(raw["out"]["bn"])
    wc = jnp.transpose(raw["out"]["wc"].reshape(3, 126), (1, 0)) * so[None, :]
    wc = jnp.pad(wc, ((0, C_PAD - 126), (0, CZ - 3))).astype(jnp.bfloat16)
    bc = jnp.pad(bo, (0, CZ - 3)).reshape(1, CZ)

    # fc1: fold the NCHW flatten permutation into the weight rows, remapped
    # onto the (72 padded pixels x CZ channels) layout of the tower output.
    f = jnp.arange(126)
    c = f // 42
    rem = f % 42
    ii = rem // 7
    jj = rem % 7
    p = (ii + 1) * WP + (jj + 1)                  # padded-pixel index
    row = p * CZ + c
    w1q = jnp.zeros((PPI * CZ, 42), jnp.float32).at[row].set(raw["out"]["fc1_w"].T)
    w1q = jnp.pad(w1q, ((0, 0), (0, 128 - 42)))                     # (576, 128)
    b1q = jnp.pad(raw["out"]["fc1_b"], (0, 128 - 42)).reshape(1, 128)
    w2q = jnp.pad(raw["out"]["fc2_w"].T, ((0, 128 - 42), (0, 0)))   # (128, 7)
    b2q = raw["out"]["fc2_b"].reshape(1, 7)

    return {"w_all": w_all, "b_all": b_all, "wc": wc, "bc": bc,
            "w1": w1q, "b1": b1q, "w2": w2q, "b2": b2q}


# ------------------------------ forward pass ---------------------------------

def deep_q_net3_forward(x_nchw, kp):
    x = x_nchw.reshape(-1, C_IN, H, W)            # x.view(-1, 3, 6, 7)
    b = x.shape[0]

    # Batch tile: >=2 grid steps whenever b >= 2 so both v7x TensorCores get
    # work, capped at 16 images/step (weights dominate VMEM; scratch stays
    # small).  m_pad is always a multiple of 72 (and of 8).
    tb = 1 if b <= 1 else min(16, (b + 1) // 2)
    bp = ((b + tb - 1) // tb) * tb                # padded batch
    m_pad = tb * PPI
    chunk_imgs = 2 if tb % 2 == 0 else 1          # <=144 rows -> acc fits vregs
    chunk_rows = chunk_imgs * PPI

    # NCHW -> NHWC, zero-pad spatial to 8x9, pad channels 3->128, flatten rows,
    # cast to bf16 (activations are bf16 throughout the tower).
    xn = jnp.transpose(x, (0, 2, 3, 1))                                   # (B,6,7,3)
    xp = jnp.pad(xn, ((0, bp - b), (1, 1), (1, 1), (0, C_PAD - C_IN)))    # (Bp,8,9,128)
    x_flat = xp.reshape(bp * PPI, C_PAD).astype(jnp.bfloat16)

    # Small resident interior-pixel mask (covers up to 2 images per chunk).
    ip = jnp.arange(HP)
    jp = jnp.arange(WP)
    m2 = ((ip[:, None] >= 1) & (ip[:, None] <= H) &
          (jp[None, :] >= 1) & (jp[None, :] <= W))
    mask2 = jnp.tile(m2.astype(jnp.float32).reshape(PPI, 1), (2, 1))      # (144,1)

    z = pl.pallas_call(
        functools.partial(_tower_kernel, m_pad=m_pad, chunk_rows=chunk_rows,
                          n_res=N_RES),
        out_shape=jax.ShapeDtypeStruct((bp * PPI, CZ), jnp.float32),
        grid=(bp // tb,),
        in_specs=[
            pl.BlockSpec((m_pad, C_PAD), lambda i: (i, 0)),
            pl.BlockSpec((2 * PPI, 1), lambda i: (0, 0),
                         pipeline_mode=pl.Buffered(1)),                  # resident
            pl.BlockSpec((21 * 9, C_PAD, C_PAD), lambda i: (0, 0, 0),
                         pipeline_mode=pl.Buffered(1)),                  # resident
            pl.BlockSpec((21, 1, C_PAD), lambda i: (0, 0, 0),
                         pipeline_mode=pl.Buffered(1)),                  # resident
            pl.BlockSpec((C_PAD, CZ), lambda i: (0, 0),
                         pipeline_mode=pl.Buffered(1)),                  # resident
            pl.BlockSpec((1, CZ), lambda i: (0, 0),
                         pipeline_mode=pl.Buffered(1)),                  # resident
        ],
        out_specs=pl.BlockSpec((m_pad, CZ), lambda i: (i, 0)),
        scratch_shapes=[
            pltpu.VMEM((m_pad + 2 * MARGIN, C_PAD), jnp.bfloat16),
            pltpu.VMEM((m_pad + 2 * MARGIN, C_PAD), jnp.bfloat16),
        ],
        compiler_params=pltpu.CompilerParams(
            dimension_semantics=("parallel",),
            vmem_limit_bytes=32 * 1024 * 1024),
    )(x_flat, mask2, kp["w_all"], kp["b_all"], kp["wc"], kp["bc"])

    # Free (row-major compatible) reshape: (B*72, CZ) -> (B, 72*CZ).
    zf = z[:b * PPI].reshape(b, PPI * CZ)

    out = pl.pallas_call(
        _mlp_kernel,
        out_shape=jax.ShapeDtypeStruct((b, 7), jnp.float32),
    )(zf, kp["w1"], kp["b1"], kp["w2"], kp["b2"])
    return out


# --------------------------------- main --------------------------------------

if __name__ == "__main__":
    raw_params = make_params(seed=0)
    kparams = prep_params(raw_params)

    x = jax.random.normal(jax.random.PRNGKey(0), (2, C_IN, H, W), jnp.float32)

    fwd = jax.jit(lambda inp: deep_q_net3_forward(inp, kparams))
    out = fwd(x)
    jax.block_until_ready(out)

    assert out.shape == (2, 7), out.shape
    assert out.dtype == jnp.float32
    print("KERNEL_OK")
</pallas_src>

<mosaic_0001>
module attributes {stable_mosaic.version = 11 : i64} {
  func.func @_tower_kernel(%arg0: i32, %arg1: memref<72x128xbf16, #tpu.memory_space<vmem>>, %arg2: memref<144x1xf32, #tpu.memory_space<vmem>>, %arg3: memref<189x128x128xbf16, #tpu.memory_space<vmem>>, %arg4: memref<21x1x128xf32, #tpu.memory_space<vmem>>, %arg5: memref<128x8xbf16, #tpu.memory_space<vmem>>, %arg6: memref<1x8xf32, #tpu.memory_space<vmem>>, %arg7: memref<72x8xf32, #tpu.memory_space<vmem>>, %arg8: memref<104x128xbf16, #tpu.memory_space<vmem>>, %arg9: memref<104x128xbf16, #tpu.memory_space<vmem>>) attributes {dimension_semantics = [#tpu.dimension_semantics<parallel>], iteration_bounds = array<i64: 2>, scalar_prefetch = 0 : i64, scratch_operands = 2 : i64, tpu.core_type = #tpu.core_type<tc>, window_params = [{transform_indices = @transform_0, window_bounds = array<i64: 72, 128>}, {pipeline_mode = #tpu.pipeline_mode<synchronous>, transform_indices = @transform_1, window_bounds = array<i64: 144, 1>}, {pipeline_mode = #tpu.pipeline_mode<synchronous>, transform_indices = @transform_2, window_bounds = array<i64: 189, 128, 128>}, {pipeline_mode = #tpu.pipeline_mode<synchronous>, transform_indices = @transform_3, window_bounds = array<i64: 21, 1, 128>}, {pipeline_mode = #tpu.pipeline_mode<synchronous>, transform_indices = @transform_4, window_bounds = array<i64: 128, 8>}, {pipeline_mode = #tpu.pipeline_mode<synchronous>, transform_indices = @transform_5, window_bounds = array<i64: 1, 8>}, {transform_indices = @transform_6, window_bounds = array<i64: 72, 8>}]} {
    %cst = arith.constant 0.000000e+00 : bf16
    %0 = vector.broadcast %cst : bf16 to vector<16x128xbf16>
    %c0 = arith.constant 0 : index
    %c0_0 = arith.constant 0 : index
    %1 = vector.load %arg8[%c0, %c0_0] : memref<104x128xbf16, #tpu.memory_space<vmem>>, vector<16x128xbf16>
    tpu.vector_store %arg8[%c0, %c0_0], %0 {strides = array<i32>} : memref<104x128xbf16, #tpu.memory_space<vmem>>, vector<16x128xbf16>,
    %c88 = arith.constant 88 : index
    %c0_1 = arith.constant 0 : index
    %2 = vector.load %arg8[%c88, %c0_1] : memref<104x128xbf16, #tpu.memory_space<vmem>>, vector<16x128xbf16>
    tpu.vector_store %arg8[%c88, %c0_1], %0 {strides = array<i32>} : memref<104x128xbf16, #tpu.memory_space<vmem>>, vector<16x128xbf16>,
    %c0_2 = arith.constant 0 : index
    %c0_3 = arith.constant 0 : index
    %3 = vector.load %arg9[%c0_2, %c0_3] : memref<104x128xbf16, #tpu.memory_space<vmem>>, vector<16x128xbf16>
    tpu.vector_store %arg9[%c0_2, %c0_3], %0 {strides = array<i32>} : memref<104x128xbf16, #tpu.memory_space<vmem>>, vector<16x128xbf16>,
    %c88_4 = arith.constant 88 : index
    %c0_5 = arith.constant 0 : index
    %4 = vector.load %arg9[%c88_4, %c0_5] : memref<104x128xbf16, #tpu.memory_space<vmem>>, vector<16x128xbf16>
    tpu.vector_store %arg9[%c88_4, %c0_5], %0 {strides = array<i32>} : memref<104x128xbf16, #tpu.memory_space<vmem>>, vector<16x128xbf16>,
    %c0_6 = arith.constant 0 : index
    %c0_7 = arith.constant 0 : index
    %5 = vector.load %arg2[%c0_6, %c0_7] : memref<144x1xf32, #tpu.memory_space<vmem>>, vector<72x1xf32>
    %c0_8 = arith.constant 0 : index
    %c0_9 = arith.constant 0 : index
    %6 = vector.load %arg1[%c0_8, %c0_9] : memref<72x128xbf16, #tpu.memory_space<vmem>>, vector<72x128xbf16>
    %c16 = arith.constant 16 : index
    %c0_10 = arith.constant 0 : index
    %7 = vector.load %arg9[%c16, %c0_10] : memref<104x128xbf16, #tpu.memory_space<vmem>>, vector<72x128xbf16>
    tpu.vector_store %arg9[%c16, %c0_10], %6 {strides = array<i32>} : memref<104x128xbf16, #tpu.memory_space<vmem>>, vector<72x128xbf16>,
    %cst_11 = arith.constant 0.000000e+00 : f32
    %8 = vector.broadcast %cst_11 : f32 to vector<72x128xf32>
    %c6 = arith.constant 6 : index
    %c0_12 = arith.constant 0 : index
    %9 = vector.load %arg9[%c6, %c0_12] : memref<104x128xbf16, #tpu.memory_space<vmem>>, vector<72x128xbf16>
    %c0_13 = arith.constant 0 : index
    %c0_14 = arith.constant 0 : index
    %c0_15 = arith.constant 0 : index
    %10 = vector.load %arg3[%c0_13, %c0_14, %c0_15] : memref<189x128x128xbf16, #tpu.memory_space<vmem>>, vector<1x128x128xbf16>
    %11 = vector.shape_cast %10 : vector<1x128x128xbf16> to vector<128x128xbf16>
    %cst_16 = arith.constant dense<0.000000e+00> : vector<72x128xf32>
    %12 = tpu.matmul %9, %11, %cst_16 {dimension_numbers = #tpu.dot_dimension_numbers<[1], [0], [0], [1], [0, 0, 1, 1], [], []>} : vector<72x128xbf16>, vector<128x128xbf16>, vector<72x128xf32> -> vector<72x128xf32>
    %13 = arith.addf %8, %12 : vector<72x128xf32>
    %c7 = arith.constant 7 : index
    %c0_17 = arith.constant 0 : index
    %14 = vector.load %arg9[%c7, %c0_17] : memref<104x128xbf16, #tpu.memory_space<vmem>>, vector<72x128xbf16>
    %c1 = arith.constant 1 : index
    %c0_18 = arith.constant 0 : index
    %c0_19 = arith.constant 0 : index
    %15 = vector.load %arg3[%c1, %c0_18, %c0_19] : memref<189x128x128xbf16, #tpu.memory_space<vmem>>, vector<1x128x128xbf16>
    %16 = vector.shape_cast %15 : vector<1x128x128xbf16> to vector<128x128xbf16>
    %cst_20 = arith.constant dense<0.000000e+00> : vector<72x128xf32>
    %17 = tpu.matmul %14, %16, %cst_20 {dimension_numbers = #tpu.dot_dimension_numbers<[1], [0], [0], [1], [0, 0, 1, 1], [], []>} : vector<72x128xbf16>, vector<128x128xbf16>, vector<72x128xf32> -> vector<72x128xf32>
    %18 = arith.addf %13, %17 : vector<72x128xf32>
    %c8 = arith.constant 8 : index
    %c0_21 = arith.constant 0 : index
    %19 = vector.load %arg9[%c8, %c0_21] : memref<104x128xbf16, #tpu.memory_space<vmem>>, vector<72x128xbf16>
    %c2 = arith.constant 2 : index
    %c0_22 = arith.constant 0 : index
    %c0_23 = arith.constant 0 : index
    %20 = vector.load %arg3[%c2, %c0_22, %c0_23] : memref<189x128x128xbf16, #tpu.memory_space<vmem>>, vector<1x128x128xbf16>
    %21 = vector.shape_cast %20 : vector<1x128x128xbf16> to vector<128x128xbf16>
    %cst_24 = arith.constant dense<0.000000e+00> : vector<72x128xf32>
    %22 = tpu.matmul %19, %21, %cst_24 {dimension_numbers = #tpu.dot_dimension_numbers<[1], [0], [0], [1], [0, 0, 1, 1], [], []>} : vector<72x128xbf16>, vector<128x128xbf16>, vector<72x128xf32> -> vector<72x128xf32>
    %23 = arith.addf %18, %22 : vector<72x128xf32>
    %c15 = arith.constant 15 : index
    %c0_25 = arith.constant 0 : index
    %24 = vector.load %arg9[%c15, %c0_25] : memref<104x128xbf16, #tpu.memory_space<vmem>>, vector<72x128xbf16>
    %c3 = arith.constant 3 : index
    %c0_26 = arith.constant 0 : index
    %c0_27 = arith.constant 0 : index
    %25 = vector.load %arg3[%c3, %c0_26, %c0_27] : memref<189x128x128xbf16, #tpu.memory_space<vmem>>, vector<1x128x128xbf16>
    %26 = vector.shape_cast %25 : vector<1x128x128xbf16> to vector<128x128xbf16>
    %cst_28 = arith.constant dense<0.000000e+00> : vector<72x128xf32>
    %27 = tpu.matmul %24, %26, %cst_28 {dimension_numbers = #tpu.dot_dimension_numbers<[1], [0], [0], [1], [0, 0, 1, 1], [], []>} : vector<72x128xbf16>, vector<128x128xbf16>, vector<72x128xf32> -> vector<72x128xf32>
    %28 = arith.addf %23, %27 : vector<72x128xf32>
    %c16_29 = arith.constant 16 : index
    %c0_30 = arith.constant 0 : index
    %29 = vector.load %arg9[%c16_29, %c0_30] : memref<104x128xbf16, #tpu.memory_space<vmem>>, vector<72x128xbf16>
    %c4 = arith.constant 4 : index
    %c0_31 = arith.constant 0 : index
    %c0_32 = arith.constant 0 : index
    %30 = vector.load %arg3[%c4, %c0_31, %c0_32] : memref<189x128x128xbf16, #tpu.memory_space<vmem>>, vector<1x128x128xbf16>
    %31 = vector.shape_cast %30 : vector<1x128x128xbf16> to vector<128x128xbf16>
    %cst_33 = arith.constant dense<0.000000e+00> : vector<72x128xf32>
    %32 = tpu.matmul %29, %31, %cst_33 {dimension_numbers = #tpu.dot_dimension_numbers<[1], [0], [0], [1], [0, 0, 1, 1], [], []>} : vector<72x128xbf16>, vector<128x128xbf16>, vector<72x128xf32> -> vector<72x128xf32>
    %33 = arith.addf %28, %32 : vector<72x128xf32>
    %c17 = arith.constant 17 : index
    %c0_34 = arith.constant 0 : index
    %34 = vector.load %arg9[%c17, %c0_34] : memref<104x128xbf16, #tpu.memory_space<vmem>>, vector<72x128xbf16>
    %c5 = arith.constant 5 : index
    %c0_35 = arith.constant 0 : index
    %c0_36 = arith.constant 0 : index
    %35 = vector.load %arg3[%c5, %c0_35, %c0_36] : memref<189x128x128xbf16, #tpu.memory_space<vmem>>, vector<1x128x128xbf16>
    %36 = vector.shape_cast %35 : vector<1x128x128xbf16> to vector<128x128xbf16>
    %cst_37 = arith.constant dense<0.000000e+00> : vector<72x128xf32>
    %37 = tpu.matmul %34, %36, %cst_37 {dimension_numbers = #tpu.dot_dimension_numbers<[1], [0], [0], [1], [0, 0, 1, 1], [], []>} : vector<72x128xbf16>, vector<128x128xbf16>, vector<72x128xf32> -> vector<72x128xf32>
    %38 = arith.addf %33, %37 : vector<72x128xf32>
    %c24 = arith.constant 24 : index
    %c0_38 = arith.constant 0 : index
    %39 = vector.load %arg9[%c24, %c0_38] : memref<104x128xbf16, #tpu.memory_space<vmem>>, vector<72x128xbf16>
    %c6_39 = arith.constant 6 : index
    %c0_40 = arith.constant 0 : index
    %c0_41 = arith.constant 0 : index
    %40 = vector.load %arg3[%c6_39, %c0_40, %c0_41] : memref<189x128x128xbf16, #tpu.memory_space<vmem>>, vector<1x128x128xbf16>
    %41 = vector.shape_cast %40 : vector<1x128x128xbf16> to vector<128x128xbf16>
    %cst_42 = arith.constant dense<0.000000e+00> : vector<72x128xf32>
    %42 = tpu.matmul %39, %41, %cst_42 {dimension_numbers = #tpu.dot_dimension_numbers<[1], [0], [0], [1], [0, 0, 1, 1], [], []>} : vector<72x128xbf16>, vector<128x128xbf16>, vector<72x128xf32> -> vector<72x128xf32>
    %43 = arith.addf %38, %42 : vector<72x128xf32>
    %c25 = arith.constant 25 : index
    %c0_43 = arith.constant 0 : index
    %44 = vector.load %arg9[%c25, %c0_43] : memref<104x128xbf16, #tpu.memory_space<vmem>>, vector<72x128xbf16>
    %c7_44 = arith.constant 7 : index
    %c0_45 = arith.constant 0 : index
    %c0_46 = arith.constant 0 : index
    %45 = vector.load %arg3[%c7_44, %c0_45, %c0_46] : memref<189x128x128xbf16, #tpu.memory_space<vmem>>, vector<1x128x128xbf16>
    %46 = vector.shape_cast %45 : vector<1x128x128xbf16> to vector<128x128xbf16>
    %cst_47 = arith.constant dense<0.000000e+00> : vector<72x128xf32>
    %47 = tpu.matmul %44, %46, %cst_47 {dimension_numbers = #tpu.dot_dimension_numbers<[1], [0], [0], [1], [0, 0, 1, 1], [], []>} : vector<72x128xbf16>, vector<128x128xbf16>, vector<72x128xf32> -> vector<72x128xf32>
    %48 = arith.addf %43, %47 : vector<72x128xf32>
    %c26 = arith.constant 26 : index
    %c0_48 = arith.constant 0 : index
    %49 = vector.load %arg9[%c26, %c0_48] : memref<104x128xbf16, #tpu.memory_space<vmem>>, vector<72x128xbf16>
    %c8_49 = arith.constant 8 : index
    %c0_50 = arith.constant 0 : index
    %c0_51 = arith.constant 0 : index
    %50 = vector.load %arg3[%c8_49, %c0_50, %c0_51] : memref<189x128x128xbf16, #tpu.memory_space<vmem>>, vector<1x128x128xbf16>
    %51 = vector.shape_cast %50 : vector<1x128x128xbf16> to vector<128x128xbf16>
    %cst_52 = arith.constant dense<0.000000e+00> : vector<72x128xf32>
    %52 = tpu.matmul %49, %51, %cst_52 {dimension_numbers = #tpu.dot_dimension_numbers<[1], [0], [0], [1], [0, 0, 1, 1], [], []>} : vector<72x128xbf16>, vector<128x128xbf16>, vector<72x128xf32> -> vector<72x128xf32>
    %53 = arith.addf %48, %52 : vector<72x128xf32>
    %c0_53 = arith.constant 0 : index
    %c0_54 = arith.constant 0 : index
    %c0_55 = arith.constant 0 : index
    %54 = vector.load %arg4[%c0_53, %c0_54, %c0_55] : memref<21x1x128xf32, #tpu.memory_space<vmem>>, vector<1x1x128xf32>
    %55 = vector.shape_cast %54 : vector<1x1x128xf32> to vector<1x128xf32>
    %56 = vector.broadcast %55 : vector<1x128xf32> to vector<72x128xf32>
    %57 = arith.addf %53, %56 : vector<72x128xf32>
    %cst_56 = arith.constant 0.000000e+00 : f32
    %58 = vector.broadcast %cst_56 : f32 to vector<72x128xf32>
    %59 = arith.maximumf %57, %58 : vector<72x128xf32>
    %60 = vector.broadcast %5 : vector<72x1xf32> to vector<72x128xf32>
    %61 = arith.mulf %59, %60 : vector<72x128xf32>
    %62 = arith.truncf %61 : vector<72x128xf32> to vector<72x128xbf16>
    %c16_57 = arith.constant 16 : index
    %c0_58 = arith.constant 0 : index
    %63 = vector.load %arg8[%c16_57, %c0_58] : memref<104x128xbf16, #tpu.memory_space<vmem>>, vector<72x128xbf16>
    tpu.vector_store %arg8[%c16_57, %c0_58], %62 {strides = array<i32>} : memref<104x128xbf16, #tpu.memory_space<vmem>>, vector<72x128xbf16>,
    %c0_i32 = arith.constant 0 : i32
    %c10_i32 = arith.constant 10 : i32
    %64 = arith.addi %c0_i32, %c10_i32 : i32
    %c1_i32 = arith.constant 1 : i32
    scf.for %arg10 = %c0_i32 to %64 step %c1_i32  : i32 {
      %c2_i32 = arith.constant 2 : i32
      %74 = arith.muli %c2_i32, %arg10 : i32
      %c1_i32_70 = arith.constant 1 : i32
      %75 = arith.addi %c1_i32_70, %74 : i32
      %cst_71 = arith.constant 0.000000e+00 : f32
      %76 = vector.broadcast %cst_71 : f32 to vector<72x128xf32>
      %c6_72 = arith.constant 6 : index
      %c0_73 = arith.constant 0 : index
      %77 = vector.load %arg8[%c6_72, %c0_73] : memref<104x128xbf16, #tpu.memory_space<vmem>>, vector<72x128xbf16>
      %c9_i32 = arith.constant 9 : i32
      %78 = arith.muli %75, %c9_i32 : i32
      %c0_i32_74 = arith.constant 0 : i32
      %79 = arith.addi %78, %c0_i32_74 : i32
      %80 = arith.index_cast %79 : i32 to index
      %c0_75 = arith.constant 0 : index
      %c0_76 = arith.constant 0 : index
      %81 = vector.load %arg3[%80, %c0_75, %c0_76] : memref<189x128x128xbf16, #tpu.memory_space<vmem>>, vector<1x128x128xbf16>
      %82 = vector.shape_cast %81 : vector<1x128x128xbf16> to vector<128x128xbf16>
      %cst_77 = arith.constant dense<0.000000e+00> : vector<72x128xf32>
      %83 = tpu.matmul %77, %82, %cst_77 {dimension_numbers = #tpu.dot_dimension_numbers<[1], [0], [0], [1], [0, 0, 1, 1], [], []>} : vector<72x128xbf16>, vector<128x128xbf16>, vector<72x128xf32> -> vector<72x128xf32>
      %84 = arith.addf %76, %83 : vector<72x128xf32>
      %c7_78 = arith.constant 7 : index
      %c0_79 = arith.constant 0 : index
      %85 = vector.load %arg8[%c7_78, %c0_79] : memref<104x128xbf16, #tpu.memory_space<vmem>>, vector<72x128xbf16>
      %c9_i32_80 = arith.constant 9 : i32
      %86 = arith.muli %75, %c9_i32_80 : i32
      %c1_i32_81 = arith.constant 1 : i32
      %87 = arith.addi %86, %c1_i32_81 : i32
      %88 = arith.index_cast %87 : i32 to index
      %c0_82 = arith.constant 0 : index
      %c0_83 = arith.constant 0 : index
      %89 = vector.load %arg3[%88, %c0_82, %c0_83] : memref<189x128x128xbf16, #tpu.memory_space<vmem>>, vector<1x128x128xbf16>
      %90 = vector.shape_cast %89 : vector<1x128x128xbf16> to vector<128x128xbf16>
      %cst_84 = arith.constant dense<0.000000e+00> : vector<72x128xf32>
      %91 = tpu.matmul %85, %90, %cst_84 {dimension_numbers = #tpu.dot_dimension_numbers<[1], [0], [0], [1], [0, 0, 1, 1], [], []>} : vector<72x128xbf16>, vector<128x128xbf16>, vector<72x128xf32> -> vector<72x128xf32>
      %92 = arith.addf %84, %91 : vector<72x128xf32>
      %c8_85 = arith.constant 8 : index
      %c0_86 = arith.constant 0 : index
      %93 = vector.load %arg8[%c8_85, %c0_86] : memref<104x128xbf16, #tpu.memory_space<vmem>>, vector<72x128xbf16>
      %c9_i32_87 = arith.constant 9 : i32
      %94 = arith.muli %75, %c9_i32_87 : i32
      %c2_i32_88 = arith.constant 2 : i32
      %95 = arith.addi %94, %c2_i32_88 : i32
      %96 = arith.index_cast %95 : i32 to index
      %c0_89 = arith.constant 0 : index
      %c0_90 = arith.constant 0 : index
      %97 = vector.load %arg3[%96, %c0_89, %c0_90] : memref<189x128x128xbf16, #tpu.memory_space<vmem>>, vector<1x128x128xbf16>
      %98 = vector.shape_cast %97 : vector<1x128x128xbf16> to vector<128x128xbf16>
      %cst_91 = arith.constant dense<0.000000e+00> : vector<72x128xf32>
      %99 = tpu.matmul %93, %98, %cst_91 {dimension_numbers = #tpu.dot_dimension_numbers<[1], [0], [0], [1], [0, 0, 1, 1], [], []>} : vector<72x128xbf16>, vector<128x128xbf16>, vector<72x128xf32> -> vector<72x128xf32>
      %100 = arith.addf %92, %99 : vector<72x128xf32>
      %c15_92 = arith.constant 15 : index
      %c0_93 = arith.constant 0 : index
      %101 = vector.load %arg8[%c15_92, %c0_93] : memref<104x128xbf16, #tpu.memory_space<vmem>>, vector<72x128xbf16>
      %c9_i32_94 = arith.constant 9 : i32
      %102 = arith.muli %75, %c9_i32_94 : i32
      %c3_i32 = arith.constant 3 : i32
      %103 = arith.addi %102, %c3_i32 : i32
      %104 = arith.index_cast %103 : i32 to index
      %c0_95 = arith.constant 0 : index
      %c0_96 = arith.constant 0 : index
      %105 = vector.load %arg3[%104, %c0_95, %c0_96] : memref<189x128x128xbf16, #tpu.memory_space<vmem>>, vector<1x128x128xbf16>
      %106 = vector.shape_cast %105 : vector<1x128x128xbf16> to vector<128x128xbf16>
      %cst_97 = arith.constant dense<0.000000e+00> : vector<72x128xf32>
      %107 = tpu.matmul %101, %106, %cst_97 {dimension_numbers = #tpu.dot_dimension_numbers<[1], [0], [0], [1], [0, 0, 1, 1], [], []>} : vector<72x128xbf16>, vector<128x128xbf16>, vector<72x128xf32> -> vector<72x128xf32>
      %108 = arith.addf %100, %107 : vector<72x128xf32>
      %c16_98 = arith.constant 16 : index
      %c0_99 = arith.constant 0 : index
      %109 = vector.load %arg8[%c16_98, %c0_99] : memref<104x128xbf16, #tpu.memory_space<vmem>>, vector<72x128xbf16>
      %c9_i32_100 = arith.constant 9 : i32
      %110 = arith.muli %75, %c9_i32_100 : i32
      %c4_i32 = arith.constant 4 : i32
      %111 = arith.addi %110, %c4_i32 : i32
      %112 = arith.index_cast %111 : i32 to index
      %c0_101 = arith.constant 0 : index
      %c0_102 = arith.constant 0 : index
      %113 = vector.load %arg3[%112, %c0_101, %c0_102] : memref<189x128x128xbf16, #tpu.memory_space<vmem>>, vector<1x128x128xbf16>
      %114 = vector.shape_cast %113 : vector<1x128x128xbf16> to vector<128x128xbf16>
      %cst_103 = arith.constant dense<0.000000e+00> : vector<72x128xf32>
      %115 = tpu.matmul %109, %114, %cst_103 {dimension_numbers = #tpu.dot_dimension_numbers<[1], [0], [0], [1], [0, 0, 1, 1], [], []>} : vector<72x128xbf16>, vector<128x128xbf16>, vector<72x128xf32> -> vector<72x128xf32>
      %116 = arith.addf %108, %115 : vector<72x128xf32>
      %c17_104 = arith.constant 17 : index
      %c0_105 = arith.constant 0 : index
      %117 = vector.load %arg8[%c17_104, %c0_105] : memref<104x128xbf16, #tpu.memory_space<vmem>>, vector<72x128xbf16>
      %c9_i32_106 = arith.constant 9 : i32
      %118 = arith.muli %75, %c9_i32_106 : i32
      %c5_i32 = arith.constant 5 : i32
      %119 = arith.addi %118, %c5_i32 : i32
      %120 = arith.index_cast %119 : i32 to index
      %c0_107 = arith.constant 0 : index
      %c0_108 = arith.constant 0 : index
      %121 = vector.load %arg3[%120, %c0_107, %c0_108] : memref<189x128x128xbf16, #tpu.memory_space<vmem>>, vector<1x128x128xbf16>
      %122 = vector.shape_cast %121 : vector<1x128x128xbf16> to vector<128x128xbf16>
      %cst_109 = arith.constant dense<0.000000e+00> : vector<72x128xf32>
      %123 = tpu.matmul %117, %122, %cst_109 {dimension_numbers = #tpu.dot_dimension_numbers<[1], [0], [0], [1], [0, 0, 1, 1], [], []>} : vector<72x128xbf16>, vector<128x128xbf16>, vector<72x128xf32> -> vector<72x128xf32>
      %124 = arith.addf %116, %123 : vector<72x128xf32>
      %c24_110 = arith.constant 24 : index
      %c0_111 = arith.constant 0 : index
      %125 = vector.load %arg8[%c24_110, %c0_111] : memref<104x128xbf16, #tpu.memory_space<vmem>>, vector<72x128xbf16>
      %c9_i32_112 = arith.constant 9 : i32
      %126 = arith.muli %75, %c9_i32_112 : i32
      %c6_i32 = arith.constant 6 : i32
      %127 = arith.addi %126, %c6_i32 : i32
      %128 = arith.index_cast %127 : i32 to index
      %c0_113 = arith.constant 0 : index
      %c0_114 = arith.constant 0 : index
      %129 = vector.load %arg3[%128, %c0_113, %c0_114] : memref<189x128x128xbf16, #tpu.memory_space<vmem>>, vector<1x128x128xbf16>
      %130 = vector.shape_cast %129 : vector<1x128x128xbf16> to vector<128x128xbf16>
      %cst_115 = arith.constant dense<0.000000e+00> : vector<72x128xf32>
      %131 = tpu.matmul %125, %130, %cst_115 {dimension_numbers = #tpu.dot_dimension_numbers<[1], [0], [0], [1], [0, 0, 1, 1], [], []>} : vector<72x128xbf16>, vector<128x128xbf16>, vector<72x128xf32> -> vector<72x128xf32>
      %132 = arith.addf %124, %131 : vector<72x128xf32>
      %c25_116 = arith.constant 25 : index
      %c0_117 = arith.constant 0 : index
      %133 = vector.load %arg8[%c25_116, %c0_117] : memref<104x128xbf16, #tpu.memory_space<vmem>>, vector<72x128xbf16>
      %c9_i32_118 = arith.constant 9 : i32
      %134 = arith.muli %75, %c9_i32_118 : i32
      %c7_i32 = arith.constant 7 : i32
      %135 = arith.addi %134, %c7_i32 : i32
      %136 = arith.index_cast %135 : i32 to index
      %c0_119 = arith.constant 0 : index
      %c0_120 = arith.constant 0 : index
      %137 = vector.load %arg3[%136, %c0_119, %c0_120] : memref<189x128x128xbf16, #tpu.memory_space<vmem>>, vector<1x128x128xbf16>
      %138 = vector.shape_cast %137 : vector<1x128x128xbf16> to vector<128x128xbf16>
      %cst_121 = arith.constant dense<0.000000e+00> : vector<72x128xf32>
      %139 = tpu.matmul %133, %138, %cst_121 {dimension_numbers = #tpu.dot_dimension_numbers<[1], [0], [0], [1], [0, 0, 1, 1], [], []>} : vector<72x128xbf16>, vector<128x128xbf16>, vector<72x128xf32> -> vector<72x128xf32>
      %140 = arith.addf %132, %139 : vector<72x128xf32>
      %c26_122 = arith.constant 26 : index
      %c0_123 = arith.constant 0 : index
      %141 = vector.load %arg8[%c26_122, %c0_123] : memref<104x128xbf16, #tpu.memory_space<vmem>>, vector<72x128xbf16>
      %c9_i32_124 = arith.constant 9 : i32
      %142 = arith.muli %75, %c9_i32_124 : i32
      %c8_i32 = arith.constant 8 : i32
      %143 = arith.addi %142, %c8_i32 : i32
      %144 = arith.index_cast %143 : i32 to index
      %c0_125 = arith.constant 0 : index
      %c0_126 = arith.constant 0 : index
      %145 = vector.load %arg3[%144, %c0_125, %c0_126] : memref<189x128x128xbf16, #tpu.memory_space<vmem>>, vector<1x128x128xbf16>
      %146 = vector.shape_cast %145 : vector<1x128x128xbf16> to vector<128x128xbf16>
      %cst_127 = arith.constant dense<0.000000e+00> : vector<72x128xf32>
      %147 = tpu.matmul %141, %146, %cst_127 {dimension_numbers = #tpu.dot_dimension_numbers<[1], [0], [0], [1], [0, 0, 1, 1], [], []>} : vector<72x128xbf16>, vector<128x128xbf16>, vector<72x128xf32> -> vector<72x128xf32>
      %148 = arith.addf %140, %147 : vector<72x128xf32>
      %149 = arith.index_cast %75 : i32 to index
      %c0_128 = arith.constant 0 : index
      %c0_129 = arith.constant 0 : index
      %150 = vector.load %arg4[%149, %c0_128, %c0_129] : memref<21x1x128xf32, #tpu.memory_space<vmem>>, vector<1x1x128xf32>
      %151 = vector.shape_cast %150 : vector<1x1x128xf32> to vector<1x128xf32>
      %152 = vector.broadcast %151 : vector<1x128xf32> to vector<72x128xf32>
      %153 = arith.addf %148, %152 : vector<72x128xf32>
      %cst_130 = arith.constant 0.000000e+00 : f32
      %154 = vector.broadcast %cst_130 : f32 to vector<72x128xf32>
      %155 = arith.maximumf %153, %154 : vector<72x128xf32>
      %156 = vector.broadcast %5 : vector<72x1xf32> to vector<72x128xf32>
      %157 = arith.mulf %155, %156 : vector<72x128xf32>
      %158 = arith.truncf %157 : vector<72x128xf32> to vector<72x128xbf16>
      %c16_131 = arith.constant 16 : index
      %c0_132 = arith.constant 0 : index
      %159 = vector.load %arg9[%c16_131, %c0_132] : memref<104x128xbf16, #tpu.memory_space<vmem>>, vector<72x128xbf16>
      tpu.vector_store %arg9[%c16_131, %c0_132], %158 {strides = array<i32>} : memref<104x128xbf16, #tpu.memory_space<vmem>>, vector<72x128xbf16>,
      %c2_i32_133 = arith.constant 2 : i32
      %160 = arith.muli %c2_i32_133, %arg10 : i32
      %c2_i32_134 = arith.constant 2 : i32
      %161 = arith.addi %c2_i32_134, %160 : i32
      %cst_135 = arith.constant 0.000000e+00 : f32
      %162 = vector.broadcast %cst_135 : f32 to vector<72x128xf32>
      %c6_136 = arith.constant 6 : index
      %c0_137 = arith.constant 0 : index
      %163 = vector.load %arg9[%c6_136, %c0_137] : memref<104x128xbf16, #tpu.memory_space<vmem>>, vector<72x128xbf16>
      %c9_i32_138 = arith.constant 9 : i32
      %164 = arith.muli %161, %c9_i32_138 : i32
      %c0_i32_139 = arith.constant 0 : i32
      %165 = arith.addi %164, %c0_i32_139 : i32
      %166 = arith.index_cast %165 : i32 to index
      %c0_140 = arith.constant 0 : index
      %c0_141 = arith.constant 0 : index
      %167 = vector.load %arg3[%166, %c0_140, %c0_141] : memref<189x128x128xbf16, #tpu.memory_space<vmem>>, vector<1x128x128xbf16>
      %168 = vector.shape_cast %167 : vector<1x128x128xbf16> to vector<128x128xbf16>
      %cst_142 = arith.constant dense<0.000000e+00> : vector<72x128xf32>
      %169 = tpu.matmul %163, %168, %cst_142 {dimension_numbers = #tpu.dot_dimension_numbers<[1], [0], [0], [1], [0, 0, 1, 1], [], []>} : vector<72x128xbf16>, vector<128x128xbf16>, vector<72x128xf32> -> vector<72x128xf32>
      %170 = arith.addf %162, %169 : vector<72x128xf32>
      %c7_143 = arith.constant 7 : index
      %c0_144 = arith.constant 0 : index
      %171 = vector.load %arg9[%c7_143, %c0_144] : memref<104x128xbf16, #tpu.memory_space<vmem>>, vector<72x128xbf16>
      %c9_i32_145 = arith.constant 9 : i32
      %172 = arith.muli %161, %c9_i32_145 : i32
      %c1_i32_146 = arith.constant 1 : i32
      %173 = arith.addi %172, %c1_i32_146 : i32
      %174 = arith.index_cast %173 : i32 to index
      %c0_147 = arith.constant 0 : index
      %c0_148 = arith.constant 0 : index
      %175 = vector.load %arg3[%174, %c0_147, %c0_148] : memref<189x128x128xbf16, #tpu.memory_space<vmem>>, vector<1x128x128xbf16>
      %176 = vector.shape_cast %175 : vector<1x128x128xbf16> to vector<128x128xbf16>
      %cst_149 = arith.constant dense<0.000000e+00> : vector<72x128xf32>
      %177 = tpu.matmul %171, %176, %cst_149 {dimension_numbers = #tpu.dot_dimension_numbers<[1], [0], [0], [1], [0, 0, 1, 1], [], []>} : vector<72x128xbf16>, vector<128x128xbf16>, vector<72x128xf32> -> vector<72x128xf32>
      %178 = arith.addf %170, %177 : vector<72x128xf32>
      %c8_150 = arith.constant 8 : index
      %c0_151 = arith.constant 0 : index
      %179 = vector.load %arg9[%c8_150, %c0_151] : memref<104x128xbf16, #tpu.memory_space<vmem>>, vector<72x128xbf16>
      %c9_i32_152 = arith.constant 9 : i32
      %180 = arith.muli %161, %c9_i32_152 : i32
      %c2_i32_153 = arith.constant 2 : i32
      %181 = arith.addi %180, %c2_i32_153 : i32
      %182 = arith.index_cast %181 : i32 to index
      %c0_154 = arith.constant 0 : index
      %c0_155 = arith.constant 0 : index
      %183 = vector.load %arg3[%182, %c0_154, %c0_155] : memref<189x128x128xbf16, #tpu.memory_space<vmem>>, vector<1x128x128xbf16>
      %184 = vector.shape_cast %183 : vector<1x128x128xbf16> to vector<128x128xbf16>
      %cst_156 = arith.constant dense<0.000000e+00> : vector<72x128xf32>
      %185 = tpu.matmul %179, %184, %cst_156 {dimension_numbers = #tpu.dot_dimension_numbers<[1], [0], [0], [1], [0, 0, 1, 1], [], []>} : vector<72x128xbf16>, vector<128x128xbf16>, vector<72x128xf32> -> vector<72x128xf32>
      %186 = arith.addf %178, %185 : vector<72x128xf32>
      %c15_157 = arith.constant 15 : index
      %c0_158 = arith.constant 0 : index
      %187 = vector.load %arg9[%c15_157, %c0_158] : memref<104x128xbf16, #tpu.memory_space<vmem>>, vector<72x128xbf16>
      %c9_i32_159 = arith.constant 9 : i32
      %188 = arith.muli %161, %c9_i32_159 : i32
      %c3_i32_160 = arith.constant 3 : i32
      %189 = arith.addi %188, %c3_i32_160 : i32
      %190 = arith.index_cast %189 : i32 to index
      %c0_161 = arith.constant 0 : index
      %c0_162 = arith.constant 0 : index
      %191 = vector.load %arg3[%190, %c0_161, %c0_162] : memref<189x128x128xbf16, #tpu.memory_space<vmem>>, vector<1x128x128xbf16>
      %192 = vector.shape_cast %191 : vector<1x128x128xbf16> to vector<128x128xbf16>
      %cst_163 = arith.constant dense<0.000000e+00> : vector<72x128xf32>
      %193 = tpu.matmul %187, %192, %cst_163 {dimension_numbers = #tpu.dot_dimension_numbers<[1], [0], [0], [1], [0, 0, 1, 1], [], []>} : vector<72x128xbf16>, vector<128x128xbf16>, vector<72x128xf32> -> vector<72x128xf32>
      %194 = arith.addf %186, %193 : vector<72x128xf32>
      %c16_164 = arith.constant 16 : index
      %c0_165 = arith.constant 0 : index
      %195 = vector.load %arg9[%c16_164, %c0_165] : memref<104x128xbf16, #tpu.memory_space<vmem>>, vector<72x128xbf16>
      %c9_i32_166 = arith.constant 9 : i32
      %196 = arith.muli %161, %c9_i32_166 : i32
      %c4_i32_167 = arith.constant 4 : i32
      %197 = arith.addi %196, %c4_i32_167 : i32
      %198 = arith.index_cast %197 : i32 to index
      %c0_168 = arith.constant 0 : index
      %c0_169 = arith.constant 0 : index
      %199 = vector.load %arg3[%198, %c0_168, %c0_169] : memref<189x128x128xbf16, #tpu.memory_space<vmem>>, vector<1x128x128xbf16>
      %200 = vector.shape_cast %199 : vector<1x128x128xbf16> to vector<128x128xbf16>
      %cst_170 = arith.constant dense<0.000000e+00> : vector<72x128xf32>
      %201 = tpu.matmul %195, %200, %cst_170 {dimension_numbers = #tpu.dot_dimension_numbers<[1], [0], [0], [1], [0, 0, 1, 1], [], []>} : vector<72x128xbf16>, vector<128x128xbf16>, vector<72x128xf32> -> vector<72x128xf32>
      %202 = arith.addf %194, %201 : vector<72x128xf32>
      %c17_171 = arith.constant 17 : index
      %c0_172 = arith.constant 0 : index
      %203 = vector.load %arg9[%c17_171, %c0_172] : memref<104x128xbf16, #tpu.memory_space<vmem>>, vector<72x128xbf16>
      %c9_i32_173 = arith.constant 9 : i32
      %204 = arith.muli %161, %c9_i32_173 : i32
      %c5_i32_174 = arith.constant 5 : i32
      %205 = arith.addi %204, %c5_i32_174 : i32
      %206 = arith.index_cast %205 : i32 to index
      %c0_175 = arith.constant 0 : index
      %c0_176 = arith.constant 0 : index
      %207 = vector.load %arg3[%206, %c0_175, %c0_176] : memref<189x128x128xbf16, #tpu.memory_space<vmem>>, vector<1x128x128xbf16>
      %208 = vector.shape_cast %207 : vector<1x128x128xbf16> to vector<128x128xbf16>
      %cst_177 = arith.constant dense<0.000000e+00> : vector<72x128xf32>
      %209 = tpu.matmul %203, %208, %cst_177 {dimension_numbers = #tpu.dot_dimension_numbers<[1], [0], [0], [1], [0, 0, 1, 1], [], []>} : vector<72x128xbf16>, vector<128x128xbf16>, vector<72x128xf32> -> vector<72x128xf32>
      %210 = arith.addf %202, %209 : vector<72x128xf32>
      %c24_178 = arith.constant 24 : index
      %c0_179 = arith.constant 0 : index
      %211 = vector.load %arg9[%c24_178, %c0_179] : memref<104x128xbf16, #tpu.memory_space<vmem>>, vector<72x128xbf16>
      %c9_i32_180 = arith.constant 9 : i32
      %212 = arith.muli %161, %c9_i32_180 : i32
      %c6_i32_181 = arith.constant 6 : i32
      %213 = arith.addi %212, %c6_i32_181 : i32
      %214 = arith.index_cast %213 : i32 to index
      %c0_182 = arith.constant 0 : index
      %c0_183 = arith.constant 0 : index
      %215 = vector.load %arg3[%214, %c0_182, %c0_183] : memref<189x128x128xbf16, #tpu.memory_space<vmem>>, vector<1x128x128xbf16>
      %216 = vector.shape_cast %215 : vector<1x128x128xbf16> to vector<128x128xbf16>
      %cst_184 = arith.constant dense<0.000000e+00> : vector<72x128xf32>
      %217 = tpu.matmul %211, %216, %cst_184 {dimension_numbers = #tpu.dot_dimension_numbers<[1], [0], [0], [1], [0, 0, 1, 1], [], []>} : vector<72x128xbf16>, vector<128x128xbf16>, vector<72x128xf32> -> vector<72x128xf32>
      %218 = arith.addf %210, %217 : vector<72x128xf32>
      %c25_185 = arith.constant 25 : index
      %c0_186 = arith.constant 0 : index
      %219 = vector.load %arg9[%c25_185, %c0_186] : memref<104x128xbf16, #tpu.memory_space<vmem>>, vector<72x128xbf16>
      %c9_i32_187 = arith.constant 9 : i32
      %220 = arith.muli %161, %c9_i32_187 : i32
      %c7_i32_188 = arith.constant 7 : i32
      %221 = arith.addi %220, %c7_i32_188 : i32
      %222 = arith.index_cast %221 : i32 to index
      %c0_189 = arith.constant 0 : index
      %c0_190 = arith.constant 0 : index
      %223 = vector.load %arg3[%222, %c0_189, %c0_190] : memref<189x128x128xbf16, #tpu.memory_space<vmem>>, vector<1x128x128xbf16>
      %224 = vector.shape_cast %223 : vector<1x128x128xbf16> to vector<128x128xbf16>
      %cst_191 = arith.constant dense<0.000000e+00> : vector<72x128xf32>
      %225 = tpu.matmul %219, %224, %cst_191 {dimension_numbers = #tpu.dot_dimension_numbers<[1], [0], [0], [1], [0, 0, 1, 1], [], []>} : vector<72x128xbf16>, vector<128x128xbf16>, vector<72x128xf32> -> vector<72x128xf32>
      %226 = arith.addf %218, %225 : vector<72x128xf32>
      %c26_192 = arith.constant 26 : index
      %c0_193 = arith.constant 0 : index
      %227 = vector.load %arg9[%c26_192, %c0_193] : memref<104x128xbf16, #tpu.memory_space<vmem>>, vector<72x128xbf16>
      %c9_i32_194 = arith.constant 9 : i32
      %228 = arith.muli %161, %c9_i32_194 : i32
      %c8_i32_195 = arith.constant 8 : i32
      %229 = arith.addi %228, %c8_i32_195 : i32
      %230 = arith.index_cast %229 : i32 to index
      %c0_196 = arith.constant 0 : index
      %c0_197 = arith.constant 0 : index
      %231 = vector.load %arg3[%230, %c0_196, %c0_197] : memref<189x128x128xbf16, #tpu.memory_space<vmem>>, vector<1x128x128xbf16>
      %232 = vector.shape_cast %231 : vector<1x128x128xbf16> to vector<128x128xbf16>
      %cst_198 = arith.constant dense<0.000000e+00> : vector<72x128xf32>
      %233 = tpu.matmul %227, %232, %cst_198 {dimension_numbers = #tpu.dot_dimension_numbers<[1], [0], [0], [1], [0, 0, 1, 1], [], []>} : vector<72x128xbf16>, vector<128x128xbf16>, vector<72x128xf32> -> vector<72x128xf32>
      %234 = arith.addf %226, %233 : vector<72x128xf32>
      %235 = arith.index_cast %161 : i32 to index
      %c0_199 = arith.constant 0 : index
      %c0_200 = arith.constant 0 : index
      %236 = vector.load %arg4[%235, %c0_199, %c0_200] : memref<21x1x128xf32, #tpu.memory_space<vmem>>, vector<1x1x128xf32>
      %237 = vector.shape_cast %236 : vector<1x1x128xf32> to vector<1x128xf32>
      %238 = vector.broadcast %237 : vector<1x128xf32> to vector<72x128xf32>
      %239 = arith.addf %234, %238 : vector<72x128xf32>
      %c16_201 = arith.constant 16 : index
      %c0_202 = arith.constant 0 : index
      %240 = vector.load %arg8[%c16_201, %c0_202] : memref<104x128xbf16, #tpu.memory_space<vmem>>, vector<72x128xbf16>
      %241 = arith.extf %240 : vector<72x128xbf16> to vector<72x128xf32>
      %242 = arith.addf %239, %241 : vector<72x128xf32>
      %cst_203 = arith.constant 0.000000e+00 : f32
      %243 = vector.broadcast %cst_203 : f32 to vector<72x128xf32>
      %244 = arith.maximumf %242, %243 : vector<72x128xf32>
      %245 = vector.broadcast %5 : vector<72x1xf32> to vector<72x128xf32>
      %246 = arith.mulf %244, %245 : vector<72x128xf32>
      %247 = arith.truncf %246 : vector<72x128xf32> to vector<72x128xbf16>
      %c16_204 = arith.constant 16 : index
      %c0_205 = arith.constant 0 : index
      %248 = vector.load %arg8[%c16_204, %c0_205] : memref<104x128xbf16, #tpu.memory_space<vmem>>, vector<72x128xbf16>
      tpu.vector_store %arg8[%c16_204, %c0_205], %247 {strides = array<i32>} : memref<104x128xbf16, #tpu.memory_space<vmem>>, vector<72x128xbf16>,
    }
    %c10_i32_59 = arith.constant 10 : i32
    %c16_60 = arith.constant 16 : index
    %c0_61 = arith.constant 0 : index
    %65 = vector.load %arg8[%c16_60, %c0_61] : memref<104x128xbf16, #tpu.memory_space<vmem>>, vector<72x128xbf16>
    %c0_62 = arith.constant 0 : index
    %c0_63 = arith.constant 0 : index
    %66 = vector.load %arg5[%c0_62, %c0_63] : memref<128x8xbf16, #tpu.memory_space<vmem>>, vector<128x8xbf16>
    %cst_64 = arith.constant dense<0.000000e+00> : vector<72x8xf32>
    %67 = tpu.matmul %65, %66, %cst_64 {dimension_numbers = #tpu.dot_dimension_numbers<[1], [0], [0], [1], [0, 0, 1, 1], [], []>} : vector<72x128xbf16>, vector<128x8xbf16>, vector<72x8xf32> -> vector<72x8xf32>
    %c0_65 = arith.constant 0 : index
    %c0_66 = arith.constant 0 : index
    %68 = vector.load %arg6[%c0_65, %c0_66] : memref<1x8xf32, #tpu.memory_space<vmem>>, vector<1x8xf32>
    %69 = vector.broadcast %68 : vector<1x8xf32> to vector<72x8xf32>
    %70 = arith.addf %67, %69 : vector<72x8xf32>
    %cst_67 = arith.constant 0.000000e+00 : f32
    %71 = vector.broadcast %cst_67 : f32 to vector<72x8xf32>
    %72 = arith.maximumf %70, %71 : vector<72x8xf32>
    %c0_68 = arith.constant 0 : index
    %c0_69 = arith.constant 0 : index
    %73 = vector.load %arg7[%c0_68, %c0_69] : memref<72x8xf32, #tpu.memory_space<vmem>>, vector<72x8xf32>
    tpu.vector_store %arg7[%c0_68, %c0_69], %72 {strides = array<i32>} : memref<72x8xf32, #tpu.memory_space<vmem>>, vector<72x8xf32>,
    return
  }
  func.func @transform_0(%arg0: i32) -> (i32, i32) {
    %c0_i32 = arith.constant 0 : i32
    %c0_i32_0 = arith.constant 0 : i32
    return %arg0, %c0_i32 : i32, i32
  }
  func.func @transform_1(%arg0: i32) -> (i32, i32) {
    %c0_i32 = arith.constant 0 : i32
    %c0_i32_0 = arith.constant 0 : i32
    %c0_i32_1 = arith.constant 0 : i32
    return %c0_i32, %c0_i32_0 : i32, i32
  }
  func.func @transform_2(%arg0: i32) -> (i32, i32, i32) {
    %c0_i32 = arith.constant 0 : i32
    %c0_i32_0 = arith.constant 0 : i32
    %c0_i32_1 = arith.constant 0 : i32
    %c0_i32_2 = arith.constant 0 : i32
    return %c0_i32, %c0_i32_0, %c0_i32_1 : i32, i32, i32
  }
  func.func @transform_3(%arg0: i32) -> (i32, i32, i32) {
    %c0_i32 = arith.constant 0 : i32
    %c0_i32_0 = arith.constant 0 : i32
    %c0_i32_1 = arith.constant 0 : i32
    %c0_i32_2 = arith.constant 0 : i32
    return %c0_i32, %c0_i32_0, %c0_i32_1 : i32, i32, i32
  }
  func.func @transform_4(%arg0: i32) -> (i32, i32) {
    %c0_i32 = arith.constant 0 : i32
    %c0_i32_0 = arith.constant 0 : i32
    %c0_i32_1 = arith.constant 0 : i32
    return %c0_i32, %c0_i32_0 : i32, i32
  }
  func.func @transform_5(%arg0: i32) -> (i32, i32) {
    %c0_i32 = arith.constant 0 : i32
    %c0_i32_0 = arith.constant 0 : i32
    %c0_i32_1 = arith.constant 0 : i32
    return %c0_i32, %c0_i32_0 : i32, i32
  }
  func.func @transform_6(%arg0: i32) -> (i32, i32) {
    %c0_i32 = arith.constant 0 : i32
    %c0_i32_0 = arith.constant 0 : i32
    return %arg0, %c0_i32 : i32, i32
  }
}

module attributes {stable_mosaic.version = 11 : i64} {
  func.func @_mlp_kernel(%arg0: memref<2x576xf32, #tpu.memory_space<vmem>>, %arg1: memref<576x128xf32, #tpu.memory_space<vmem>>, %arg2: memref<1x128xf32, #tpu.memory_space<vmem>>, %arg3: memref<128x7xf32, #tpu.memory_space<vmem>>, %arg4: memref<1x7xf32, #tpu.memory_space<vmem>>, %arg5: memref<2x7xf32, #tpu.memory_space<vmem>>) attributes {dimension_semantics = [], scalar_prefetch = 0 : i64, scratch_operands = 0 : i64, tpu.core_type = #tpu.core_type<tc>} {
    %c0 = arith.constant 0 : index
    %c0_0 = arith.constant 0 : index
    %0 = vector.load %arg0[%c0, %c0_0] : memref<2x576xf32, #tpu.memory_space<vmem>>, vector<2x576xf32>
    %c0_1 = arith.constant 0 : index
    %c0_2 = arith.constant 0 : index
    %1 = vector.load %arg1[%c0_1, %c0_2] : memref<576x128xf32, #tpu.memory_space<vmem>>, vector<576x128xf32>
    %cst = arith.constant dense<0.000000e+00> : vector<2x128xf32>
    %2 = tpu.matmul %0, %1, %cst {dimension_numbers = #tpu.dot_dimension_numbers<[1], [0], [0], [1], [0, 0, 1, 1], [], []>} : vector<2x576xf32>, vector<576x128xf32>, vector<2x128xf32> -> vector<2x128xf32>
    %c0_3 = arith.constant 0 : index
    %c0_4 = arith.constant 0 : index
    %3 = vector.load %arg2[%c0_3, %c0_4] : memref<1x128xf32, #tpu.memory_space<vmem>>, vector<1x128xf32>
    %4 = vector.broadcast %3 : vector<1x128xf32> to vector<2x128xf32>
    %5 = arith.addf %2, %4 : vector<2x128xf32>
    %cst_5 = arith.constant 0.000000e+00 : f32
    %6 = vector.broadcast %cst_5 : f32 to vector<2x128xf32>
    %7 = arith.maximumf %5, %6 : vector<2x128xf32>
    %c0_6 = arith.constant 0 : index
    %c0_7 = arith.constant 0 : index
    %8 = vector.load %arg3[%c0_6, %c0_7] : memref<128x7xf32, #tpu.memory_space<vmem>>, vector<128x7xf32>
    %cst_8 = arith.constant dense<0.000000e+00> : vector<2x7xf32>
    %9 = tpu.matmul %7, %8, %cst_8 {dimension_numbers = #tpu.dot_dimension_numbers<[1], [0], [0], [1], [0, 0, 1, 1], [], []>} : vector<2x128xf32>, vector<128x7xf32>, vector<2x7xf32> -> vector<2x7xf32>
    %c0_9 = arith.constant 0 : index
    %c0_10 = arith.constant 0 : index
    %10 = vector.load %arg4[%c0_9, %c0_10] : memref<1x7xf32, #tpu.memory_space<vmem>>, vector<1x7xf32>
    %11 = vector.broadcast %10 : vector<1x7xf32> to vector<2x7xf32>
    %12 = arith.addf %9, %11 : vector<2x7xf32>
    %c0_11 = arith.constant 0 : index
    %c0_12 = arith.constant 0 : index
    %13 = vector.load %arg5[%c0_11, %c0_12] : memref<2x7xf32, #tpu.memory_space<vmem>>, vector<2x7xf32>
    tpu.vector_store %arg5[%c0_11, %c0_12], %12 {strides = array<i32>} : memref<2x7xf32, #tpu.memory_space<vmem>>, vector<2x7xf32>,
    return
  }
}

</mosaic_0001>

<bundles_post_ra>
// kernel: _lambda_.3
= control target key start
LH: loop header
LB: loop body
LE: loop exit
PB: predicated region body
PF: predicated region fallthrough
CT: control target
= control target key end

     0   :  { %10 = vsyncpa [#allocation3], 0  ;;  %s533_s0 = inlined_call_operand.vmem [shape: f32[2,576], index: 0, kind: input, shape index: {}]   ;;  %s534_s1 = inlined_call_operand.hbm [shape: f32[576,128], index: 1, kind: input, shape index: {}]   ;;  %s535_s2 = inlined_call_operand.hbm [shape: f32[1,128], index: 2, kind: input, shape index: {}]   ;;  %s536_s3 = inlined_call_operand.hbm [shape: f32[128,7], index: 3, kind: input, shape index: {}]   ;;  %s537_s4 = inlined_call_operand.hbm [shape: f32[1,7], index: 4, kind: input, shape index: {}]   ;;  %s538_s5 = inlined_call_operand.hbm [shape: f32[2,7], index: 5, kind: output, shape index: {}]  }
   0x1   :  { %11 = vsyncpa [#allocation6], 0 }
   0x2   :  { %12 = vsyncpa [#allocation9], 0  ;;  %s34_s20 = sshll.u32 %s535_s2, 4  ;;  %s35_s20 = int_to_ptr.hbm [resolvable:$true] %s34_s20 }
   0x3   :  { %13 = vsyncpa [#allocation4], 0  ;;  %s475_s21 = smov [#allocation5]   ;;  %s20_s25 = sshll.u32 %s534_s1, 4  ;;  %s21_s25 = int_to_ptr.hbm [resolvable:$true] %s20_s25 }
   0x4   :  { %s36_s22 = sshll.u32 %s475_s21, 4  ;;  %s476_s26 = smov [#allocation2]   ;;  %s37_s22 = int_to_ptr.vmem [resolvable:$true] %s36_s22 }
   0x5   :  { %39 = dma.hbm_to_vmem [thread:$0]  %s35_s20, 16, %s37_s22, [#allocation6]  }
   0x6   :  { %s22_s27 = sshll.u32 %s476_s26, 4  ;;  %s477_s28 = smov 128   ;;  %s23_s27 = int_to_ptr.vmem [resolvable:$true] %s22_s27 }
   0x7   :  { %s478_s29 = smov 8   ;;  %s44_s2 = sshll.u32 %s536_s3, 4  ;;  %s45_s2 = int_to_ptr.hbm [resolvable:$true] %s44_s2 }
   0x8   :  { %28 = dma.hbm_to_vmem [thread:$0]  %s21_s25, 9216, %s23_s27, [#allocation3], %s477_s28, %s477_s28, %s478_s29  }
   0x9   :  { %s479_s7 = smov [#allocation7]   ;;  %s58_s1 = sshll.u32 %s537_s4, 4  ;;  %s59_s1 = int_to_ptr.hbm [resolvable:$true] %s58_s1 }
   0xa   :  { %s46_s8 = sshll.u32 %s479_s7, 4  ;;  %s480_s11 = smov [#allocation8]   ;;  %s47_s8 = int_to_ptr.vmem [resolvable:$true] %s46_s8 }
   0xb   :  { %52 = dma.hbm_to_vmem [thread:$0]  %s45_s2, 2048, %s47_s8, [#allocation6], %s477_s28, %s477_s28, %s478_s29  }
   0xc   :  { %s60_s12 = sshll.u32 %s480_s11, 4  ;;  %s61_s12 = int_to_ptr.vmem [resolvable:$true] %s60_s12 }
   0xd   :  { %63 = dma.hbm_to_vmem [thread:$0]  %s59_s1, 16, %s61_s12, [#allocation9]  }
   0xe   :  { %467 = dma.done.wait [#allocation3], 9216  }
   0xf   :  { %468 = vsyncadd [#allocation3], 4294958080 }
  0x10   :  { %469 = dma.done.wait [#allocation6], 2064  }
  0x11   :  { %470 = vsyncadd [#allocation6], 4294965232 }
  0x12   :  { %471 = dma.done.wait [#allocation9], 16  }
  0x13   :  { %472 = vsyncadd [#allocation9], 4294967280  ;;  %v97_v0 = vld [vmem:[#allocation2 + $0x78] sm:$0xff]  ;;  %v96_v1 = vld [vmem:[#allocation2 + $0x70] sm:$0xff]  ;;  %vm172_vm0 = vcmask 523264   ;;  %s325_s18 = sshll.u32 %s538_s5, 4  ;;  %s326_s18 = int_to_ptr.hbm [resolvable:$true] %s325_s18 }
  0x14   :  { %175 = vmatpush.msra.mxu0 %v97_v0  ;;  %v129_v2 = vld [vmem:[#allocation2 + $0x178] sm:$0xff]  ;;  %v128_v3 = vld [vmem:[#allocation2 + $0x170] sm:$0xff]  ;;  %v95_v4 = vld [vmem:[#allocation2 + $0x68] sm:$0xff]  ;;  %vm316_vm1 = vcmask 50176  }
  0x15   :  { %215 = vmatpush.msra.mxu2 %v129_v2  ;;  %v145_v5 = vld [vmem:[#allocation2 + $0x1f8] sm:$0xff]  ;;  %v127_v7 = vld [vmem:[#allocation2 + $0x168] sm:$0xff]  ;;  %v144_v8 = vld [vmem:[#allocation2 + $0x1f0] sm:$0xff] }
  0x16   :  { %v113_v6 = vld [vmem:[#allocation2 + $0xf8] sm:$0xff]  ;;  %176 = vmatpush.msra.mxu0 %v96_v1  ;;  %235 = vmatpush.msra.mxu3 %v145_v5  ;;  %v94_v9 = vld [vmem:[#allocation2 + $0x60] sm:$0xff]  ;;  %v112_v10 = vld [vmem:[#allocation2 + $0xf0] sm:$0xff] }
  0x17   :  { %216 = vmatpush.msra.mxu2 %v128_v3  ;;  %195 = vmatpush.msra.mxu1 %v113_v6  ;;  %v143_v11 = vld [vmem:[#allocation2 + $0x1e8] sm:$0xff]  ;;  %v126_v12 = vld [vmem:[#allocation2 + $0x160] sm:$0xff]  ;;  %v93_v14 = vld [vmem:[#allocation2 + $0x58] sm:$0xff] }
  0x18   :  { %177 = vmatpush.msra.mxu0 %v95_v4  ;;  %236 = vmatpush.msra.mxu3 %v144_v8  ;;  %v111_v13 = vld [vmem:[#allocation2 + $0xe8] sm:$0xff]  ;;  %v142_v15 = vld [vmem:[#allocation2 + $0x1e0] sm:$0xff]  ;;  %v125_v16 = vld [vmem:[#allocation2 + $0x158] sm:$0xff] }
  0x19   :  { %217 = vmatpush.msra.mxu2 %v127_v7  ;;  %196 = vmatpush.msra.mxu1 %v112_v10  ;;  %v110_v17 = vld [vmem:[#allocation2 + $0xe0] sm:$0xff]  ;;  %v92_v18 = vld [vmem:[#allocation2 + $0x50] sm:$0xff]  ;;  %v141_v19 = vld [vmem:[#allocation2 + $0x1d8] sm:$0xff] }
  0x1a   :  { %178 = vmatpush.msra.mxu0 %v94_v9  ;;  %237 = vmatpush.msra.mxu3 %v143_v11  ;;  %v124_v20 = vld [vmem:[#allocation2 + $0x150] sm:$0xff]  ;;  %v109_v21 = vld [vmem:[#allocation2 + $0xd8] sm:$0xff]  ;;  %v91_v22 = vld [vmem:[#allocation2 + $0x48] sm:$0xff] }
  0x1b   :  { %218 = vmatpush.msra.mxu2 %v126_v12  ;;  %197 = vmatpush.msra.mxu1 %v111_v13  ;;  %v140_v23 = vld [vmem:[#allocation2 + $0x1d0] sm:$0xff]  ;;  %v123_v24 = vld [vmem:[#allocation2 + $0x148] sm:$0xff]  ;;  %v90_v26 = vld [vmem:[#allocation2 + $0x40] sm:$0xff] }
  0x1c   :  { %179 = vmatpush.msra.mxu0 %v93_v14  ;;  %238 = vmatpush.msra.mxu3 %v142_v15  ;;  %v108_v25 = vld [vmem:[#allocation2 + $0xd0] sm:$0xff]  ;;  %v139_v27 = vld [vmem:[#allocation2 + $0x1c8] sm:$0xff]  ;;  %v122_v28 = vld [vmem:[#allocation2 + $0x140] sm:$0xff] }
  0x1d   :  { %219 = vmatpush.msra.mxu2 %v125_v16  ;;  %198 = vmatpush.msra.mxu1 %v110_v17  ;;  %v107_v29 = vld [vmem:[#allocation2 + $0xc8] sm:$0xff]  ;;  %v89_v30 = vld [vmem:[#allocation2 + $0x38] sm:$0xff]  ;;  %v138_v31 = vld [vmem:[#allocation2 + $0x1c0] sm:$0xff] }
  0x1e   :  { %180 = vmatpush.msra.mxu0 %v92_v18  ;;  %239 = vmatpush.msra.mxu3 %v141_v19  ;;  %v121_v32 = vld [vmem:[#allocation2 + $0x138] sm:$0xff]  ;;  %v106_v33 = vld [vmem:[#allocation2 + $0xc0] sm:$0xff]  ;;  %v88_v34 = vld [vmem:[#allocation2 + $0x30] sm:$0xff] }
  0x1f   :  { %220 = vmatpush.msra.mxu2 %v124_v20  ;;  %199 = vmatpush.msra.mxu1 %v109_v21  ;;  %v137_v35 = vld [vmem:[#allocation2 + $0x1b8] sm:$0xff]  ;;  %v120_v36 = vld [vmem:[#allocation2 + $0x130] sm:$0xff]  ;;  %v87_v38 = vld [vmem:[#allocation2 + $0x28] sm:$0xff] }
  0x20   :  { %181 = vmatpush.msra.mxu0 %v91_v22  ;;  %240 = vmatpush.msra.mxu3 %v140_v23  ;;  %v105_v37 = vld [vmem:[#allocation2 + $0xb8] sm:$0xff]  ;;  %v136_v39 = vld [vmem:[#allocation2 + $0x1b0] sm:$0xff]  ;;  %v119_v40 = vld [vmem:[#allocation2 + $0x128] sm:$0xff] }
  0x21   :  { %221 = vmatpush.msra.mxu2 %v123_v24  ;;  %200 = vmatpush.msra.mxu1 %v108_v25  ;;  %v104_v41 = vld [vmem:[#allocation2 + $0xb0] sm:$0xff]  ;;  %v86_v42 = vld [vmem:[#allocation2 + $0x20] sm:$0xff]  ;;  %v135_v43 = vld [vmem:[#allocation2 + $0x1a8] sm:$0xff] }
  0x22   :  { %182 = vmatpush.msra.mxu0 %v90_v26  ;;  %241 = vmatpush.msra.mxu3 %v139_v27  ;;  %v118_v44 = vld [vmem:[#allocation2 + $0x120] sm:$0xff]  ;;  %v103_v45 = vld [vmem:[#allocation2 + $0xa8] sm:$0xff]  ;;  %v80_v46 = vld [vmem:[%s533_s0] sm:$0xff] }
  0x23   :  { %222 = vmatpush.msra.mxu2 %v122_v28  ;;  %201 = vmatpush.msra.mxu1 %v107_v29  ;;  %v85_v47 = vld [vmem:[#allocation2 + $0x18] sm:$0xff]  ;;  %v134_v48 = vld [vmem:[#allocation2 + $0x1a0] sm:$0xff]  ;;  %160 = vst [vmem:[#allocation1] ss:$4 sm:$0xff] %v80_v46  ;;  %v84_v51 = vld [vmem:[#allocation2 + $0x10] sm:$0xff] }
  0x24   :  { %183 = vmatpush.msra.mxu0 %v89_v30  ;;  %242 = vmatpush.msra.mxu3 %v138_v31  ;;  %v117_v49 = vld [vmem:[#allocation2 + $0x118] sm:$0xff]  ;;  %v102_v50 = vld [vmem:[#allocation2 + $0xa0] sm:$0xff]  ;;  %v116_v54 = vld [vmem:[#allocation2 + $0x110] sm:$0xff] }
  0x25   :  { %223 = vmatpush.msra.mxu2 %v121_v32  ;;  %202 = vmatpush.msra.mxu1 %v106_v33  ;;  %v133_v52 = vld [vmem:[#allocation2 + $0x198] sm:$0xff]  ;;  %v81_v53 = vld [vmem:[%s533_s0 + $0x8] sm:$0x3]  ;;  %v83_v56 = vld [vmem:[#allocation2 + $0x8] sm:$0xff]  ;;  %s481_s0 = smov [#allocation10]  }
  0x26   :  { %184 = vmatpush.msra.mxu0 %v88_v34  ;;  %243 = vmatpush.msra.mxu3 %v137_v35  ;;  %v101_v55 = vld [vmem:[#allocation2 + $0x98] sm:$0xff]  ;;  %162 = vst [vmem:[#allocation1 + $0x20] ss:$4 sm:$0xff] %v81_v53  ;;  %v132_v57 = vld [vmem:[#allocation2 + $0x190] sm:$0xff]  ;;  %v115_v58 = vld [vmem:[#allocation2 + $0x108] sm:$0xff]  ;;  %s323_s15 = sshll.u32 %s481_s0, 4  ;;  %s324_s15 = int_to_ptr.vmem [resolvable:$true] %s323_s15 }
  0x27   :  { %224 = vmatpush.msra.mxu2 %v120_v36  ;;  %203 = vmatpush.msra.mxu1 %v105_v37  ;;  %v100_v59 = vld [vmem:[#allocation2 + $0x90] sm:$0xff]  ;;  %v82_v60 = vld [vmem:[#allocation2] sm:$0xff]  ;;  %v131_v61 = vld [vmem:[#allocation2 + $0x188] sm:$0xff] }
  0x28   :  { %185 = vmatpush.msra.mxu0 %v87_v38  ;;  %244 = vmatpush.msra.mxu3 %v136_v39  ;;  %v153_v62 = vld [vmem:[#allocation2 + $0x238] sm:$0xff]  ;;  %v114_v63 = vld [vmem:[#allocation2 + $0x100] sm:$0xff]  ;;  %v99_v1 = vld [vmem:[#allocation2 + $0x88] sm:$0xff] }
  0x29   :  { %225 = vmatpush.msra.mxu2 %v119_v40  ;;  %204 = vmatpush.msra.mxu1 %v104_v41  ;;  %v152_v2 = vld [vmem:[#allocation2 + $0x230] sm:$0xff]  ;;  %v130_v3 = vld [vmem:[#allocation2 + $0x180] sm:$0xff]  ;;  %v151_v6 = vld [vmem:[#allocation2 + $0x228] sm:$0xff] }
  0x2a   :  { %186 = vmatpush.msra.mxu0 %v86_v42  ;;  %245 = vmatpush.msra.mxu3 %v135_v43  ;;  %v165_v0 = vld.sshfl [vmem:[#allocation1 + $0x10] sm:$0xff pattern:$0x73625140]  ;;  %v163_v4 = vld.sshfl [vmem:[#allocation1] sm:$0xff pattern:$0x73625140] }
  0x2b   :  { %226 = vmatpush.msra.mxu2 %v118_v44  ;;  %205 = vmatpush.msra.mxu1 %v103_v45  ;;  %v166_v5 = vld.sshfl [vmem:[#allocation1 + $0x18] sm:$0xff pattern:$0x73625140]  ;;  %v98_v7 = vld [vmem:[#allocation2 + $0x80] sm:$0xff]  ;;  %v149_v11 = vld [vmem:[#allocation2 + $0x218] sm:$0xff] }
  0x2c   :  { %187 = vmatpush.msra.mxu0 %v85_v47  ;;  %246 = vmatpush.msra.mxu3 %v134_v48  ;;  %v164_v8 = vld.sshfl [vmem:[#allocation1 + $0x8] sm:$0xff pattern:$0x73625140]  ;;  %v290_v12 = vld [vmem:[#allocation7 + $0x70] sm:$0xff]  ;;  %v289_v14 = vld [vmem:[#allocation7 + $0x68] sm:$0xff] }
  0x2d   :  { %227 = vmatpush.msra.mxu2 %v117_v49  ;;  %206 = vmatpush.msra.mxu1 %v102_v50  ;;  %v150_v9 = vld [vmem:[#allocation2 + $0x220] sm:$0xff]  ;;  %v148_v13 = vld [vmem:[#allocation2 + $0x210] sm:$0xff]  ;;  %v147_v15 = vld [vmem:[#allocation2 + $0x208] sm:$0xff] }
  0x2e   :  { %188 = vmatpush.msra.mxu0 %v84_v51  ;;  %247 = vmatpush.msra.mxu3 %v133_v52  ;;  %v291_v10 = vld [vmem:[#allocation7 + $0x78] sm:$0xff]  ;;  %v288_v16 = vld [vmem:[#allocation7 + $0x60] sm:$0xff]  ;;  %v286_v20 = vld [vmem:[#allocation7 + $0x50] sm:$0xff] }
  0x2f   :  { %228 = vmatpush.msra.mxu2 %v116_v54  ;;  %207 = vmatpush.msra.mxu1 %v101_v55  ;;  %v146_v17 = vld [vmem:[#allocation2 + $0x200] sm:$0xff]  ;;  %v167_v19 = vld.sshfl [vmem:[#allocation1 + $0x20] sm:$0xff pattern:$0x73625140]  ;;  %v285_v21 = vld [vmem:[#allocation7 + $0x48] sm:$0xff] }
  0x30   :  { %189 = vmatpush.msra.mxu0 %v83_v56  ;;  %248 = vmatpush.msra.mxu3 %v132_v57  ;;  %v287_v18 = vld [vmem:[#allocation7 + $0x58] sm:$0xff]  ;;  %v284_v22 = vld [vmem:[#allocation7 + $0x40] sm:$0xff]  ;;  %v282_v24 = vld [vmem:[#allocation7 + $0x30] sm:$0xff] }
  0x31   :  { %229 = vmatpush.msra.mxu2 %v115_v58  ;;  %208 = vmatpush.msra.mxu1 %v100_v59  ;;  %v283_v23 = vld [vmem:[#allocation7 + $0x38] sm:$0xff]  ;;  %v281_v25 = vld [vmem:[#allocation7 + $0x28] sm:$0xff]  ;;  %v280_v26 = vld [vmem:[#allocation7 + $0x20] sm:$0xff] }
  0x32   :  { %190 = vmatpush.msra.mxu0 %v82_v60  ;;  %249 = vmatpush.msra.mxu3 %v131_v61  ;;  %v279_v27 = vld [vmem:[#allocation7 + $0x18] sm:$0xff]  ;;  %v278_v28 = vld [vmem:[#allocation7 + $0x10] sm:$0xff]  ;;  %v277_v29 = vld [vmem:[#allocation7 + $0x8] sm:$0xff] }
  0x33   :  { %230 = vmatpush.msra.mxu2 %v114_v63  ;;  %209 = vmatpush.msra.mxu1 %v99_v1  ;;  %v276_v30 = vld [vmem:[#allocation7] sm:$0xff]  ;;  %v345_v31 = vld [vmem:[#allocation5] ss:$0 sm:$0xff] }
  0x34   :  { %263 = vmatpush.msrb.mxu0 %v153_v62  ;;  %231 = vmatmul.f32.vlgmr.msra.gmra.mxu2 %v165_v0  ;;  %v346_v43 = vld [vmem:[#allocation8] ss:$0 sm:$0xff] }
  0x35   :  { %250 = vmatpush.msra.mxu3 %v130_v3  ;;  %191 = vmatmul.f32.vlgmr.msra.gmra.mxu0 %v163_v4 }
  0x36   :  { %264 = vmatpush.msrb.mxu0 %v152_v2  ;;  %251 = vmatmul.f32.vlgmr.msra.gmra.mxu3 %v166_v5 }
  0x37   :  { %210 = vmatpush.msra.mxu1 %v98_v7 }
  0x38   :  { %265 = vmatpush.msrb.mxu0 %v151_v6  ;;  %211 = vmatmul.f32.vlgmr.msra.gmra.mxu1 %v164_v8 }
  0x39   :  { %296 = vmatpush.msrb.mxu1 %v291_v10 }
  0x3a   :  { %266 = vmatpush.msrb.mxu0 %v150_v9 }
  0x3b   :  { %297 = vmatpush.msrb.mxu1 %v290_v12 }
  0x3c   :  { %267 = vmatpush.msrb.mxu0 %v149_v11 }
  0x3d   :  { %298 = vmatpush.msrb.mxu1 %v289_v14 }
  0x3e   :  { %268 = vmatpush.msrb.mxu0 %v148_v13 }
  0x3f   :  { %299 = vmatpush.msrb.mxu1 %v288_v16 }
  0x40   :  { %269 = vmatpush.msrb.mxu0 %v147_v15 }
  0x41   :  { %300 = vmatpush.msrb.mxu1 %v287_v18 }
  0x42   :  { %270 = vmatpush.msrb.mxu0 %v146_v17 }
  0x43   :  { %337 = vmatmul.msk.f32.vlgmr.msrb.gmra.mxu0 %vm172_vm0, %v167_v19  ;;  %301 = vmatpush.msrb.mxu1 %v286_v20 }
  0x45   :  { %302 = vmatpush.msrb.mxu1 %v285_v21 }
  0x47   :  { %303 = vmatpush.msrb.mxu1 %v284_v22 }
  0x49   :  { %304 = vmatpush.msrb.mxu1 %v283_v23 }
  0x4b   :  { %305 = vmatpush.msrb.mxu1 %v282_v24 }
  0x4d   :  { %306 = vmatpush.msrb.mxu1 %v281_v25 }
  0x4f   :  { %307 = vmatpush.msrb.mxu1 %v280_v26 }
  0x51   :  { %308 = vmatpush.msrb.mxu1 %v279_v27 }
  0x53   :  { %309 = vmatpush.msrb.mxu1 %v278_v28 }
  0x55   :  { %310 = vmatpush.msrb.mxu1 %v277_v29 }
  0x57   :  { %311 = vmatpush.msrb.mxu1 %v276_v30 }
  0xb2   :  { %v192_v32 = vpop.f32.mrf.mxu0 }
  0xb3   :  { %v193_v33 = vadd.f32 %v345_v31, %v192_v32 }
  0xb5   :  { %v212_v34 = vpop.f32.mrf.mxu1 }
  0xb6   :  { %v213_v35 = vadd.f32 %v212_v34, %v193_v33 }
  0xb7   :  { %v232_v36 = vpop.f32.mrf.mxu2 }
  0xb8   :  { %v233_v37 = vadd.f32 %v232_v36, %v213_v35 }
  0xb9   :  { %v252_v38 = vpop.f32.mrf.mxu3 }
  0xba   :  { %v253_v39 = vadd.f32 %v252_v38, %v233_v37 }
  0xc0   :  { %v272_v40 = vpop.f32.mrf.mxu0 }
  0xc1   :  { %v273_v41 = vadd.f32 %v272_v40, %v253_v39 }
  0xc3   :  { %v275_v42 = vmax.f32 %v273_v41, 0.0 }
  0xc5   :  { %312 = vmatmul.f32.vlgmr.msrb.gmra.mxu1 %v275_v42 }
 0x142   :  { %v313_v44 = vpop.f32.mrf.mxu1 }
 0x143   :  { %v314_v45 = vadd.f32 %v346_v43, %v313_v44 }
 0x145   :  { %317 = vst.msk [vmem:[#allocation10] sm:$0x3] %vm316_vm1, %v314_v45 }
 0x146   :  { %328 = dma.vmem_to_hbm [thread:$0]  %s324_s15, 32, %s326_s18, [#allocation4]  }
 0x147   :  { %473 = dma.done.wait [#allocation4], 32  }
 0x148   :  { %474 = vsyncadd [#allocation4], 4294967264 }
 0x149   :  { %333 = vsyncpa [#allocation3], 1 }
 0x14a   :  { %334 = vsyncpa [#allocation6], 1 }
 0x14b   :  { %335 = vsyncpa [#allocation9], 1 }
 0x14c   :  { %336 = vsyncpa [#allocation4], 1 }

// kernel: _lambda_.2
= control target key start
LH: loop header
LB: loop body
LE: loop exit
PB: predicated region body
PF: predicated region fallthrough
CT: control target
= control target key end

     0   :  { %11 = vsyncpa [#allocation5], 0  ;;  %s8351_s0 = inlined_call_operand.vmem [shape: bf16[144,128], index: 0, kind: input, shape index: {}]   ;;  %s8352_s1 = inlined_call_operand.vmem [shape: f32[144,1], index: 1, kind: input, shape index: {}]   ;;  %s8353_s2 = inlined_call_operand.hbm [shape: bf16[189,128,128], index: 2, kind: input, shape index: {}]   ;;  %s8354_s3 = inlined_call_operand.hbm [shape: f32[21,1,128], index: 3, kind: input, shape index: {}]   ;;  %s8355_s4 = inlined_call_operand.hbm [shape: bf16[128,8], index: 4, kind: input, shape index: {}]   ;;  %s8356_s5 = inlined_call_operand.hbm [shape: f32[1,8], index: 5, kind: input, shape index: {}]   ;;  %s8357_s6 = inlined_call_operand.vmem [shape: f32[144,8], index: 6, kind: output, shape index: {}]  }
   0x1   :  { %12 = vsyncpa [#allocation7], 0 }
   0x2   :  { %13 = vsyncpa [#allocation10], 0  ;;  %s7343_s21 = smov 0  }
   0x3 LB: > { %s209_s24 = sshll.u32 %s8354_s3, 4  ;;  %s5016_s25 = sadd.s32 4294967295, %s7293_s21   ;;  %s7293_s21 = sphi %s7343_s21, %s19_s21   ;;  %s210_s24 = int_to_ptr.hbm [resolvable:$true] %s209_s24 }
   0x4   : > { %p5018_p0 = scmp.ge.s32.totalorder %s7293_s21, 1  ;;  %p181_p1 = scmp.lt.s32.totalorder %s7293_s21, 3 }
   0x5   : > { %p7356_p2 = scmp.eq.s32.totalorder %s5016_s25, 0  ;;  %s7299_s28 = smov [#allocation6]  }
   0x6   : > { %p7360_p3 = pnand %p5018_p0, %p181_p1  ;;  %s211_s29 = sshll.u32 %s7299_s28, 4  ;;  %s212_s29 = int_to_ptr.vmem [resolvable:$true] %s211_s29 }
   0x7   : > { %s195_s8 = sshll.u32 %s8353_s2, 4  ;;  %s7300_s10 = smov [#allocation4]   ;;  %s196_s8 = int_to_ptr.hbm [resolvable:$true] %s195_s8 }
   0x8   : > { %p7089_p4 = pneg %p7360_p3  ;;  %s197_s11 = sshll.u32 %s7300_s10, 4  ;;  %s198_s11 = int_to_ptr.vmem [resolvable:$true] %s197_s11 }
   0x9   : > { %s7301_s12 = smov 16   ;;  %s7302_s13 = smov 1  }
   0xa   : > { %p7371_p5 = pnand %p7356_p2, %p7089_p4  ;;  %s223_s16 = sshll.u32 %s8355_s4, 4  ;;  %s224_s16 = int_to_ptr.hbm [resolvable:$true] %s223_s16 }
   0xb   : > { %s7303_s17 = smov 64   ;;  %s7304_s18 = smov 4  }
   0xc   : > { %7095 = dma.hbm_to_vmem [thread:$0]  (!%p7371_p5), %s210_s24, 336, %s212_s29, [#allocation7], %s7301_s12, %s7301_s12, %s7302_s13  }
   0xd   : > { %7092 = dma.hbm_to_vmem [thread:$0]  (!%p7371_p5), %s196_s8, 193536, %s198_s11, [#allocation5], %s7303_s17, %s7303_s17, %s7304_s18  }
   0xe   : > { %s7305_s19 = smov [#allocation8]   ;;  %s238_s28 = sshll.u32 %s8356_s5, 4  ;;  %s239_s28 = int_to_ptr.hbm [resolvable:$true] %s238_s28 }
   0xf   : > { %s225_s20 = sshll.u32 %s7305_s19, 4  ;;  %s7306_s24 = smov [#allocation9]   ;;  %s226_s20 = int_to_ptr.vmem [resolvable:$true] %s225_s20 }
  0x10   : > { %7098 = dma.hbm_to_vmem [thread:$0]  (!%p7371_p5), %s224_s16, 1024, %s226_s20, [#allocation7], %s7303_s17, %s7303_s17, %s7304_s18  }
  0x11   : > { %s240_s29 = sshll.u32 %s7306_s24, 4  ;;  %262 = sbr.rel (%p7360_p3) target bundleno = 1253 (0x4e5), region = 44  ;;  %s241_s29 = int_to_ptr.vmem [resolvable:$true] %s240_s29 }
  0x12   : > { %7101 = dma.hbm_to_vmem [thread:$0]  (!%p7371_p5), %s239_s28, 16, %s241_s29, [#allocation10]  }
  0x16   : > { %7274 = dma.done.wait (%p7356_p2), [#allocation5], 193536  }
  0x17   : > { %7276 = vsyncadd (%p7356_p2), [#allocation5], 4294773760 }
  0x18   : > { %7278 = dma.done.wait (%p7356_p2), [#allocation7], 1360  }
  0x19   : > { %7280 = vsyncadd (%p7356_p2), [#allocation7], 4294965936 }
  0x1a   : > { %7282 = dma.done.wait (%p7356_p2), [#allocation10], 16  }
  0x1b   : > { %7284 = vsyncadd (%p7356_p2), [#allocation10], 4294967280  ;;  %s308_s27 = smul.u32 9, %s5016_s25  ;;  %v7307_v0 = vmov 0   ;;  %v6352_v1 = vld [vmem:[#allocation4 + $0x78] sm:$0xff]  ;;  %v6351_v2 = vld [vmem:[#allocation4 + $0x70] sm:$0xff] }
  0x1c   : > { %321 = vst [vmem:[#allocation2] sm:$0xf] %v7307_v0  ;;  %7135 = vset.pattern.permute.xlu0 %v7307_v0  ;;  %7136 = vset.pattern.permute.xlu1 %v7307_v0  ;;  %v6368_v3 = vld [vmem:[#allocation4 + $0xf8] sm:$0xff]  ;;  %v6367_v5 = vld [vmem:[#allocation4 + $0xf0] sm:$0xff]  ;;  %v6350_v9 = vld [vmem:[#allocation4 + $0x68] sm:$0xff]  ;;  %vm559_vm1 = vcmask 1044480  }
  0x1d   : > { %p309_p6 = scmp.lt.s32.totalorder %s308_s27, 17  ;;  %322 = vst [vmem:[#allocation2 + $0x4] sm:$0xf] %v7307_v0  ;;  %7137 = vset.pattern.permute.xlu2 %v7307_v0  ;;  %523 = vmatpush.bf16.msra.mxu0 %v6352_v1  ;;  %v6366_v14 = vld [vmem:[#allocation4 + $0xe8] sm:$0xff]  ;;  %v6349_v15 = vld [vmem:[#allocation4 + $0x60] sm:$0xff]  ;;  %v6348_v20 = vld [vmem:[#allocation4 + $0x58] sm:$0xff] }
  0x1e   : > { %323 = vst [vmem:[#allocation2 + $0x2c] sm:$0xf] %v7307_v0  ;;  %6996 = vmatpush.bf16.msra.mxu1 %v6352_v1  ;;  %6997 = vmatpush.bf16.msra.mxu2 %v6352_v1  ;;  %v6365_v18 = vld [vmem:[#allocation4 + $0xe0] sm:$0xff]  ;;  %v6364_v31 = vld [vmem:[#allocation4 + $0xd8] sm:$0xff]  ;;  %v6347_v37 = vld [vmem:[#allocation4 + $0x50] sm:$0xff]  ;;  %vm1594_vm3 = vcmask 1046528  }
  0x1f   : > { %s8362_s27 = smov (!%p309_p6, %s308_s27), 17  ;;  %324 = vst [vmem:[#allocation2 + $0x30] sm:$0xf] %v7307_v0  ;;  %921 = vmatpush.bf16.msra.mxu3 %v6368_v3  ;;  %v6363_v45 = vld [vmem:[#allocation4 + $0xd0] sm:$0xff]  ;;  %v6346_v50 = vld [vmem:[#allocation4 + $0x48] sm:$0xff]  ;;  %v6345_v62 = vld [vmem:[#allocation4 + $0x40] sm:$0xff] }
  0x20   : > { %325 = vst [vmem:[#allocation3] sm:$0xf] %v7307_v0  ;;  %s5029_s30 = sshll.u32 %s8362_s27, 2  ;;  %s5030_s7 = sshll.u32 %s8362_s27, 3  ;;  %vm425_vm0 = vsmask.f32 4352 }
  0x21   : > { %326 = vst [vmem:[#allocation3 + $0x4] sm:$0xf] %v7307_v0  ;;  %s7408_s9 = scalar_lea.vmem %s8351_s0, %s5029_s30  ;;  %s7413_s11 = scalar_lea.vmem %s8357_s6, %s5030_s7  ;;  %524 = vmatpush.bf16.msra.mxu0 %v6351_v2  ;;  %v6362_v57 = vld [vmem:[#allocation4 + $0xc8] sm:$0xff]  ;;  %v6344_v3 = vld [vmem:[#allocation4 + $0x38] sm:$0xff]  ;;  %vm1132_vm2 = vsmask.f32 7424 }
  0x22   : > { %327 = vst [vmem:[#allocation3 + $0x2c] sm:$0xf] %v7307_v0  ;;  %v338_v4 = vld [vmem:[%s7408_s9] sm:$0xff]   ;;  %v340_v6 = vld [vmem:[%s7408_s9 + $0x8] sm:$0xff]   ;;  %v342_v7 = vld [vmem:[%s7408_s9 + $0x10] sm:$0xff]   ;;  %6998 = vmatpush.bf16.msra.mxu1 %v6351_v2  ;;  %6999 = vmatpush.bf16.msra.mxu2 %v6351_v2  ;;  %s7675_s8 = smov 0  }
  0x23   : > { %328 = vst [vmem:[#allocation3 + $0x30] sm:$0xf] %v7307_v0  ;;  %v344_v13 = vld [vmem:[%s7408_s9 + $0x18] sm:$0xff]   ;;  %922 = vmatpush.bf16.msra.mxu3 %v6367_v5  ;;  %v6376_v5 = vld [vmem:[#allocation4 + $0x138] sm:$0xff] }
  0x24   : > { %347 = vst [vmem:[#allocation3 + $0x8] sm:$0xff] %v338_v4   ;;  %v6360_v4 = vld [vmem:[#allocation4 + $0xb8] sm:$0xff] }
  0x25   : > { %349 = vst [vmem:[#allocation3 + $0x10] sm:$0xff] %v340_v6   ;;  %525 = vmatpush.bf16.msra.mxu0 %v6350_v9 }
  0x26   : > { %351 = vst [vmem:[#allocation3 + $0x18] sm:$0xff] %v342_v7   ;;  %7000 = vmatpush.bf16.msra.mxu1 %v6350_v9  ;;  %7001 = vmatpush.bf16.msra.mxu2 %v6350_v9  ;;  %v6361_v9 = vld [vmem:[#allocation4 + $0xc0] sm:$0xff] }
  0x27   : > { %v356_v8 = vld [vmem:[#allocation3] sm:$0x8]  ;;  %353 = vst [vmem:[#allocation3 + $0x20] sm:$0xff] %v344_v13   ;;  %923 = vmatpush.bf16.msra.mxu3 %v6366_v14  ;;  %v6343_v14 = vld [vmem:[#allocation4 + $0x30] sm:$0xff] }
  0x28   : > { %v7418_v10 = vld [vmem:[#allocation3 + $0x4] sm:$0xf]  ;;  %v410_v11 = vunpack.c.l.b16 %v356_v8 }
  0x29   : > { %v411_v12 = vunpack.c.l.b16 %v7418_v10  ;;  %526 = vmatpush.bf16.msra.mxu0 %v6349_v15  ;;  %v6915_v26 = vld [vmem:[#allocation3 + $0x4] sm:$0x8] }
  0x2a   : > { %7002 = vmatpush.bf16.msra.mxu1 %v6349_v15  ;;  %7003 = vmatpush.bf16.msra.mxu2 %v6349_v15  ;;  %v6404_v15 = vld [vmem:[#allocation4 + $0x1f8] sm:$0xff] }
  0x2b   : > { %v7424_v16 = vpack.c.b16 %v411_v12, %v410_v11  ;;  %v7426_v17 = vld [vmem:[#allocation3 + $0x8] sm:$0xff]   ;;  %924 = vmatpush.bf16.msra.mxu3 %v6365_v18 }
  0x2c   : > { %v7428_v19 = vld [vmem:[#allocation3 + $0x10] sm:$0xff]   ;;  %v435_v24 = vshrl.u32 %v7426_v17, 16  ;;  %v438_v27 = vshll.u32 %v7426_v17, 16  ;;  %v7053_v32 = vld [vmem:[#allocation3 + $0x4] sm:$0xf0]  }
  0x2d   : > { %v7430_v21 = vld [vmem:[#allocation3 + $0x18] sm:$0xff]   ;;  %v427_v22 = vshrl.u32 %v7424_v16, 16  ;;  %v430_v23 = vshll.u32 %v7424_v16, 16  ;;  %v444_v28 = vshrl.u32 %v7428_v19, 16  ;;  %v447_v29 = vshll.u32 %v7428_v19, 16  ;;  %v7055_v36 = vld [vmem:[#allocation3 + $0xc] sm:$0xff]   ;;  %527 = vmatpush.bf16.msra.mxu0 %v6348_v20 }
  0x2e   : > { %v7435_v25 = vld [vmem:[#allocation3 + $0x20] sm:$0xff]   ;;  %v453_v33 = vshrl.u32 %v7430_v21, 16  ;;  %v456_v34 = vshll.u32 %v7430_v21, 16  ;;  %7004 = vmatpush.bf16.msra.mxu1 %v6348_v20  ;;  %v6916_v38 = vor.u32 %v7053_v32, %v6915_v26  ;;  %7005 = vmatpush.bf16.msra.mxu2 %v6348_v20  ;;  %v437_v41 = vrot.slane %v435_v24, 3 }
  0x2f   : > { %v418_v30 = vunpack.c.l.b16 %v7435_v25  ;;  %v419_v35 = vunpack.c.h.b16 %v7435_v25  ;;  %v429_v39 = vrot.slane %v427_v22, 3  ;;  %v432_v40 = vrot.slane %v430_v23, 4  ;;  %925 = vmatpush.bf16.msra.mxu3 %v6364_v31  ;;  %v6359_v18 = vld [vmem:[#allocation4 + $0xb0] sm:$0xff]  ;;  %v7057_v23 = vld [vmem:[#allocation3 + $0x14] sm:$0xff]   ;;  %v6342_v26 = vld [vmem:[#allocation4 + $0x28] sm:$0xff] }
  0x30   : > { %v440_v42 = vrot.slane %v438_v27, 4  ;;  %v446_v43 = vrot.slane %v444_v28, 3  ;;  %v449_v44 = vrot.slane %v447_v29, 4  ;;  %v455_v46 = vrot.slane %v453_v33, 3  ;;  %v6375_v20 = vld [vmem:[#allocation4 + $0x130] sm:$0xff]  ;;  %v6358_v32 = vld [vmem:[#allocation4 + $0xa8] sm:$0xff] }
  0x31   : > { %v458_v47 = vrot.slane %v456_v34, 4  ;;  %v833_v48 = vshrl.u32 %v7055_v36, 16  ;;  %v836_v49 = vshll.u32 %v7055_v36, 16  ;;  %528 = vmatpush.bf16.msra.mxu0 %v6347_v37  ;;  %v462_v51 = vshrl.u32 %v7435_v25, 16  ;;  %v6403_v31 = vld [vmem:[#allocation4 + $0x1f0] sm:$0xff]  ;;  %v6374_v36 = vld [vmem:[#allocation4 + $0x128] sm:$0xff] }
  0x32   : > { %7006 = vmatpush.bf16.msra.mxu1 %v6347_v37  ;;  %v465_v52 = vshll.u32 %v7435_v25, 16  ;;  %v825_v53 = vshrl.u32 %v6916_v38, 16  ;;  %v828_v54 = vshll.u32 %v6916_v38, 16  ;;  %7007 = vmatpush.bf16.msra.mxu2 %v6347_v37  ;;  %v433_v55 = vor.u32 %v432_v40, %v429_v39  ;;  %v6341_v39 = vld [vmem:[#allocation4 + $0x20] sm:$0xff]  ;;  %v329_v25 = vld [vmem:[%s8352_s1] sm:$0xff] }
  0x33   : > { %v7458_v56 = vor.u32 %v440_v42, %v437_v41  ;;  %926 = vmatpush.bf16.msra.mxu3 %v6363_v45  ;;  %v7460_v58 = vor.u32 %v449_v44, %v446_v43  ;;  %v7462_v59 = vor.u32 %v458_v47, %v455_v46  ;;  %v835_v60 = vrot.slane %v833_v48, 3  ;;  %v6357_v40 = vld [vmem:[#allocation4 + $0xa0] sm:$0xff]  ;;  %v6340_v44 = vld [vmem:[#allocation4 + $0x18] sm:$0xff]  ;;  %1723 = vperm.xlu0 %7135, %v329_v25  }
  0x34   : > { %v838_v61 = vrot.slane %v836_v49, 4  ;;  %v464_v63 = vrot.slane %v462_v51, 3  ;;  %v467_v0 = vrot.slane %v465_v52, 4  ;;  %v827_v1 = vrot.slane %v825_v53, 3  ;;  %v6373_v41 = vld [vmem:[#allocation4 + $0x120] sm:$0xff]  ;;  %v6356_v45 = vld [vmem:[#allocation4 + $0x98] sm:$0xff] }
  0x35   : > { %529 = vmatpush.bf16.msra.mxu0 %v6346_v50  ;;  %v830_v2 = vrot.slane %v828_v54, 4  ;;  %v442_v6 = vsel %vm425_vm0, %v433_v55, %v7458_v56  ;;  %v460_v7 = vsel %vm425_vm0, %v7460_v58, %v7462_v59  ;;  %v842_v37 = vshrl.u32 %v7057_v23, 16  ;;  %v6372_v46 = vld [vmem:[#allocation4 + $0x118] sm:$0xff]  ;;  %v6355_v51 = vld [vmem:[#allocation4 + $0x90] sm:$0xff]  ;;  %v6402_v53 = vld [vmem:[#allocation4 + $0x1e8] sm:$0xff] }
  0x36   : > { %7008 = vmatpush.bf16.msra.mxu1 %v6346_v50  ;;  %7009 = vmatpush.bf16.msra.mxu2 %v6346_v50  ;;  %v468_v8 = vor.u32 %v467_v0, %v464_v63  ;;  %v839_v13 = vor.u32 %v838_v61, %v835_v60  ;;  %v845_v38 = vshll.u32 %v7057_v23, 16  ;;  %v451_v47 = vsel %vm425_vm0, %v7458_v56, %v7460_v58  ;;  %v6339_v50 = vld [vmem:[#allocation4 + $0x10] sm:$0xff]  ;;  %v7058_v55 = vld [vmem:[#allocation3 + $0x1c] sm:$0xff]   ;;  %v6353_v0 = vld [vmem:[#allocation4 + $0x80] sm:$0xff] }
  0x37   : > { %927 = vmatpush.bf16.msra.mxu3 %v6362_v57  ;;  %v831_v11 = vor.u32 %v830_v2, %v827_v1  ;;  %v844_v42 = vrot.slane %v842_v37, 3  ;;  %v6371_v52 = vld [vmem:[#allocation4 + $0x110] sm:$0xff]  ;;  %v6338_v56 = vld [vmem:[#allocation4 + $0x8] sm:$0xff]  ;;  %v851_v60 = vshrl.u32 %v7058_v55, 16  ;;  %v854_v61 = vshll.u32 %v7058_v55, 16  ;;  %v6369_v1 = vld [vmem:[#allocation4 + $0x100] sm:$0xff] }
  0x38   : > { %v847_v43 = vrot.slane %v845_v38, 4  ;;  %v469_v48 = vsel %vm425_vm0, %v7462_v59, %v468_v8  ;;  %v6354_v57 = vld [vmem:[#allocation4 + $0x88] sm:$0xff]  ;;  %v346_v59 = vld [vmem:[%s7408_s9 + $0x20] sm:$0xf]  ;;  %v6579_v63 = vunpack.c.l.b16 %v7426_v17  ;;  %v6389_v38 = vld [vmem:[#allocation4 + $0x1a0] sm:$0xff] }
  0x39   : > { %530 = vmatpush.bf16.msra.mxu0 %v6345_v62  ;;  %v840_v22 = vsel %vm425_vm0, %v831_v11, %v839_v13  ;;  %v6370_v58 = vld [vmem:[#allocation4 + $0x108] sm:$0xff]  ;;  %355 = vst [vmem:[#allocation3 + $0x28] sm:$0xf] %v346_v59  ;;  %v6392_v2 = vld [vmem:[#allocation4 + $0x1b8] sm:$0xff]  ;;  %v565_v59 = vrot.slane %v7430_v21, 3 }
  0x3a   : > { %7010 = vmatpush.bf16.msra.mxu1 %v6345_v62  ;;  %7011 = vmatpush.bf16.msra.mxu2 %v6345_v62  ;;  %v7475_v49 = vor.u32 %v847_v43, %v844_v42  ;;  %v6337_v62 = vld [vmem:[#allocation4] sm:$0xff]  ;;  %v7485_v11 = vld [vmem:[#allocation3 + $0x20] sm:$0xff]   ;;  %v6400_v37 = vld [vmem:[#allocation4 + $0x1d8] sm:$0xff]  ;;  %v563_v43 = vrot.slane %v7428_v19, 3 }
  0x3b   : > { %928 = vmatpush.bf16.msra.mxu3 %v6361_v9  ;;  %v672_v9 = vpack.c.b16 %v6579_v63, %v411_v12  ;;  %v6411_v12 = vld [vmem:[#allocation4 + $0x230] sm:$0xff]  ;;  %v6390_v23 = vld [vmem:[#allocation4 + $0x1a8] sm:$0xff]  ;;  %v6409_v42 = vld [vmem:[#allocation4 + $0x220] sm:$0xff] }
  0x3c   : > { %531 = vmatmul.bf16.vlgmr.msra.gmra.mxu0 %v442_v6  ;;  %v849_v54 = vsel %vm425_vm0, %v839_v13, %v7475_v49  ;;  %v6412_v6 = vld [vmem:[#allocation4 + $0x238] sm:$0xff]  ;;  %v566_v63 = vsel %vm559_vm1, %v563_v43, %v565_v59 }
  0x3d   : > { %1038 = vmatpush.bf16.msrb.mxu0 %v6376_v5  ;;  %541 = vmatmul.bf16.vlgmr.msra.gmra.mxu1 %v460_v7  ;;  %v561_v5 = vrot.slane %v7426_v17, 3  ;;  %v853_v7 = vrot.slane %v851_v60, 3  ;;  %v6912_v60 = vld [vmem:[#allocation3 + $0x14] sm:$0xff]  }
  0x3e   : > { %622 = vmatpush.bf16.msrb.mxu1 %v6344_v3  ;;  %730 = vmatpush.bf16.msrb.mxu2 %v6360_v4  ;;  %v6384_v3 = vld [vmem:[#allocation4 + $0x178] sm:$0xff]  ;;  %v560_v4 = vrot.slane %v7424_v16, 3 }
  0x3f   : > { %551 = vmatmul.bf16.vlgmr.msra.gmra.mxu2 %v468_v8  ;;  %1531 = vmatpush.bf16.msrb.mxu3 %v6404_v15  ;;  %v856_v8 = vrot.slane %v854_v61, 4  ;;  %v6383_v15 = vld [vmem:[#allocation4 + $0x170] sm:$0xff]  ;;  %v1387_v61 = vld [vmem:[#allocation3 + $0xc] sm:$0xff]  }
  0x40   : > { %929 = vmatmul.bf16.vlgmr.msra.gmra.mxu3 %v840_v22  ;;  %v7487_v13 = vld [vmem:[#allocation3 + $0x28] sm:$0xff]   ;;  %v562_v16 = vsel %vm559_vm1, %v560_v4, %v561_v5  ;;  %v6401_v22 = vld [vmem:[#allocation4 + $0x1e0] sm:$0xff] }
  0x41   : > { %1039 = vmatpush.bf16.msrb.mxu0 %v6375_v20  ;;  %v6604_v20 = vunpack.c.h.b16 %v7485_v11  ;;  %v7492_v10 = vunpack.c.l.b16 %v7487_v13  ;;  %v6397_v4 = vld [vmem:[#allocation4 + $0x1c0] sm:$0xff] }
  0x42   : > { %623 = vmatpush.bf16.msrb.mxu1 %v6343_v14  ;;  %731 = vmatpush.bf16.msrb.mxu2 %v6359_v18  ;;  %v6391_v14 = vld [vmem:[#allocation4 + $0x1b0] sm:$0xff]  ;;  %v857_v18 = vor.u32 %v856_v8, %v853_v7  ;;  %v7509_v8 = vld [vmem:[#allocation3 + $0x14] sm:$0xff] }
  0x43   : > { %1532 = vmatpush.bf16.msrb.mxu3 %v6403_v31 }
  0x44   : > { %v858_v31 = vsel %vm425_vm0, %v7475_v49, %v857_v18  ;;  %v564_v49 = vsel %vm559_vm1, %v561_v5, %v563_v43  ;;  %v7143_v43 = vld [vmem:[#allocation3 + $0xc] sm:$0xe] }
  0x45   : > { %1040 = vmatpush.bf16.msrb.mxu0 %v6374_v36  ;;  %v6410_v36 = vld [vmem:[#allocation4 + $0x228] sm:$0xff] }
  0x46   : > { %624 = vmatpush.bf16.msrb.mxu1 %v6342_v26  ;;  %732 = vmatpush.bf16.msrb.mxu2 %v6358_v32  ;;  %v6382_v26 = vld [vmem:[#allocation4 + $0x168] sm:$0xff]  ;;  %v823_v32 = vpack.c.b16 %v7492_v10, %v6604_v20 }
  0x47   : > { %1533 = vmatpush.bf16.msrb.mxu3 %v6402_v53  ;;  %v6399_v53 = vld [vmem:[#allocation4 + $0x1d0] sm:$0xff] }
  0x49   : > { %1041 = vmatpush.bf16.msrb.mxu0 %v6373_v41  ;;  %v863_v41 = vshll.u32 %v823_v32, 16 }
  0x4a   : > { %625 = vmatpush.bf16.msrb.mxu1 %v6341_v39  ;;  %733 = vmatpush.bf16.msrb.mxu2 %v6357_v40  ;;  %v6381_v39 = vld [vmem:[#allocation4 + $0x160] sm:$0xff]  ;;  %v860_v40 = vshrl.u32 %v823_v32, 16 }
  0x4b   : > { %1534 = vmatpush.bf16.msrb.mxu3 %v6401_v22 }
  0x4c   : > { %536 = vmatmul.bf16.gmra.mxu0 %v451_v47  ;;  %v6380_v47 = vld [vmem:[#allocation4 + $0x158] sm:$0xff] }
  0x4d   : > { %1042 = vmatpush.bf16.msrb.mxu0 %v6372_v46  ;;  %546 = vmatmul.bf16.gmra.mxu1 %v469_v48  ;;  %v865_v46 = vrot.slane %v863_v41, 4  ;;  %v6911_v48 = vld [vmem:[#allocation3 + $0xc] sm:$0xff]  }
  0x4e   : > { %626 = vmatpush.bf16.msrb.mxu1 %v6340_v44  ;;  %734 = vmatpush.bf16.msrb.mxu2 %v6356_v45  ;;  %v6388_v44 = vld [vmem:[#allocation4 + $0x198] sm:$0xff]  ;;  %v862_v45 = vrot.slane %v860_v40, 3  ;;  %v984_v40 = vpack.c.b16 %v7492_v10, %v7492_v10  ;;  %v1143_v10 = vrot.slane %v447_v29, 1 }
  0x4f   : > { %1535 = vmatpush.bf16.msrb.mxu3 %v6400_v37  ;;  %v7518_v37 = vld [vmem:[#allocation3 + $0x1c] sm:$0xff]  ;;  %v5269_v29 = vld [vmem:[#allocation3 + $0x2c] sm:$0xf] }
  0x50   : > { %934 = vmatmul.bf16.gmra.mxu3 %v849_v54  ;;  %v6379_v54 = vld [vmem:[#allocation4 + $0x150] sm:$0xff] }
  0x51   : > { %1043 = vmatpush.bf16.msrb.mxu0 %v6371_v52  ;;  %v6408_v52 = vld [vmem:[#allocation4 + $0x218] sm:$0xff] }
  0x52   : > { %627 = vmatpush.bf16.msrb.mxu1 %v6339_v50  ;;  %735 = vmatpush.bf16.msrb.mxu2 %v6355_v51  ;;  %v866_v50 = vor.u32 %v865_v46, %v862_v45  ;;  %v6387_v51 = vld [vmem:[#allocation4 + $0x190] sm:$0xff]  ;;  %v1138_v45 = vrot.slane %v438_v27, 1  ;;  %v1459_v27 = vshrl.u32 %v7518_v37, 16 }
  0x53   : > { %1536 = vmatpush.bf16.msrb.mxu3 %v6399_v53 }
  0x54   : > { %v867_v55 = vsel %vm425_vm0, %v857_v18, %v866_v50 }
  0x55   : > { %1044 = vmatpush.bf16.msrb.mxu0 %v6370_v58  ;;  %v6398_v58 = vld [vmem:[#allocation4 + $0x1c8] sm:$0xff] }
  0x56   : > { %628 = vmatpush.bf16.msrb.mxu1 %v6338_v56  ;;  %736 = vmatpush.bf16.msrb.mxu2 %v6354_v57  ;;  %v6386_v56 = vld [vmem:[#allocation4 + $0x188] sm:$0xff]  ;;  %v6407_v57 = vld [vmem:[#allocation4 + $0x210] sm:$0xff] }
  0x57   : > { %1537 = vmatpush.bf16.msrb.mxu3 %v6398_v58  ;;  %v331_v58 = vld [vmem:[%s8352_s1 + $0x10] sm:$0xff] }
  0x58   : > { %1733 = vperm.xlu1 %7136, %v331_v58  }
  0x59   : > { %1045 = vmatpush.bf16.msrb.mxu0 %v6369_v1  ;;  %v6378_v1 = vld [vmem:[#allocation4 + $0x148] sm:$0xff] }
  0x5a   : > { %629 = vmatpush.bf16.msrb.mxu1 %v6337_v62  ;;  %737 = vmatpush.bf16.msrb.mxu2 %v6353_v0  ;;  %v7142_v62 = vld [vmem:[#allocation3 + $0xc] sm:$0xf0]  ;;  %v365_v0 = vld [vmem:[#allocation3 + $0x24] sm:$0x7] }
  0x5b   : > { %v557_v5 = vunpack.c.l.b16 %v365_v0  ;;  %1538 = vmatpush.bf16.msrb.mxu3 %v6397_v4  ;;  %v7144_v46 = vor.u32 %v7143_v43, %v7142_v62  ;;  %v6936_v0 = vld [vmem:[#allocation3 + $0x14] sm:$0xff]   ;;  %v1161_v43 = vshrl.u32 %v7485_v11, 16 }
  0x5c   : > { %1046 = vmatmul.bf16.vlgmr.msrb.gmra.mxu0 %v7426_v17  ;;  %v330_v17 = vld [vmem:[%s8352_s1 + $0x8] sm:$0xff] }
  0x5d   : > { %1657 = vmatpush.bf16.msra.mxu0 %v6412_v6  ;;  %738 = vmatmul.bf16.vlgmr.msrb.gmra.mxu2 %v672_v9  ;;  %v6377_v6 = vld [vmem:[#allocation4 + $0x140] sm:$0xff]  ;;  %v558_v7 = vpack.c.b16 %v557_v5, %v418_v30  ;;  %v1442_v9 = vshll.u32 %v1387_v61, 16 }
  0x5e   : > { %1345 = vmatpush.bf16.msra.mxu2 %v6392_v2  ;;  %1225 = vmatpush.bf16.msra.mxu1 %v6384_v3  ;;  %v6385_v2 = vld [vmem:[#allocation4 + $0x180] sm:$0xff]  ;;  %v6406_v3 = vld [vmem:[#allocation4 + $0x208] sm:$0xff] }
  0x5f   : > { %630 = vmatmul.bf16.vlgmr.msrb.gmra.mxu1 %v562_v16  ;;  %v6588_v16 = vunpack.c.h.b16 %v7430_v21  ;;  %v1444_v18 = vrot.slane %v1442_v9, 1  ;;  %1728 = vperm.xlu0 %7135, %v330_v17   ;;  %v1157_v9 = vshll.u32 %v7485_v11, 16 }
  0x60   : > { %939 = vmatmul.bf16.gmra.mxu3 %v858_v31 }
  0x61   : > { %1658 = vmatpush.bf16.msra.mxu0 %v6411_v12  ;;  %v1447_v12 = vshll.u32 %v7509_v8, 16  ;;  %v675_v22 = vpack.c.b16 %v418_v30, %v6588_v16  ;;  %v1455_v30 = vshll.u32 %v7518_v37, 16 }
  0x62   : > { %1346 = vmatpush.bf16.msra.mxu2 %v6391_v14  ;;  %1226 = vmatpush.bf16.msra.mxu1 %v6383_v15  ;;  %v567_v14 = vrot.slane %v558_v7, 3  ;;  %v1440_v15 = vshrl.u32 %v1387_v61, 16  ;;  %v1598_v61 = vrot.slane %v7518_v37, 1 }
  0x63   : > { %v1449_v32 = vrot.slane %v1447_v12, 1  ;;  %v6937_v12 = vld [vmem:[#allocation3 + $0x1c] sm:$0xff]  }
  0x64   : > { %v1445_v31 = vor.u32 %v1444_v18, %v1440_v15  ;;  %v1159_v15 = vrot.slane %v1157_v9, 1 }
  0x65   : > { %1659 = vmatpush.bf16.msra.mxu0 %v6410_v36 }
  0x66   : > { %1347 = vmatpush.bf16.msra.mxu2 %v6390_v23  ;;  %1227 = vmatpush.bf16.msra.mxu1 %v6382_v26  ;;  %v6405_v23 = vld [vmem:[#allocation4 + $0x200] sm:$0xff]  ;;  %v568_v26 = vsel %vm559_vm1, %v565_v59, %v567_v14  ;;  %v1450_v36 = vsel %vm1132_vm2, %v1445_v31, %v1449_v32  ;;  %v1147_v59 = vor.u32 %v1143_v10, %v444_v28  ;;  %v332_v28 = vld [vmem:[%s8352_s1 + $0x18] sm:$0xff] }
  0x67   : > { %1738 = vperm.xlu1 %7136, %v332_v28   ;;  %v1163_v25 = vor.u32 %v1161_v43, %v1159_v15 }
  0x69   : > { %1660 = vmatpush.bf16.msra.mxu0 %v6409_v42  ;;  %v1457_v42 = vrot.slane %v1455_v30, 1 }
  0x6a   : > { %1348 = vmatpush.bf16.msra.mxu2 %v6389_v38  ;;  %1228 = vmatpush.bf16.msra.mxu1 %v6381_v39  ;;  %v1451_v38 = vshrl.u32 %v7509_v8, 16  ;;  %v676_v39 = vpack.c.b16 %v419_v35, %v419_v35  ;;  %v1139_v35 = vor.u32 %v1138_v45, %v435_v24  ;;  %v336_v45 = vld [vmem:[%s8352_s1 + $0x38] sm:$0xff] }
  0x6c   : > { %1051 = vmatmul.bf16.gmra.mxu0 %v7428_v19  ;;  %v1453_v41 = vor.u32 %v1451_v38, %v1449_v32 }
  0x6d   : > { %743 = vmatmul.bf16.gmra.mxu2 %v6911_v48  ;;  %1661 = vmatpush.bf16.msra.mxu0 %v6408_v52  ;;  %v1595_v48 = vrot.slane %v7144_v46, 1  ;;  %v1144_v52 = vsel %vm1132_vm2, %v1139_v35, %v1143_v10  ;;  %v335_v46 = vld [vmem:[%s8352_s1 + $0x30] sm:$0xff] }
  0x6e   : > { %1349 = vmatpush.bf16.msra.mxu2 %v6388_v44  ;;  %1229 = vmatpush.bf16.msra.mxu1 %v6380_v47  ;;  %v1458_v44 = vsel %vm1132_vm2, %v1453_v41, %v1457_v42  ;;  %v7530_v47 = vld [vmem:[#allocation3 + $0x24] sm:$0xff] }
  0x6f   : > { %635 = vmatmul.bf16.gmra.mxu1 %v564_v49  ;;  %v1596_v49 = vrot.slane %v7509_v8, 1  ;;  %v1467_v62 = vshrl.u32 %v7530_v47, 16  ;;  %v1600_v18 = vrot.slane %v7530_v47, 1  ;;  %1758 = vperm.xlu1 %7136, %v336_v45  }
  0x70   : > { %944 = vmatmul.bf16.gmra.mxu3 %v867_v55  ;;  %1753 = vperm.xlu0 %7135, %v335_v46  }
  0x71   : > { %1662 = vmatpush.bf16.msra.mxu0 %v6407_v57  ;;  %v1597_v53 = vsel %vm1594_vm3, %v1595_v48, %v1596_v49  ;;  %v1599_v4 = vsel %vm1594_vm3, %v1596_v49, %v1598_v61  ;;  %v1601_v38 = vsel %vm1594_vm3, %v1598_v61, %v1600_v18 }
  0x72   : > { %1350 = vmatpush.bf16.msra.mxu2 %v6387_v51  ;;  %1230 = vmatpush.bf16.msra.mxu1 %v6379_v54  ;;  %v6934_v51 = vld [vmem:[#allocation3 + $0xc] sm:$0xff]   ;;  %v1461_v54 = vor.u32 %v1459_v27, %v1457_v42 }
  0x75   : > { %1663 = vmatpush.bf16.msra.mxu0 %v6406_v3 }
  0x76   : > { %1351 = vmatpush.bf16.msra.mxu2 %v6386_v56  ;;  %1231 = vmatpush.bf16.msra.mxu1 %v6378_v1  ;;  %v6396_v56 = vld [vmem:[#allocation3 + $0x2c] sm:$0x10] }
  0x77   : > { %v7548_v57 = vor.u32 %v6396_v56, %v5269_v29  ;;  %v1286_v56 = vunpack.c.h.b16 %v7487_v13  ;;  %v337_v13 = vld [vmem:[%s8352_s1 + $0x40] sm:$0xff] }
  0x79   : > { %1664 = vmatpush.bf16.msra.mxu0 %v6405_v23  ;;  %v1089_v23 = vld [vmem:[#allocation3 + $0x2c] sm:$0x1]  ;;  %v1475_v31 = vshrl.u32 %v7548_v57, 16  ;;  %v1602_v10 = vrot.slane %v7548_v57, 1 }
  0x7a   : > { %1352 = vmatpush.bf16.msra.mxu2 %v6385_v2  ;;  %1232 = vmatpush.bf16.msra.mxu1 %v6377_v6 }
  0x7c   : > { %1056 = vmatmul.bf16.gmra.mxu0 %v7430_v21 }
  0x7d   : > { %748 = vmatmul.bf16.gmra.mxu2 %v6912_v60  ;;  %v1151_v60 = vrot.slane %v456_v34, 1 }
  0x7f   : > { %640 = vmatmul.bf16.gmra.mxu1 %v566_v63  ;;  %v1471_v63 = vshll.u32 %v7548_v57, 16  ;;  %v1152_v3 = vsel %vm1132_vm2, %v1147_v59, %v1151_v60  ;;  %v334_v57 = vld [vmem:[%s8352_s1 + $0x28] sm:$0xff] }
  0x80   : > { %949 = vmatmul.bf16.gmra.mxu3 %v866_v50  ;;  %v1463_v50 = vshll.u32 %v7530_v47, 16 }
  0x81   : > { %v1473_v19 = vrot.slane %v1471_v63, 1  ;;  %v1291_v63 = vpack.c.b16 %v1286_v56, %v1286_v56 }
  0x82   : > { %v1465_v55 = vrot.slane %v1463_v50, 1 }
  0x84   : > { %v1466_v24 = vsel %vm1132_vm2, %v1461_v54, %v1465_v55  ;;  %v1469_v5 = vor.u32 %v1467_v62, %v1465_v55 }
  0x86   : > { %v1474_v34 = vsel %vm1132_vm2, %v1469_v5, %v1473_v19 }
  0x8c   : > { %1061 = vmatmul.bf16.gmra.mxu0 %v7485_v11 }
  0x8d   : > { %753 = vmatmul.bf16.gmra.mxu2 %v675_v22  ;;  %v1088_v22 = vld [vmem:[#allocation3 + $0x28] sm:$0xf] }
  0x8e   : > { %v1125_v30 = vunpack.c.l.b16 %v1088_v22 }
  0x8f   : > { %645 = vmatmul.bf16.gmra.mxu1 %v568_v26 }
  0x90   : > { %1539 = vmatmul.bf16.vlgmr.msrb.gmra.mxu3 %v1450_v36  ;;  %v1290_v48 = vpack.c.b16 %v1125_v30, %v6604_v20 }
  0x9c   : > { %1066 = vmatmul.bf16.gmra.mxu0 %v984_v40 }
  0x9d   : > { %758 = vmatmul.bf16.gmra.mxu2 %v676_v39  ;;  %v1126_v39 = vunpack.c.l.b16 %v1089_v23 }
  0x9f   : > { %650 = vmatmul.bf16.gmra.mxu1 %v567_v14  ;;  %v1155_v14 = vor.u32 %v1151_v60, %v453_v33  ;;  %v1477_v33 = vor.u32 %v1475_v31, %v1473_v19  ;;  %v1131_v40 = vpack.c.b16 %v1126_v39, %v1125_v30 }
  0xa0   : > { %1544 = vmatmul.bf16.gmra.mxu3 %v1458_v44 }
  0xa1   : > { %v1160_v37 = vsel %vm1132_vm2, %v1155_v14, %v1159_v15  ;;  %v1165_v44 = vshll.u32 %v1131_v40, 16  ;;  %v1169_v60 = vshrl.u32 %v1131_v40, 16 }
  0xa3   : > { %v1167_v35 = vrot.slane %v1165_v44, 1 }
  0xa5   : > { %v1168_v50 = vsel %vm1132_vm2, %v1163_v25, %v1167_v35 }
  0xac   : > { %1665 = vmatmul.bf16.vlgmr.msra.gmra.mxu0 %v1597_v53  ;;  %v333_v53 = vld [vmem:[%s8352_s1 + $0x20] sm:$0xff] }
  0xad   : > { %1353 = vmatmul.bf16.vlgmr.msra.gmra.mxu2 %v6934_v51  ;;  %v1603_v51 = vsel %vm1594_vm3, %v1600_v18, %v1602_v10  ;;  %1743 = vperm.xlu2 %7137, %v333_v53  }
  0xaf   : > { %1233 = vmatmul.bf16.vlgmr.msra.gmra.mxu1 %v1144_v52 }
  0xb0   : > { %1549 = vmatmul.bf16.gmra.mxu3 %v1466_v24 }
  0xb5   : > { %1748 = vperm.xlu2 %7137, %v334_v57  }
  0xb9   : > { %v532_v1 = vpop.f32.mrf.mxu0 }
  0xba   : > { %v7560_v2 = vpop.f32.mrf.mxu1 }
  0xbc   : > { %1670 = vmatmul.bf16.gmra.mxu0 %v1599_v4 }
  0xbd   : > { %1358 = vmatmul.bf16.gmra.mxu2 %v6936_v0  ;;  %1763 = vperm.xlu2 %7137, %v337_v13  }
  0xbf   : > { %1238 = vmatmul.bf16.gmra.mxu1 %v1152_v3 }
  0xc0   : > { %1554 = vmatmul.bf16.gmra.mxu3 %v1474_v34 }
  0xc1   : > { %v534_v7 = vpop.f32.mrf.mxu0 }
  0xc2   : > { %v7568_v6 = vpop.f32.mrf.mxu2  ;;  %v7570_v8 = vpop.f32.mrf.mxu1 }
  0xc3   : > { %v930_v16 = vpop.f32.mrf.mxu3 }
  0xc9   : > { %v537_v32 = vpop.f32.mrf.mxu0 }
  0xca   : > { %v554_v26 = vpop.f32.mrf.mxu2  ;;  %v7577_v36 = vpop.f32.mrf.mxu1 }
  0xcb   : > { %v932_v21 = vpop.f32.mrf.mxu3 }
  0xcc   : > { %1675 = vmatmul.bf16.gmra.mxu0 %v1601_v38 }
  0xcd   : > { %1363 = vmatmul.bf16.gmra.mxu2 %v6937_v12 }
  0xcf   : > { %1243 = vmatmul.bf16.gmra.mxu1 %v1160_v37 }
  0xd0   : > { %1559 = vmatmul.bf16.gmra.mxu3 %v1477_v33 }
  0xd1   : > { %v539_v41 = vpop.f32.mrf.mxu0 }
  0xd2   : > { %v7581_v42 = vpop.f32.mrf.mxu1 }
  0xd3   : > { %v935_v47 = vpop.f32.mrf.mxu3 }
  0xd9   : > { %v1047_v27 = vpop.f32.mrf.mxu0 }
  0xdb   : > { %v937_v54 = vpop.f32.mrf.mxu3 }
  0xdc   : > { %v631_v49 = vpop.f32.mrf.mxu1  ;;  %1680 = vmatmul.bf16.gmra.mxu0 %v1603_v51 }
  0xdd   : > { %v632_v52 = vadd.f32 %v631_v49, %v532_v1  ;;  %1368 = vmatmul.bf16.gmra.mxu2 %v1290_v48  ;;  %v1171_v1 = vor.u32 %v1169_v60, %v1167_v35 }
  0xdf   : > { %1248 = vmatmul.bf16.gmra.mxu1 %v1168_v50 }
  0xe0   : > { %v739_v55 = vpop.f32.mrf.mxu2 }
  0xe1   : > { %v763_v17 = vadd.f32 %v739_v55, %v632_v52  ;;  %v1049_v24 = vpop.f32.mrf.mxu0 }
  0xe3   : > { %v954_v11 = vadd.f32 %v930_v16, %v763_v17  ;;  %v940_v59 = vpop.f32.mrf.mxu3 }
  0xe4   : > { %v633_v20 = vpop.f32.mrf.mxu1 }
  0xe5   : > { %v634_v29 = vadd.f32 %v633_v20, %v534_v7  ;;  %v7602_v58 = vadd.f32 %v1047_v27, %v954_v11 }
  0xe8   : > { %v741_v61 = vpop.f32.mrf.mxu2 }
  0xe9   : > { %v764_v62 = vadd.f32 %v741_v61, %v634_v29  ;;  %v1052_v4 = vpop.f32.mrf.mxu0 }
  0xeb   : > { %v955_v0 = vadd.f32 %v932_v21, %v764_v62  ;;  %v942_v28 = vpop.f32.mrf.mxu3 }
  0xec   : > { %v636_v3 = vpop.f32.mrf.mxu1  ;;  %1685 = vmatmul.bf16.gmra.mxu0 %v1602_v10 }
  0xed   : > { %v637_v5 = vadd.f32 %v636_v3, %v537_v32  ;;  %1373 = vmatmul.bf16.gmra.mxu2 %v1291_v63  ;;  %v7607_v19 = vadd.f32 %v1049_v24, %v955_v0 }
  0xef   : > { %1253 = vmatmul.bf16.gmra.mxu1 %v1171_v1 }
  0xf0   : > { %v744_v34 = vpop.f32.mrf.mxu2 }
  0xf1   : > { %v765_v7 = vadd.f32 %v744_v34, %v637_v5  ;;  %v1054_v14 = vpop.f32.mrf.mxu0 }
  0xf3   : > { %v956_v9 = vadd.f32 %v935_v47, %v765_v7  ;;  %v945_v12 = vpop.f32.mrf.mxu3 }
  0xf4   : > { %v638_v16 = vpop.f32.mrf.mxu1 }
  0xf5   : > { %v639_v15 = vadd.f32 %v638_v16, %v539_v41  ;;  %v7609_v18 = vadd.f32 %v1052_v4, %v956_v9 }
  0xf8   : > { %v746_v22 = vpop.f32.mrf.mxu2 }
  0xf9   : > { %v766_v23 = vadd.f32 %v746_v22, %v639_v15  ;;  %v1057_v32 = vpop.f32.mrf.mxu0  ;;  %v7632_v22 = vld [vmem:[#allocation6] ss:$0 sm:$0xff] }
  0xfb   : > { %v957_v26 = vadd.f32 %v937_v54, %v766_v23  ;;  %v947_v30 = vpop.f32.mrf.mxu3 }
  0xfc   : > { %v641_v31 = vpop.f32.mrf.mxu1 }
  0xfd   : > { %v642_v37 = vadd.f32 %v641_v31, %v7560_v2  ;;  %v7612_v38 = vadd.f32 %v1054_v14, %v957_v26  ;;  %v7630_v14 = vpop.permute.xlu0 %1723 }
 0x100   : > { %v749_v39 = vpop.f32.mrf.mxu2 }
 0x101   : > { %v767_v21 = vadd.f32 %v749_v39, %v642_v37  ;;  %v1059_v43 = vpop.f32.mrf.mxu0 }
 0x103   : > { %v958_v33 = vadd.f32 %v940_v59, %v767_v21  ;;  %v950_v45 = vpop.f32.mrf.mxu3 }
 0x104   : > { %v643_v40 = vpop.f32.mrf.mxu1 }
 0x105   : > { %v644_v41 = vadd.f32 %v643_v40, %v7570_v8  ;;  %v7615_v44 = vadd.f32 %v1057_v32, %v958_v33 }
 0x108   : > { %v751_v46 = vpop.f32.mrf.mxu2 }
 0x109   : > { %v768_v47 = vadd.f32 %v751_v46, %v644_v41  ;;  %v1062_v10 = vpop.f32.mrf.mxu0 }
 0x10b   : > { %v959_v25 = vadd.f32 %v942_v28, %v768_v47  ;;  %v952_v49 = vpop.f32.mrf.mxu3 }
 0x10c   : > { %v646_v35 = vpop.f32.mrf.mxu1 }
 0x10d   : > { %v647_v2 = vadd.f32 %v646_v35, %v7577_v36  ;;  %v7618_v48 = vadd.f32 %v1059_v43, %v959_v25  ;;  %v7637_v43 = vpop.permute.xlu0 %1728 }
 0x110   : > { %v754_v27 = vpop.f32.mrf.mxu2 }
 0x111   : > { %v769_v50 = vadd.f32 %v754_v27, %v647_v2  ;;  %v1064_v53 = vpop.f32.mrf.mxu0 }
 0x113   : > { %v960_v51 = vadd.f32 %v945_v12, %v769_v50  ;;  %v1540_v55 = vpop.f32.mrf.mxu3 }
 0x114   : > { %v648_v52 = vpop.f32.mrf.mxu1 }
 0x115   : > { %v649_v8 = vadd.f32 %v648_v52, %v7581_v42  ;;  %v7621_v54 = vadd.f32 %v1062_v10, %v960_v51 }
 0x118   : > { %v756_v17 = vpop.f32.mrf.mxu2 }
 0x119   : > { %v770_v11 = vadd.f32 %v756_v17, %v649_v8  ;;  %v1067_v29 = vpop.f32.mrf.mxu0 }
 0x11b   : > { %v961_v20 = vadd.f32 %v947_v30, %v770_v11  ;;  %v1542_v57 = vpop.f32.mrf.mxu3 }
 0x11c   : > { %v651_v24 = vpop.f32.mrf.mxu1 }
 0x11d   : > { %v652_v36 = vadd.f32 %v651_v24, %v7568_v6  ;;  %v7624_v56 = vadd.f32 %v1064_v53, %v961_v20 }
 0x120   : > { %v759_v59 = vpop.f32.mrf.mxu2 }
 0x121   : > { %v771_v60 = vadd.f32 %v759_v59, %v652_v36  ;;  %v1069_v63 = vpop.f32.mrf.mxu0 }
 0x123   : > { %v962_v61 = vadd.f32 %v950_v45, %v771_v60  ;;  %v1545_v42 = vpop.f32.mrf.mxu3 }
 0x124   : > { %v653_v62 = vpop.f32.mrf.mxu1 }
 0x125   : > { %v7626_v0 = vadd.f32 %v1067_v29, %v962_v61 }
 0x128   : > { %v761_v1 = vpop.f32.mrf.mxu2 }
 0x129   : > { %v1666_v4 = vpop.f32.mrf.mxu0 }
 0x12b   : > { %v1547_v13 = vpop.f32.mrf.mxu3 }
 0x12c   : > { %v1234_v3 = vpop.f32.mrf.mxu1 }
 0x12d   : > { %v1258_v5 = vadd.f32 %v1234_v3, %v7602_v58 }
 0x130   : > { %v1354_v28 = vpop.f32.mrf.mxu2 }
 0x131   : > { %v1378_v34 = vadd.f32 %v1354_v28, %v1258_v5  ;;  %v1668_v9 = vpop.f32.mrf.mxu0 }
 0x133   : > { %v1564_v6 = vadd.f32 %v1540_v55, %v1378_v34  ;;  %v1550_v15 = vpop.f32.mrf.mxu3 }
 0x134   : > { %v1236_v7 = vpop.f32.mrf.mxu1 }
 0x135   : > { %v1259_v16 = vadd.f32 %v1236_v7, %v7607_v19  ;;  %v1690_v12 = vadd.f32 %v1666_v4, %v1564_v6 }
 0x137   : > { %v1703_v32 = vadd.f32 %v7632_v22, %v1690_v12 }
 0x138   : > { %v1356_v23 = vpop.f32.mrf.mxu2 }
 0x139   : > { %v1379_v26 = vadd.f32 %v1356_v23, %v1259_v16  ;;  %v1671_v37 = vpop.f32.mrf.mxu0  ;;  %v1712_v33 = vmax.f32 %v1703_v32, 0.0 }
 0x13b   : > { %v1565_v31 = vadd.f32 %v1542_v57, %v1379_v26  ;;  %v1552_v21 = vpop.f32.mrf.mxu3  ;;  %v1766_v46 = vmul.f32 %v7630_v14, %v1712_v33 }
 0x13c   : > { %v1239_v58 = vpop.f32.mrf.mxu1 }
 0x13d   : > { %v1691_v30 = vadd.f32 %v1668_v9, %v1565_v31  ;;  %v1260_v39 = vadd.f32 %v1239_v58, %v7609_v18  ;;  %v7642_v18 = vpop.permute.xlu1 %1733 }
 0x13f   : > { %v1704_v19 = vadd.f32 %v7632_v22, %v1691_v30 }
 0x140   : > { %v1359_v40 = vpop.f32.mrf.mxu2 }
 0x141   : > { %v1380_v41 = vadd.f32 %v1359_v40, %v1260_v39  ;;  %v1713_v45 = vmax.f32 %v1704_v19, 0.0  ;;  %v1673_v10 = vpop.f32.mrf.mxu0 }
 0x143   : > { %v1566_v47 = vadd.f32 %v1545_v42, %v1380_v41  ;;  %v1767_v25 = vmul.f32 %v7637_v43, %v1713_v45  ;;  %v1555_v27 = vpop.f32.mrf.mxu3 }
 0x144   : > { %v1241_v35 = vpop.f32.mrf.mxu1 }
 0x145   : > { %v6624_v2 = vpack.c.bf16 %v1767_v25, %v1766_v46  ;;  %v1261_v49 = vadd.f32 %v1241_v35, %v7612_v38  ;;  %v1692_v50 = vadd.f32 %v1671_v37, %v1566_v47  ;;  %v7647_v57 = vpop.permute.xlu1 %1738 }
 0x147   : > { %6821 = vst [vmem:[#allocation2 + $0x8] sm:$0xff] %v6624_v2   ;;  %v1705_v8 = vadd.f32 %v7632_v22, %v1692_v50 }
 0x148   : > { %v1361_v51 = vpop.f32.mrf.mxu2 }
 0x149   : > { %v1381_v52 = vadd.f32 %v1361_v51, %v1261_v49  ;;  %v1676_v17 = vpop.f32.mrf.mxu0  ;;  %v1714_v29 = vmax.f32 %v1705_v8, 0.0  ;;  %v7665_v51 = vpop.permute.xlu0 %1753 }
 0x14b   : > { %v1567_v53 = vadd.f32 %v1547_v13, %v1381_v52  ;;  %v1557_v24 = vpop.f32.mrf.mxu3  ;;  %v1768_v61 = vmul.f32 %v7642_v18, %v1714_v29 }
 0x14c   : > { %v1244_v55 = vpop.f32.mrf.mxu1 }
 0x14d   : > { %v1693_v11 = vadd.f32 %v1673_v10, %v1567_v53  ;;  %v1262_v20 = vadd.f32 %v1244_v55, %v7615_v44  ;;  %v7652_v44 = vpop.permute.xlu2 %1743  ;;  %v7667_v8 = vpop.permute.xlu1 %1758 }
 0x14f   : > { %v1706_v36 = vadd.f32 %v7632_v22, %v1693_v11 }
 0x150   : > { %v1364_v38 = vpop.f32.mrf.mxu2 }
 0x151   : > { %v1382_v59 = vadd.f32 %v1364_v38, %v1262_v20  ;;  %v1715_v60 = vmax.f32 %v1706_v36, 0.0  ;;  %v1678_v1 = vpop.f32.mrf.mxu0 }
 0x153   : > { %v1568_v62 = vadd.f32 %v1550_v15, %v1382_v59  ;;  %v1769_v63 = vmul.f32 %v7647_v57, %v1715_v60  ;;  %v1560_v5 = vpop.f32.mrf.mxu3 }
 0x154   : > { %v1246_v42 = vpop.f32.mrf.mxu1 }
 0x155   : > { %v6629_v3 = vpack.c.bf16 %v1769_v63, %v1768_v61  ;;  %v1263_v4 = vadd.f32 %v1246_v42, %v7618_v48  ;;  %v1694_v13 = vadd.f32 %v1676_v17, %v1568_v62  ;;  %v7657_v32 = vpop.permute.xlu2 %1748 }
 0x157   : > { %6822 = vst [vmem:[#allocation2 + $0x10] sm:$0xff] %v6629_v3   ;;  %v1707_v7 = vadd.f32 %v7632_v22, %v1694_v13 }
 0x158   : > { %v1366_v28 = vpop.f32.mrf.mxu2 }
 0x159   : > { %v1383_v34 = vadd.f32 %v1366_v28, %v1263_v4  ;;  %v1681_v16 = vpop.f32.mrf.mxu0  ;;  %v1716_v26 = vmax.f32 %v1707_v7, 0.0 }
 0x15b   : > { %v1569_v6 = vadd.f32 %v1552_v21, %v1383_v34  ;;  %v1562_v23 = vpop.f32.mrf.mxu3  ;;  %v1770_v30 = vmul.f32 %v7652_v44, %v1716_v26 }
 0x15c   : > { %v1249_v9 = vpop.f32.mrf.mxu1 }
 0x15d   : > { %v1695_v15 = vadd.f32 %v1678_v1, %v1569_v6  ;;  %v1264_v12 = vadd.f32 %v1249_v9, %v7621_v54  ;;  %v7672_v60 = vpop.permute.xlu2 %1763 }
 0x15f   : > { %v1708_v31 = vadd.f32 %v7632_v22, %v1695_v15 }
 0x160   : > { %v1369_v48 = vpop.f32.mrf.mxu2 }
 0x161   : > { %v1384_v58 = vadd.f32 %v1369_v48, %v1264_v12  ;;  %v1717_v37 = vmax.f32 %v1708_v31, 0.0  ;;  %v1683_v19 = vpop.f32.mrf.mxu0 }
 0x163   : > { %v1570_v39 = vadd.f32 %v1555_v27, %v1384_v58  ;;  %v1771_v21 = vmul.f32 %v7657_v32, %v1717_v37 }
 0x164   : > { %v1251_v33 = vpop.f32.mrf.mxu1 }
 0x165   : > { %v6634_v40 = vpack.c.bf16 %v1771_v21, %v1770_v30  ;;  %v1265_v41 = vadd.f32 %v1251_v33, %v7624_v56  ;;  %v1696_v54 = vadd.f32 %v1681_v16, %v1570_v39 }
 0x167   : > { %6823 = vst [vmem:[#allocation2 + $0x18] sm:$0xff] %v6634_v40   ;;  %v1709_v25 = vadd.f32 %v7632_v22, %v1696_v54 }
 0x168   : > { %v1371_v45 = vpop.f32.mrf.mxu2 }
 0x169   : > { %v1385_v46 = vadd.f32 %v1371_v45, %v1265_v41  ;;  %v1686_v10 = vpop.f32.mrf.mxu0  ;;  %v1718_v50 = vmax.f32 %v1709_v25, 0.0 }
 0x16b   : > { %v1571_v47 = vadd.f32 %v1557_v24, %v1385_v46  ;;  %v1772_v17 = vmul.f32 %v7665_v51, %v1718_v50 }
 0x16c   : > { %v1254_v35 = vpop.f32.mrf.mxu1 }
 0x16d   : > { %v1697_v2 = vadd.f32 %v1683_v19, %v1571_v47  ;;  %v1266_v49 = vadd.f32 %v1254_v35, %v7626_v0 }
 0x16f   : > { %v1710_v27 = vadd.f32 %v7632_v22, %v1697_v2 }
 0x170   : > { %v1374_v52 = vpop.f32.mrf.mxu2 }
 0x171   : > { %v1719_v53 = vmax.f32 %v1710_v27, 0.0  ;;  %v1386_v56 = vadd.f32 %v1374_v52, %v1266_v49  ;;  %v1688_v24 = vpop.f32.mrf.mxu0 }
 0x173   : > { %v1773_v55 = vmul.f32 %v7667_v8, %v1719_v53  ;;  %v1572_v11 = vadd.f32 %v1560_v5, %v1386_v56 }
 0x174   : > { %v1256_v20 = vpop.f32.mrf.mxu1 }
 0x175   : > { %v6639_v29 = vpack.c.bf16 %v1773_v55, %v1772_v17  ;;  %v1698_v36 = vadd.f32 %v1686_v10, %v1572_v11 }
 0x177   : > { %6824 = vst [vmem:[#allocation2 + $0x20] sm:$0xff] %v6639_v29   ;;  %v1711_v0 = vadd.f32 %v7632_v22, %v1698_v36 }
 0x178   : > { %v1376_v38 = vpop.f32.mrf.mxu2 }
 0x179   : > { %v1720_v59 = vmax.f32 %v1711_v0, 0.0 }
 0x17b   : > { %v1774_v61 = vmul.f32 %v7672_v60, %v1720_v59 }
 0x17d   : > { %v1783_v62 = vpack.c.bf16 %v1774_v61, %v1774_v61 }
 0x17f   : > { %1792 = vst [vmem:[#allocation2 + $0x28] sm:$0xf] %v1783_v62 }
 0x180 LB: >> { %s5336_s9 = smul.u32 1152, %s7297_s8  ;;  %v1801_v28 = vld [vmem:[#allocation2] sm:$0x8]  ;;  %v7691_v34 = vld [vmem:[#allocation2 + $0x4] sm:$0xf]  ;;  %v7696_v15 = vld [vmem:[#allocation2 + $0x10] sm:$0xff]   ;;  %s7297_s8 = sphi %s7675_s8, %s1798_s8  }
 0x181   : >> { %v1862_v6 = vunpack.c.l.b16 %v1801_v28  ;;  %v1863_v7 = vunpack.c.l.b16 %v7691_v34  ;;  %v7698_v12 = vld [vmem:[#allocation2 + $0x18] sm:$0xff]   ;;  %v1895_v23 = vshrl.u32 %v7696_v15, 16  ;;  %v1898_v58 = vshll.u32 %v7696_v15, 16  ;;  %v7710_v39 = vld [vmem:[#allocation2 + $0x8] sm:$0xff]   ;;  %v7726_v35 = vld [vmem:[#allocation2 + $0x20] sm:$0xff]   ;;  %s5809_s10 = sshll.u32 %s7297_s8, 1 }
 0x182   : >> { %s7681_s25 = scalar_lea.vmem [#allocation4], %s5336_s9  ;;  %v1904_v37 = vshrl.u32 %v7698_v12, 16  ;;  %v1907_v30 = vshll.u32 %v7698_v12, 16  ;;  %v1886_v19 = vshrl.u32 %v7710_v39, 16  ;;  %v1889_v40 = vshll.u32 %v7710_v39, 16  ;;  %s7903_s12 = scalar_lea.vmem [#allocation6], %s5809_s10 }
 0x183   : >> { %v6428_v22 = vld [vmem:[%s7681_s25 + $0x2b8] sm:$0xff]  ;;  %v6427_v42 = vld [vmem:[%s7681_s25 + $0x2b0] sm:$0xff]  ;;  %v6426_v3 = vld [vmem:[%s7681_s25 + $0x2a8] sm:$0xff]  ;;  %v7703_v26 = vpack.c.b16 %v1863_v7, %v1862_v6  ;;  %v1897_v45 = vrot.slane %v1895_v23, 3  ;;  %v1900_v46 = vrot.slane %v1898_v58, 4  ;;  %v2013_v10 = vrot.slane %v7696_v15, 3 }
 0x184   : >> { %v6420_v63 = vld [vmem:[%s7681_s25 + $0x278] sm:$0xff]  ;;  %7012 = vmatpush.bf16.msra.mxu2 %v6428_v22  ;;  %v6419_v1 = vld [vmem:[%s7681_s25 + $0x270] sm:$0xff]  ;;  %1974 = vmatpush.bf16.msra.mxu0 %v6428_v22  ;;  %v6418_v4 = vld [vmem:[%s7681_s25 + $0x268] sm:$0xff]  ;;  %v1906_v47 = vrot.slane %v1904_v37, 3  ;;  %v1909_v25 = vrot.slane %v1907_v30, 4  ;;  %v2015_v2 = vrot.slane %v7698_v12, 3  ;;  %v1870_v11 = vunpack.c.l.b16 %v7726_v35 }
 0x185   : >> { %7020 = vmatpush.bf16.msra.mxu3 %v6420_v63  ;;  %2072 = vmatpush.bf16.msra.mxu1 %v6420_v63  ;;  %v6425_v5 = vld [vmem:[%s7681_s25 + $0x2a0] sm:$0xff]  ;;  %v6424_v9 = vld [vmem:[%s7681_s25 + $0x298] sm:$0xff]  ;;  %v6423_v31 = vld [vmem:[%s7681_s25 + $0x290] sm:$0xff]  ;;  %v1878_v21 = vshrl.u32 %v7703_v26, 16  ;;  %v1881_v33 = vshll.u32 %v7703_v26, 16  ;;  %v1888_v50 = vrot.slane %v1886_v19, 3  ;;  %v7736_v55 = vor.u32 %v1900_v46, %v1897_v45 }
 0x186   : >> { %v6417_v13 = vld [vmem:[%s7681_s25 + $0x260] sm:$0xff]  ;;  %v6416_v16 = vld [vmem:[%s7681_s25 + $0x258] sm:$0xff]  ;;  %v6415_v48 = vld [vmem:[%s7681_s25 + $0x250] sm:$0xff]  ;;  %v1891_v52 = vrot.slane %v1889_v40, 4  ;;  %v7738_v17 = vor.u32 %v1909_v25, %v1906_v47  ;;  %v1871_v20 = vunpack.c.h.b16 %v7726_v35  ;;  %v2010_v38 = vrot.slane %v7703_v26, 3  ;;  %s1798_s8 = sadd.s32 1, %s7297_s8  }
 0x187   : >> { %v6422_v41 = vld [vmem:[%s7681_s25 + $0x288] sm:$0xff]  ;;  %v1880_v49 = vrot.slane %v1878_v21, 3  ;;  %v1883_v27 = vrot.slane %v1881_v33, 4  ;;  %v6421_v53 = vld [vmem:[%s7681_s25 + $0x280] sm:$0xff]  ;;  %v6436_v24 = vld [vmem:[%s7681_s25 + $0x2f8] sm:$0xff]  ;;  %v2011_v59 = vrot.slane %v7710_v39, 3  ;;  %v2016_v62 = vsel %vm559_vm1, %v2013_v10, %v2015_v2 }
 0x188   : >> { %7013 = vmatpush.bf16.msra.mxu2 %v6427_v42  ;;  %1975 = vmatpush.bf16.msra.mxu0 %v6427_v42  ;;  %v6414_v54 = vld [vmem:[%s7681_s25 + $0x248] sm:$0xff]  ;;  %v6413_v56 = vld [vmem:[%s7681_s25 + $0x240] sm:$0xff]  ;;  %v6444_v29 = vld [vmem:[%s7681_s25 + $0x338] sm:$0xff]  ;;  %v7744_v0 = vor.u32 %v1891_v52, %v1888_v50  ;;  %v1911_v61 = vsel %vm425_vm0, %v7736_v55, %v7738_v17  ;;  %v1916_v28 = vshll.u32 %v7726_v35, 16  ;;  %p1795_p7 = scmp.ge.s32.totalorder %s1798_s8, 10  }
 0x189   : >> { %7021 = vmatpush.bf16.msra.mxu3 %v6419_v1  ;;  %2073 = vmatpush.bf16.msra.mxu1 %v6419_v1  ;;  %v1884_v36 = vor.u32 %v1883_v27, %v1880_v49  ;;  %v6452_v22 = vld [vmem:[%s7681_s25 + $0x378] sm:$0xff]  ;;  %v6435_v42 = vld [vmem:[%s7681_s25 + $0x2f0] sm:$0xff]  ;;  %v6434_v26 = vld [vmem:[%s7681_s25 + $0x2e8] sm:$0xff]  ;;  %vm4810_vm4 = vcmask (%p1795_p7), 64512  }
 0x18a   : >> { %v6460_v63 = vld [vmem:[%s7681_s25 + $0x3b8] sm:$0xff]  ;;  %v6443_v1 = vld [vmem:[%s7681_s25 + $0x330] sm:$0xff]  ;;  %v1918_v21 = vrot.slane %v1916_v28, 4  ;;  %v6433_v45 = vld [vmem:[%s7681_s25 + $0x2e0] sm:$0xff] }
 0x18b   : >> { %v6441_v46 = vld [vmem:[%s7681_s25 + $0x320] sm:$0xff]  ;;  %v6432_v50 = vld [vmem:[%s7681_s25 + $0x2d8] sm:$0xff]  ;;  %v7060_v28 = vld [vmem:[#allocation2 + $0x4] sm:$0xf0]  }
 0x18c   : >> { %7014 = vmatpush.bf16.msra.mxu2 %v6426_v3  ;;  %1976 = vmatpush.bf16.msra.mxu0 %v6426_v3  ;;  %v1810_v3 = vld [vmem:[#allocation2 + $0x24] sm:$0x7]  ;;  %v6440_v52 = vld [vmem:[%s7681_s25 + $0x318] sm:$0xff] }
 0x18d   : >> { %7022 = vmatpush.bf16.msra.mxu3 %v6418_v4  ;;  %2074 = vmatpush.bf16.msra.mxu1 %v6418_v4  ;;  %v1893_v4 = vsel %vm425_vm0, %v1884_v36, %v7744_v0  ;;  %v2008_v6 = vunpack.c.l.b16 %v1810_v3  ;;  %v6449_v49 = vld [vmem:[%s7681_s25 + $0x360] sm:$0xff]  ;;  %v6431_v36 = vld [vmem:[%s7681_s25 + $0x2d0] sm:$0xff]  ;;  %v2599_v3 = vrot.slane %v1889_v40, 1  ;;  %v2604_v40 = vrot.slane %v1898_v58, 1 }
 0x18e   : >> { %v6457_v27 = vld [vmem:[%s7681_s25 + $0x3a0] sm:$0xff] }
 0x18f   : >> { %v7773_v33 = vpack.c.b16 %v2008_v6, %v1870_v11  ;;  %v6488_v6 = vld [vmem:[%s7681_s25 + $0x478] sm:$0xff] }
 0x190   : >> { %7015 = vmatpush.bf16.msra.mxu2 %v6425_v5  ;;  %1977 = vmatpush.bf16.msra.mxu0 %v6425_v5  ;;  %v2012_v5 = vsel %vm559_vm1, %v2010_v38, %v2011_v59  ;;  %v6439_v38 = vld [vmem:[%s7681_s25 + $0x310] sm:$0xff] }
 0x191   : >> { %7023 = vmatpush.bf16.msra.mxu3 %v6417_v13  ;;  %2075 = vmatpush.bf16.msra.mxu1 %v6417_v13  ;;  %v1913_v13 = vshrl.u32 %v7726_v35, 16  ;;  %v2017_v25 = vrot.slane %v7773_v33, 3 }
 0x194   : >> { %7016 = vmatpush.bf16.msra.mxu2 %v6424_v9  ;;  %1978 = vmatpush.bf16.msra.mxu0 %v6424_v9  ;;  %v6451_v9 = vld [vmem:[%s7681_s25 + $0x370] sm:$0xff] }
 0x195   : >> { %7024 = vmatpush.bf16.msra.mxu3 %v6416_v16  ;;  %2076 = vmatpush.bf16.msra.mxu1 %v6416_v16  ;;  %v6459_v16 = vld [vmem:[%s7681_s25 + $0x3b0] sm:$0xff] }
 0x198   : >> { %7017 = vmatpush.bf16.msra.mxu2 %v6423_v31  ;;  %1979 = vmatpush.bf16.msra.mxu0 %v6423_v31  ;;  %v6442_v31 = vld [vmem:[%s7681_s25 + $0x328] sm:$0xff] }
 0x199   : >> { %7025 = vmatpush.bf16.msra.mxu3 %v6415_v48  ;;  %2077 = vmatpush.bf16.msra.mxu1 %v6415_v48  ;;  %v1915_v48 = vrot.slane %v1913_v13, 3  ;;  %v6944_v13 = vld [vmem:[#allocation2 + $0x4] sm:$0x8] }
 0x19b   : >> { %v7779_v47 = vor.u32 %v1918_v21, %v1915_v48  ;;  %v6945_v48 = vor.u32 %v7060_v28, %v6944_v13  ;;  %v6484_v13 = vld [vmem:[%s7681_s25 + $0x458] sm:$0xff]  ;;  %v6475_v28 = vld [vmem:[%s7681_s25 + $0x410] sm:$0xff] }
 0x19c   : >> { %7018 = vmatpush.bf16.msra.mxu2 %v6422_v41  ;;  %1980 = vmatpush.bf16.msra.mxu0 %v6422_v41  ;;  %v6450_v41 = vld [vmem:[%s7681_s25 + $0x368] sm:$0xff] }
 0x19d   : >> { %7026 = vmatpush.bf16.msra.mxu3 %v6414_v54  ;;  %2078 = vmatpush.bf16.msra.mxu1 %v6414_v54  ;;  %v6458_v54 = vld [vmem:[%s7681_s25 + $0x3a8] sm:$0xff]  ;;  %v2281_v58 = vshrl.u32 %v6945_v48, 16 }
 0x19f   : >> { %v2283_v33 = vrot.slane %v2281_v58, 3  ;;  %v7870_v58 = vld [vmem:[#allocation2 + $0x28] sm:$0xff]  }
 0x1a0   : >> { %7019 = vmatpush.bf16.msra.mxu2 %v6421_v53  ;;  %1981 = vmatpush.bf16.msra.mxu0 %v6421_v53  ;;  %v1920_v53 = vsel %vm425_vm0, %v7738_v17, %v7779_v47  ;;  %v1902_v17 = vsel %vm425_vm0, %v7744_v0, %v7736_v55  ;;  %v6446_v55 = vld [vmem:[%s7681_s25 + $0x348] sm:$0xff]  ;;  %v6429_v0 = vld [vmem:[%s7681_s25 + $0x2c0] sm:$0xff] }
 0x1a1   : >> { %7027 = vmatpush.bf16.msra.mxu3 %v6413_v56  ;;  %2079 = vmatpush.bf16.msra.mxu1 %v6413_v56  ;;  %v2018_v56 = vsel %vm559_vm1, %v2015_v2, %v2017_v25  ;;  %v2014_v2 = vsel %vm559_vm1, %v2011_v59, %v2013_v10  ;;  %v6454_v10 = vld [vmem:[%s7681_s25 + $0x388] sm:$0xff]  ;;  %v6437_v59 = vld [vmem:[%s7681_s25 + $0x300] sm:$0xff] }
 0x1a3   : >> { %1992 = vmatmul.bf16.vlgmr.msra.gmra.mxu2 %v1911_v61  ;;  %1982 = vmatmul.bf16.vlgmr.msra.gmra.mxu0 %v1893_v4  ;;  %v6447_v61 = vld [vmem:[%s7681_s25 + $0x350] sm:$0xff]  ;;  %v6445_v4 = vld [vmem:[%s7681_s25 + $0x340] sm:$0xff] }
 0x1a4   : >> { %2183 = vmatpush.bf16.msrb.mxu2 %v6436_v24  ;;  %2090 = vmatmul.bf16.vlgmr.msra.gmra.mxu3 %v2016_v62  ;;  %v6448_v24 = vld [vmem:[%s7681_s25 + $0x358] sm:$0xff]  ;;  %v6455_v62 = vld [vmem:[%s7681_s25 + $0x390] sm:$0xff] }
 0x1a5   : >> { %2377 = vmatpush.bf16.msrb.mxu3 %v6444_v29  ;;  %2497 = vmatpush.bf16.msrb.mxu0 %v6452_v22  ;;  %v6456_v29 = vld [vmem:[%s7681_s25 + $0x398] sm:$0xff]  ;;  %v6430_v22 = vld [vmem:[%s7681_s25 + $0x2c8] sm:$0xff] }
 0x1a6   : >> { %2686 = vmatpush.bf16.msrb.mxu1 %v6460_v63  ;;  %v6438_v63 = vld [vmem:[%s7681_s25 + $0x308] sm:$0xff] }
 0x1a7   : >> { %2080 = vmatmul.bf16.vlgmr.msra.gmra.mxu1 %v2012_v5  ;;  %v6453_v5 = vld [vmem:[%s7681_s25 + $0x380] sm:$0xff] }
 0x1a8   : >> { %2184 = vmatpush.bf16.msrb.mxu2 %v6435_v42  ;;  %v6468_v42 = vld [vmem:[%s7681_s25 + $0x3f8] sm:$0xff] }
 0x1a9   : >> { %2378 = vmatpush.bf16.msrb.mxu3 %v6443_v1  ;;  %2498 = vmatpush.bf16.msrb.mxu0 %v6451_v9  ;;  %v6480_v1 = vld [vmem:[%s7681_s25 + $0x438] sm:$0xff]  ;;  %v6467_v9 = vld [vmem:[%s7681_s25 + $0x3f0] sm:$0xff] }
 0x1aa   : >> { %2687 = vmatpush.bf16.msrb.mxu1 %v6459_v16  ;;  %v6479_v16 = vld [vmem:[%s7681_s25 + $0x430] sm:$0xff] }
 0x1ac   : >> { %2185 = vmatpush.bf16.msrb.mxu2 %v6434_v26  ;;  %v2600_v26 = vor.u32 %v2599_v3, %v1886_v19  ;;  %v6466_v19 = vld [vmem:[%s7681_s25 + $0x3e8] sm:$0xff]  ;;  %v7065_v3 = vld [vmem:[#allocation2 + $0x1c] sm:$0xff]  }
 0x1ad   : >> { %2379 = vmatpush.bf16.msrb.mxu3 %v6442_v31  ;;  %2499 = vmatpush.bf16.msrb.mxu0 %v6450_v41  ;;  %v7062_v31 = vld [vmem:[#allocation2 + $0xc] sm:$0xff]  }
 0x1ae   : >> { %2688 = vmatpush.bf16.msrb.mxu1 %v6458_v54  ;;  %v2605_v21 = vsel %vm1132_vm2, %v2600_v26, %v2604_v40  ;;  %v6487_v41 = vld [vmem:[%s7681_s25 + $0x470] sm:$0xff]  ;;  %v6478_v54 = vld [vmem:[%s7681_s25 + $0x428] sm:$0xff] }
 0x1af   : >> { %v2548_v26 = vld [vmem:[#allocation2 + $0x2c] sm:$0x1] }
 0x1b0   : >> { %2186 = vmatpush.bf16.msrb.mxu2 %v6433_v45  ;;  %v2284_v45 = vshll.u32 %v6945_v48, 16  ;;  %v6483_v48 = vld [vmem:[%s7681_s25 + $0x450] sm:$0xff] }
 0x1b1   : >> { %2380 = vmatpush.bf16.msrb.mxu3 %v6441_v46  ;;  %2500 = vmatpush.bf16.msrb.mxu0 %v6449_v49  ;;  %v2289_v46 = vshrl.u32 %v7062_v31, 16  ;;  %v2292_v49 = vshll.u32 %v7062_v31, 16  ;;  %v6462_v31 = vld [vmem:[%s7681_s25 + $0x3c8] sm:$0xff] }
 0x1b2   : >> { %2689 = vmatpush.bf16.msrb.mxu1 %v6457_v27  ;;  %v6486_v27 = vld [vmem:[%s7681_s25 + $0x468] sm:$0xff] }
 0x1b3   : >> { %1997 = vmatmul.bf16.gmra.mxu2 %v1920_v53  ;;  %1987 = vmatmul.bf16.gmra.mxu0 %v1902_v17  ;;  %v6643_v53 = vunpack.c.l.b16 %v7710_v39 }
 0x1b4   : >> { %2187 = vmatpush.bf16.msrb.mxu2 %v6432_v50  ;;  %2095 = vmatmul.bf16.gmra.mxu3 %v2018_v56  ;;  %v2286_v50 = vrot.slane %v2284_v45, 4 }
 0x1b5   : >> { %2381 = vmatpush.bf16.msrb.mxu3 %v6440_v52  ;;  %2501 = vmatpush.bf16.msrb.mxu0 %v6448_v24  ;;  %v2294_v52 = vrot.slane %v2292_v49, 4 }
 0x1b6   : >> { %2690 = vmatpush.bf16.msrb.mxu1 %v6456_v29  ;;  %v2287_v56 = vor.u32 %v2286_v50, %v2283_v33  ;;  %v2125_v29 = vpack.c.b16 %v6643_v53, %v1863_v7  ;;  %v6476_v7 = vld [vmem:[%s7681_s25 + $0x418] sm:$0xff] }
 0x1b7   : >> { %2085 = vmatmul.bf16.gmra.mxu1 %v2014_v2  ;;  %v7064_v2 = vld [vmem:[#allocation2 + $0x14] sm:$0xff]  }
 0x1b8   : >> { %2188 = vmatpush.bf16.msrb.mxu2 %v6431_v36  ;;  %v2608_v36 = vor.u32 %v2604_v40, %v1895_v23  ;;  %v2301_v34 = vshll.u32 %v7064_v2, 16  ;;  %v2588_v40 = vunpack.c.l.b16 %v2548_v26  ;;  %v6941_v33 = vld [vmem:[#allocation2 + $0x14] sm:$0xff]   ;;  %v6470_v26 = vld [vmem:[#allocation2 + $0x1c] sm:$0xff] }
 0x1b9   : >> { %2382 = vmatpush.bf16.msrb.mxu3 %v6439_v38  ;;  %2502 = vmatpush.bf16.msrb.mxu0 %v6447_v61  ;;  %v2612_v38 = vrot.slane %v1907_v30, 1  ;;  %v6477_v61 = vld [vmem:[%s7681_s25 + $0x420] sm:$0xff] }
 0x1ba   : >> { %2691 = vmatpush.bf16.msrb.mxu1 %v6455_v62  ;;  %v6464_v62 = vld [vmem:[%s7681_s25 + $0x3d8] sm:$0xff]  ;;  %v2303_v30 = vrot.slane %v2301_v34, 4 }
 0x1bc   : >> { %2189 = vmatpush.bf16.msrb.mxu2 %v6430_v22  ;;  %v6485_v22 = vld [vmem:[%s7681_s25 + $0x460] sm:$0xff] }
 0x1bd   : >> { %2383 = vmatpush.bf16.msrb.mxu3 %v6438_v63  ;;  %2503 = vmatpush.bf16.msrb.mxu0 %v6446_v55  ;;  %v2298_v63 = vshrl.u32 %v7064_v2, 16  ;;  %v7851_v55 = vld [vmem:[#allocation2 + $0x20] sm:$0xff]  }
 0x1be   : >> { %2692 = vmatpush.bf16.msrb.mxu1 %v6454_v10  ;;  %v2618_v10 = vshll.u32 %v7851_v55, 16  ;;  %v2622_v45 = vshrl.u32 %v7851_v55, 16  ;;  %v6481_v2 = vld [vmem:[%s7681_s25 + $0x440] sm:$0xff] }
 0x1bf   : >> { %v2300_v23 = vrot.slane %v2298_v63, 3 }
 0x1c0   : >> { %2190 = vmatpush.bf16.msrb.mxu2 %v6429_v0 }
 0x1c1   : >> { %2384 = vmatpush.bf16.msrb.mxu3 %v6437_v59  ;;  %2504 = vmatpush.bf16.msrb.mxu0 %v6445_v4  ;;  %v2304_v0 = vor.u32 %v2303_v30, %v2300_v23  ;;  %v6940_v59 = vld [vmem:[#allocation2 + $0xc] sm:$0xff]  }
 0x1c2   : >> { %2693 = vmatpush.bf16.msrb.mxu1 %v6453_v5  ;;  %v6463_v5 = vld [vmem:[%s7681_s25 + $0x3d0] sm:$0xff] }
 0x1c3   : >> { %2002 = vmatmul.bf16.gmra.mxu2 %v7779_v47  ;;  %v6465_v47 = vld [vmem:[%s7681_s25 + $0x3e0] sm:$0xff] }
 0x1c4   : >> { %2809 = vmatpush.bf16.msra.mxu2 %v6468_v42  ;;  %2100 = vmatmul.bf16.gmra.mxu3 %v2017_v25  ;;  %v2291_v25 = vrot.slane %v2289_v46, 3  ;;  %v2616_v42 = vor.u32 %v2612_v38, %v1904_v37 }
 0x1c5   : >> { %2998 = vmatpush.bf16.msra.mxu3 %v6480_v1  ;;  %3126 = vmatpush.bf16.msra.mxu0 %v6488_v6  ;;  %v2620_v1 = vrot.slane %v2618_v10, 1  ;;  %v2307_v6 = vshrl.u32 %v7065_v3, 16  ;;  %v7286_v10 = vld [vmem:[#allocation2 + $0xc] sm:$0xe] }
 0x1c6   : >> { %2505 = vmatmul.bf16.vlgmr.msrb.gmra.mxu0 %v7710_v39  ;;  %v2295_v24 = vor.u32 %v2294_v52, %v2291_v25  ;;  %v2613_v39 = vsel %vm1132_vm2, %v2608_v36, %v2612_v38  ;;  %v6473_v36 = vld [vmem:[%s7681_s25 + $0x400] sm:$0xff] }
 0x1c7   : >> { %2694 = vmatmul.bf16.vlgmr.msrb.gmra.mxu1 %v2605_v21  ;;  %v2621_v4 = vsel %vm1132_vm2, %v2616_v42, %v2620_v1  ;;  %v2624_v50 = vor.u32 %v2622_v45, %v2620_v1  ;;  %v6469_v1 = vld [vmem:[#allocation2 + $0x14] sm:$0xff] }
 0x1c8   : >> { %2810 = vmatpush.bf16.msra.mxu2 %v6467_v9  ;;  %v2296_v17 = vsel %vm425_vm0, %v2287_v56, %v2295_v24  ;;  %v2310_v9 = vshll.u32 %v7065_v3, 16  ;;  %v3065_v3 = vrot.slane %v6469_v1, 1 }
 0x1c9   : >> { %2999 = vmatpush.bf16.msra.mxu3 %v6479_v16  ;;  %3127 = vmatpush.bf16.msra.mxu0 %v6487_v41  ;;  %v7861_v16 = vld [vmem:[#allocation2 + $0x28] sm:$0xf]  ;;  %v2309_v41 = vrot.slane %v2307_v6, 3 }
 0x1ca   : >> { %v2587_v37 = vunpack.c.l.b16 %v7861_v16 }
 0x1cc   : >> { %2811 = vmatpush.bf16.msra.mxu2 %v6466_v19  ;;  %v2593_v21 = vpack.c.b16 %v2588_v40, %v2587_v37  ;;  %v6474_v19 = vld [vmem:[%s7681_s25 + $0x408] sm:$0xff] }
 0x1cd   : >> { %3000 = vmatpush.bf16.msra.mxu3 %v6478_v54  ;;  %3128 = vmatpush.bf16.msra.mxu0 %v6486_v27  ;;  %v2312_v54 = vrot.slane %v2310_v9, 4  ;;  %v6668_v27 = vunpack.c.h.b16 %v7851_v55  ;;  %v6963_v40 = vld [vmem:[#allocation2 + $0xc] sm:$0xff]  }
 0x1ce   : >> { %v2626_v46 = vshll.u32 %v2593_v21, 16  ;;  %v2630_v63 = vshrl.u32 %v2593_v21, 16 }
 0x1cf   : >> { %v2313_v49 = vor.u32 %v2312_v54, %v2309_v41 }
 0x1d0   : >> { %2812 = vmatpush.bf16.msra.mxu2 %v6465_v47  ;;  %v2274_v47 = vunpack.c.l.b16 %v7870_v58  ;;  %v2628_v25 = vrot.slane %v2626_v46, 1  ;;  %v2918_v46 = vshrl.u32 %v6469_v1, 16 }
 0x1d1   : >> { %3001 = vmatpush.bf16.msra.mxu3 %v6477_v61  ;;  %3129 = vmatpush.bf16.msra.mxu0 %v6485_v22  ;;  %v2314_v52 = vsel %vm425_vm0, %v2304_v0, %v2313_v49 }
 0x1d2   : >> { %v2279_v53 = vpack.c.b16 %v2274_v47, %v6668_v27  ;;  %v2629_v56 = vsel %vm1132_vm2, %v2624_v50, %v2628_v25  ;;  %v2443_v23 = vpack.c.b16 %v2274_v47, %v2274_v47  ;;  %v2632_v30 = vor.u32 %v2630_v63, %v2628_v25 }
 0x1d3   : >> { %2191 = vmatmul.bf16.vlgmr.msrb.gmra.mxu2 %v2125_v29  ;;  %v6482_v29 = vld [vmem:[%s7681_s25 + $0x448] sm:$0xff] }
 0x1d4   : >> { %2385 = vmatmul.bf16.vlgmr.msrb.gmra.mxu3 %v2296_v17  ;;  %2813 = vmatpush.bf16.msra.mxu2 %v6464_v62  ;;  %v2316_v38 = vshrl.u32 %v2279_v53, 16  ;;  %v2319_v17 = vshll.u32 %v2279_v53, 16  ;;  %v6652_v62 = vunpack.c.h.b16 %v7698_v12 }
 0x1d5   : >> { %3002 = vmatpush.bf16.msra.mxu3 %v6476_v7  ;;  %3130 = vmatpush.bf16.msra.mxu0 %v6484_v13 }
 0x1d6   : >> { %2510 = vmatmul.bf16.gmra.mxu0 %v7696_v15  ;;  %v2305_v15 = vsel %vm425_vm0, %v2295_v24, %v2304_v0  ;;  %v6461_v24 = vld [vmem:[%s7681_s25 + $0x3c0] sm:$0xff]  ;;  %v2321_v61 = vrot.slane %v2319_v17, 4  ;;  %v2128_v34 = vpack.c.b16 %v1870_v11, %v6652_v62  ;;  %v2851_v0 = vld [vmem:[#allocation2 + $0xc] sm:$0xff]  }
 0x1d7   : >> { %2699 = vmatmul.bf16.gmra.mxu1 %v2613_v39  ;;  %v2318_v39 = vrot.slane %v2316_v38, 3 }
 0x1d8   : >> { %2814 = vmatpush.bf16.msra.mxu2 %v6463_v5  ;;  %v2907_v5 = vshrl.u32 %v2851_v0, 16 }
 0x1d9   : >> { %3003 = vmatpush.bf16.msra.mxu3 %v6475_v28  ;;  %3131 = vmatpush.bf16.msra.mxu0 %v6483_v48  ;;  %v2322_v22 = vor.u32 %v2321_v61, %v2318_v39  ;;  %v2914_v28 = vshll.u32 %v6469_v1, 16 }
 0x1db   : >> { %v2323_v7 = vsel %vm425_vm0, %v2313_v49, %v2322_v22  ;;  %v2916_v9 = vrot.slane %v2914_v28, 1  ;;  %v2922_v49 = vshll.u32 %v6470_v26, 16 }
 0x1dc   : >> { %2815 = vmatpush.bf16.msra.mxu2 %v6462_v31  ;;  %v3067_v31 = vrot.slane %v6470_v26, 1 }
 0x1dd   : >> { %3004 = vmatpush.bf16.msra.mxu3 %v6474_v19  ;;  %3132 = vmatpush.bf16.msra.mxu0 %v6482_v29  ;;  %v2920_v50 = vor.u32 %v2918_v46, %v2916_v9  ;;  %v2924_v25 = vrot.slane %v2922_v49, 1  ;;  %v6965_v29 = vld [vmem:[#allocation2 + $0x14] sm:$0xff]   ;;  %v2754_v46 = vpack.c.b16 %v2587_v37, %v6668_v27 }
 0x1de   : >> { %v3068_v21 = vsel %vm1594_vm3, %v3065_v3, %v3067_v31 }
 0x1df   : >> { %v2925_v38 = vsel %vm1132_vm2, %v2920_v50, %v2924_v25 }
 0x1e0   : >> { %2816 = vmatpush.bf16.msra.mxu2 %v6461_v24 }
 0x1e1   : >> { %3005 = vmatpush.bf16.msra.mxu3 %v6473_v36  ;;  %3133 = vmatpush.bf16.msra.mxu0 %v6481_v2 }
 0x1e3   : >> { %2196 = vmatmul.bf16.gmra.mxu2 %v6940_v59  ;;  %v7285_v59 = vld [vmem:[#allocation2 + $0xc] sm:$0xf0] }
 0x1e4   : >> { %2390 = vmatmul.bf16.gmra.mxu3 %v2305_v15  ;;  %v7287_v42 = vor.u32 %v7286_v10, %v7285_v59 }
 0x1e6   : >> { %2515 = vmatmul.bf16.gmra.mxu0 %v7698_v12  ;;  %v2129_v12 = vpack.c.b16 %v1871_v20, %v1871_v20  ;;  %v3064_v15 = vrot.slane %v7287_v42, 1 }
 0x1e7   : >> { %2704 = vmatmul.bf16.gmra.mxu1 %v2621_v4  ;;  %v2909_v4 = vshll.u32 %v2851_v0, 16 }
 0x1e8   : >> { %v3066_v11 = vsel %vm1594_vm3, %v3064_v15, %v3065_v3  ;;  %v6966_v3 = vld [vmem:[#allocation2 + $0x1c] sm:$0xff]  }
 0x1e9   : >> { %v2911_v13 = vrot.slane %v2909_v4, 1 }
 0x1eb   : >> { %v2912_v6 = vor.u32 %v2911_v13, %v2907_v5 }
 0x1ed   : >> { %v2917_v35 = vsel %vm1132_vm2, %v2912_v6, %v2916_v9 }
 0x1f3   : >> { %2201 = vmatmul.bf16.gmra.mxu2 %v6941_v33 }
 0x1f4   : >> { %2395 = vmatmul.bf16.gmra.mxu3 %v2314_v52  ;;  %v6471_v52 = vld [vmem:[#allocation2 + $0x24] sm:$0xff] }
 0x1f5   : >> { %v3069_v36 = vrot.slane %v6471_v52, 1 }
 0x1f6   : >> { %2520 = vmatmul.bf16.gmra.mxu0 %v7851_v55 }
 0x1f7   : >> { %2709 = vmatmul.bf16.gmra.mxu1 %v2629_v56  ;;  %v3070_v39 = vsel %vm1594_vm3, %v3067_v31, %v3069_v36 }
 0x203   : >> { %2206 = vmatmul.bf16.gmra.mxu2 %v2128_v34  ;;  %v2926_v34 = vshrl.u32 %v6470_v26, 16 }
 0x204   : >> { %2400 = vmatmul.bf16.gmra.mxu3 %v2323_v7  ;;  %v2930_v7 = vshll.u32 %v6471_v52, 16 }
 0x205   : >> { %v2928_v59 = vor.u32 %v2926_v34, %v2924_v25 }
 0x206   : >> { %2525 = vmatmul.bf16.gmra.mxu0 %v2443_v23  ;;  %v5724_v23 = vld [vmem:[#allocation2 + $0x2c] sm:$0xf]  ;;  %v2932_v42 = vrot.slane %v2930_v7, 1 }
 0x207   : >> { %2714 = vmatmul.bf16.gmra.mxu1 %v2632_v30  ;;  %v6472_v30 = vld [vmem:[#allocation2 + $0x2c] sm:$0x10] }
 0x208   : >> { %v5725_v1 = vor.u32 %v6472_v30, %v5724_v23  ;;  %v2933_v4 = vsel %vm1132_vm2, %v2928_v59, %v2932_v42  ;;  %v6503_v59 = vld [vmem:[%s7681_s25 + $0x4f0] sm:$0xff] }
 0x20a   : >> { %v2938_v31 = vshll.u32 %v5725_v1, 16  ;;  %v2942_v55 = vshrl.u32 %v5725_v1, 16 }
 0x213   : >> { %2211 = vmatmul.bf16.gmra.mxu2 %v2129_v12 }
 0x214   : >> { %2405 = vmatmul.bf16.gmra.mxu3 %v2322_v22 }
 0x216   : >> { %3134 = vmatmul.bf16.vlgmr.msra.gmra.mxu0 %v3066_v11  ;;  %v3071_v11 = vrot.slane %v5725_v1, 1 }
 0x218   : >> { %v3072_v13 = vsel %vm1594_vm3, %v3069_v36, %v3071_v11 }
 0x220   : >> { %v1983_v20 = vpop.f32.mrf.mxu0 }
 0x223   : >> { %2817 = vmatmul.bf16.vlgmr.msra.gmra.mxu2 %v6963_v40  ;;  %v2934_v40 = vshrl.u32 %v6471_v52, 16 }
 0x224   : >> { %3006 = vmatmul.bf16.vlgmr.msra.gmra.mxu3 %v2917_v35  ;;  %v2081_v48 = vpop.f32.mrf.mxu1 }
 0x225   : >> { %v7894_v19 = vadd.f32 %v2081_v48, %v1983_v20  ;;  %v2936_v48 = vor.u32 %v2934_v40, %v2932_v42 }
 0x226   : >> { %v1993_v41 = vpop.f32.mrf.mxu2  ;;  %3139 = vmatmul.bf16.gmra.mxu0 %v3068_v21  ;;  %v2940_v21 = vrot.slane %v2938_v31, 1 }
 0x227   : >> { %v2091_v54 = vpop.f32.mrf.mxu3 }
 0x228   : >> { %v7896_v45 = vadd.f32 %v2091_v54, %v1993_v41  ;;  %v7899_v47 = vpop.f32.mrf.mxu0  ;;  %v2941_v49 = vsel %vm1132_vm2, %v2936_v48, %v2940_v21 }
 0x22c   : >> { %v7901_v33 = vpop.f32.mrf.mxu1 }
 0x22e   : >> { %v1995_v53 = vpop.f32.mrf.mxu2 }
 0x22f   : >> { %v2093_v56 = vpop.f32.mrf.mxu3 }
 0x230   : >> { %v7905_v24 = vadd.f32 %v2093_v56, %v1995_v53  ;;  %v1988_v17 = vpop.f32.mrf.mxu0 }
 0x233   : >> { %2822 = vmatmul.bf16.gmra.mxu2 %v6965_v29 }
 0x234   : >> { %3011 = vmatmul.bf16.gmra.mxu3 %v2925_v38  ;;  %v2086_v2 = vpop.f32.mrf.mxu1  ;;  %v2750_v38 = vunpack.c.h.b16 %v7870_v58 }
 0x235   : >> { %v7909_v61 = vadd.f32 %v2086_v2, %v1988_v17 }
 0x236   : >> { %v1998_v62 = vpop.f32.mrf.mxu2  ;;  %3144 = vmatmul.bf16.gmra.mxu0 %v3070_v39  ;;  %v2755_v39 = vpack.c.b16 %v2750_v38, %v2750_v38 }
 0x237   : >> { %v2096_v22 = vpop.f32.mrf.mxu3 }
 0x238   : >> { %v7911_v63 = vadd.f32 %v2096_v22, %v1998_v62  ;;  %v7913_v10 = vpop.f32.mrf.mxu0  ;;  %v2944_v62 = vor.u32 %v2942_v55, %v2940_v21  ;;  %v6504_v22 = vld [vmem:[%s7681_s25 + $0x4f8] sm:$0xff] }
 0x239   : >> { %3392 = vmatpush.bf16.msra.mxu1 %v6504_v22 }
 0x23c   : >> { %v7915_v0 = vpop.f32.mrf.mxu1 }
 0x23d   : >> { %3393 = vmatpush.bf16.msra.mxu1 %v6503_v59 }
 0x23e   : >> { %v7917_v12 = vpop.f32.mrf.mxu2 }
 0x23f   : >> { %v7919_v15 = vpop.f32.mrf.mxu3 }
 0x243   : >> { %2827 = vmatmul.bf16.gmra.mxu2 %v6966_v3  ;;  %v2506_v5 = vpop.f32.mrf.mxu0 }
 0x244   : >> { %3016 = vmatmul.bf16.gmra.mxu3 %v2933_v4  ;;  %v2695_v28 = vpop.f32.mrf.mxu1 }
 0x246   : >> { %v2003_v6 = vpop.f32.mrf.mxu2  ;;  %3149 = vmatmul.bf16.gmra.mxu0 %v3072_v13 }
 0x247   : >> { %v2101_v9 = vpop.f32.mrf.mxu3 }
 0x248   : >> { %v7923_v26 = vadd.f32 %v2101_v9, %v2003_v6 }
 0x24b   : >> { %v7925_v35 = vpop.f32.mrf.mxu0 }
 0x24c   : >> { %v7927_v20 = vpop.f32.mrf.mxu1 }
 0x24e   : >> { %v2005_v41 = vpop.f32.mrf.mxu2 }
 0x24f   : >> { %v2103_v54 = vpop.f32.mrf.mxu3 }
 0x253   : >> { %2832 = vmatmul.bf16.gmra.mxu2 %v2754_v46  ;;  %v2511_v50 = vpop.f32.mrf.mxu0 }
 0x254   : >> { %3021 = vmatmul.bf16.gmra.mxu3 %v2941_v49  ;;  %v2700_v25 = vpop.f32.mrf.mxu1 }
 0x256   : >> { %v2192_v52 = vpop.f32.mrf.mxu2  ;;  %3154 = vmatmul.bf16.gmra.mxu0 %v3071_v11 }
 0x257   : >> { %v2386_v53 = vpop.f32.mrf.mxu3  ;;  %v2216_v56 = vadd.f32 %v2192_v52, %v7894_v19 }
 0x259   : >> { %v2410_v29 = vadd.f32 %v2386_v53, %v2216_v56  ;;  %v6495_v56 = vld [vmem:[%s7681_s25 + $0x4b0] sm:$0xff] }
 0x25b   : >> { %v2530_v36 = vadd.f32 %v2506_v5, %v2410_v29  ;;  %v7936_v17 = vpop.f32.mrf.mxu0  ;;  %v6511_v29 = vld [vmem:[%s7681_s25 + $0x530] sm:$0xff] }
 0x25c   : >> { %v7938_v16 = vpop.f32.mrf.mxu1 }
 0x25d   : >> { %v7940_v37 = vadd.f32 %v2695_v28, %v2530_v36 }
 0x25e   : >> { %v7942_v27 = vpop.f32.mrf.mxu2 }
 0x25f   : >> { %v7944_v2 = vpop.f32.mrf.mxu3 }
 0x263   : >> { %2837 = vmatmul.bf16.gmra.mxu2 %v2755_v39  ;;  %v2516_v19 = vpop.f32.mrf.mxu0  ;;  %v6494_v39 = vld [vmem:[%s7681_s25 + $0x4a8] sm:$0xff] }
 0x264   : >> { %3026 = vmatmul.bf16.gmra.mxu3 %v2944_v62  ;;  %v2705_v34 = vpop.f32.mrf.mxu1  ;;  %v6510_v62 = vld [vmem:[%s7681_s25 + $0x528] sm:$0xff] }
 0x266   : >> { %v2197_v58 = vpop.f32.mrf.mxu2 }
 0x267   : >> { %v2391_v7 = vpop.f32.mrf.mxu3  ;;  %v2218_v23 = vadd.f32 %v2197_v58, %v7909_v61  ;;  %v6502_v61 = vld [vmem:[%s7681_s25 + $0x4e8] sm:$0xff]  ;;  %v6493_v58 = vld [vmem:[%s7681_s25 + $0x4a0] sm:$0xff] }
 0x268   : >> { %3394 = vmatpush.bf16.msra.mxu1 %v6502_v61  ;;  %v6508_v61 = vld [vmem:[%s7681_s25 + $0x518] sm:$0xff] }
 0x269   : >> { %v2412_v30 = vadd.f32 %v2391_v7, %v2218_v23  ;;  %v6509_v23 = vld [vmem:[%s7681_s25 + $0x520] sm:$0xff] }
 0x26b   : >> { %v2532_v42 = vadd.f32 %v2511_v50, %v2412_v30  ;;  %v7949_v1 = vpop.f32.mrf.mxu0  ;;  %v6501_v50 = vld [vmem:[%s7681_s25 + $0x4e0] sm:$0xff] }
 0x26c   : >> { %v7951_v3 = vpop.f32.mrf.mxu1  ;;  %3395 = vmatpush.bf16.msra.mxu1 %v6501_v50  ;;  %v6499_v50 = vld [vmem:[%s7681_s25 + $0x4d0] sm:$0xff] }
 0x26d   : >> { %v7953_v11 = vadd.f32 %v2700_v25, %v2532_v42  ;;  %v6496_v25 = vld [vmem:[%s7681_s25 + $0x4b8] sm:$0xff] }
 0x26e   : >> { %v7955_v4 = vpop.f32.mrf.mxu2  ;;  %3490 = vmatpush.bf16.msrb.mxu2 %v6496_v25  ;;  %v6492_v42 = vld [vmem:[%s7681_s25 + $0x498] sm:$0xff]  ;;  %v6490_v25 = vld [vmem:[%s7681_s25 + $0x488] sm:$0xff] }
 0x26f   : >> { %v7957_v5 = vpop.f32.mrf.mxu3 }
 0x272   : >> { %3491 = vmatpush.bf16.msrb.mxu2 %v6495_v56 }
 0x273   : >> { %v2521_v13 = vpop.f32.mrf.mxu0 }
 0x274   : >> { %v2710_v28 = vpop.f32.mrf.mxu1 }
 0x276   : >> { %v2202_v6 = vpop.f32.mrf.mxu2  ;;  %3492 = vmatpush.bf16.msrb.mxu2 %v6494_v39  ;;  %v6520_v39 = vld [vmem:[%s7681_s25 + $0x578] sm:$0xff] }
 0x277   : >> { %v2396_v9 = vpop.f32.mrf.mxu3  ;;  %v2220_v40 = vadd.f32 %v2202_v6, %v7896_v45  ;;  %v6512_v45 = vld [vmem:[%s7681_s25 + $0x538] sm:$0xff]  ;;  %3795 = vmatpush.bf16.msrb.mxu0 %v6520_v39 }
 0x278   : >> { %3601 = vmatpush.bf16.msrb.mxu3 %v6512_v45  ;;  %v6506_v45 = vld [vmem:[%s7681_s25 + $0x508] sm:$0xff] }
 0x279   : >> { %v2414_v31 = vadd.f32 %v2396_v9, %v2220_v40  ;;  %v6491_v9 = vld [vmem:[%s7681_s25 + $0x490] sm:$0xff] }
 0x27a   : >> { %3493 = vmatpush.bf16.msrb.mxu2 %v6493_v58  ;;  %v6497_v58 = vld [vmem:[%s7681_s25 + $0x4c0] sm:$0xff] }
 0x27b   : >> { %v2534_v48 = vadd.f32 %v2516_v19, %v2414_v31  ;;  %v7961_v21 = vpop.f32.mrf.mxu0 }
 0x27c   : >> { %v7963_v41 = vpop.f32.mrf.mxu1  ;;  %3602 = vmatpush.bf16.msrb.mxu3 %v6511_v29 }
 0x27d   : >> { %v7965_v54 = vadd.f32 %v2705_v34, %v2534_v48 }
 0x27e   : >> { %v7967_v46 = vpop.f32.mrf.mxu2  ;;  %3494 = vmatpush.bf16.msrb.mxu2 %v6492_v42 }
 0x27f   : >> { %v7969_v49 = vpop.f32.mrf.mxu3 }
 0x280   : >> { %3603 = vmatpush.bf16.msrb.mxu3 %v6510_v62  ;;  %v6505_v62 = vld [vmem:[%s7681_s25 + $0x500] sm:$0xff] }
 0x282   : >> { %3495 = vmatpush.bf16.msrb.mxu2 %v6491_v9 }
 0x283   : >> { %v2526_v52 = vpop.f32.mrf.mxu0 }
 0x284   : >> { %v2715_v53 = vpop.f32.mrf.mxu1  ;;  %3604 = vmatpush.bf16.msrb.mxu3 %v6509_v23 }
 0x286   : >> { %v2207_v36 = vpop.f32.mrf.mxu2  ;;  %3496 = vmatpush.bf16.msrb.mxu2 %v6490_v25  ;;  %v6516_v25 = vld [vmem:[%s7681_s25 + $0x558] sm:$0xff] }
 0x287   : >> { %v2401_v38 = vpop.f32.mrf.mxu3  ;;  %v2222_v55 = vadd.f32 %v2207_v36, %v7911_v63 }
 0x288   : >> { %3605 = vmatpush.bf16.msrb.mxu3 %v6508_v61 }
 0x289   : >> { %v2416_v22 = vadd.f32 %v2401_v38, %v2222_v55  ;;  %v6498_v38 = vld [vmem:[%s7681_s25 + $0x4c8] sm:$0xff]  ;;  %v6489_v55 = vld [vmem:[%s7681_s25 + $0x480] sm:$0xff] }
 0x28a   : >> { %3497 = vmatpush.bf16.msrb.mxu2 %v6489_v55 }
 0x28b   : >> { %v2536_v19 = vadd.f32 %v2521_v13, %v2416_v22  ;;  %v2528_v34 = vpop.f32.mrf.mxu0  ;;  %v6500_v13 = vld [vmem:[%s7681_s25 + $0x4d8] sm:$0xff] }
 0x28c   : >> { %v2717_v7 = vpop.f32.mrf.mxu1  ;;  %3396 = vmatpush.bf16.msra.mxu1 %v6500_v13  ;;  %v2084_v34 = vadd.f32 %v7901_v33, %v7899_v47 }
 0x28d   : >> { %v7981_v30 = vadd.f32 %v2710_v28, %v2536_v19  ;;  %v6507_v28 = vld [vmem:[%s7681_s25 + $0x510] sm:$0xff] }
 0x28e   : >> { %v7983_v59 = vpop.f32.mrf.mxu2  ;;  %3606 = vmatpush.bf16.msrb.mxu3 %v6507_v28  ;;  %v2217_v7 = vadd.f32 %v7942_v27, %v2084_v34  ;;  %v6517_v28 = vld [vmem:[%s7681_s25 + $0x560] sm:$0xff] }
 0x28f   : >> { %v7985_v63 = vpop.f32.mrf.mxu3  ;;  %v8015_v27 = vld [vmem:[%s7903_s12 + $0x1] ss:$0 sm:$0xff] }
 0x290   : >> { %3397 = vmatpush.bf16.msra.mxu1 %v6499_v50  ;;  %v2411_v42 = vadd.f32 %v7944_v2, %v2217_v7  ;;  %v3219_v50 = vld [vmem:[#allocation3] sm:$0x8]  ;;  %v3220_v2 = vld [vmem:[#allocation3 + $0x4] sm:$0xf] }
 0x291   : >> { %v3281_v55 = vunpack.c.l.b16 %v3220_v2 }
 0x292   : >> { %3607 = vmatpush.bf16.msrb.mxu3 %v6506_v45  ;;  %v2531_v47 = vadd.f32 %v7925_v35, %v2411_v42  ;;  %v2089_v45 = vadd.f32 %v7915_v0, %v7913_v10 }
 0x293   : >> { %v3135_v6 = vpop.f32.mrf.mxu0 }
 0x294   : >> { %3398 = vmatpush.bf16.msra.mxu1 %v6498_v38  ;;  %v3280_v38 = vunpack.c.l.b16 %v3219_v50 }
 0x296   : >> { %v2212_v40 = vpop.f32.mrf.mxu2  ;;  %3608 = vmatpush.bf16.msrb.mxu3 %v6505_v62  ;;  %v3290_v10 = vpack.c.b16 %v3281_v55, %v3280_v38 }
 0x297   : >> { %v2406_v31 = vpop.f32.mrf.mxu3  ;;  %v2224_v48 = vadd.f32 %v2212_v40, %v7923_v26 }
 0x298   : >> { %3399 = vmatpush.bf16.msra.mxu1 %v6497_v58  ;;  %v6514_v58 = vld [vmem:[%s7681_s25 + $0x548] sm:$0xff] }
 0x299   : >> { %v2418_v56 = vadd.f32 %v2406_v31, %v2224_v48  ;;  %v2720_v31 = vadd.f32 %v7927_v20, %v2531_v47  ;;  %v6515_v20 = vld [vmem:[%s7681_s25 + $0x550] sm:$0xff] }
 0x29b   : >> { %v2538_v29 = vadd.f32 %v2526_v52, %v2418_v56  ;;  %v3137_v36 = vpop.f32.mrf.mxu0  ;;  %v6519_v52 = vld [vmem:[%s7681_s25 + $0x570] sm:$0xff] }
 0x29c   : >> { %3796 = vmatpush.bf16.msrb.mxu0 %v6519_v52 }
 0x29d   : >> { %v8000_v22 = vadd.f32 %v2715_v53, %v2538_v29  ;;  %v6518_v53 = vld [vmem:[%s7681_s25 + $0x568] sm:$0xff]  ;;  %v2219_v29 = vadd.f32 %v7955_v4, %v2089_v45 }
 0x29e   : >> { %v2214_v26 = vpop.f32.mrf.mxu2 }
 0x29f   : >> { %v2408_v19 = vpop.f32.mrf.mxu3 }
 0x2a0   : >> { %3797 = vmatpush.bf16.msrb.mxu0 %v6518_v53  ;;  %v2413_v19 = vadd.f32 %v7957_v5, %v2219_v29 }
 0x2a2   : >> { %v2533_v42 = vadd.f32 %v7936_v17, %v2413_v19 }
 0x2a3   : >> { %v3140_v23 = vpop.f32.mrf.mxu0 }
 0x2a4   : >> { %3798 = vmatpush.bf16.msrb.mxu0 %v6517_v28  ;;  %v6513_v28 = vld [vmem:[%s7681_s25 + $0x540] sm:$0xff] }
 0x2a6   : >> { %v2818_v61 = vpop.f32.mrf.mxu2 }
 0x2a7   : >> { %v3007_v13 = vpop.f32.mrf.mxu3  ;;  %v2842_v9 = vadd.f32 %v2818_v61, %v7940_v37  ;;  %v3299_v61 = vshll.u32 %v3290_v10, 16 }
 0x2a8   : >> { %3799 = vmatpush.bf16.msrb.mxu0 %v6516_v25 }
 0x2a9   : >> { %v3031_v33 = vadd.f32 %v3007_v13, %v2842_v9  ;;  %v3301_v50 = vrot.slane %v3299_v61, 4 }
 0x2ab   : >> { %v8012_v40 = vpop.f32.mrf.mxu0  ;;  %v3159_v48 = vadd.f32 %v3135_v6, %v3031_v33  ;;  %v3428_v33 = vrot.slane %v3290_v10, 3 }
 0x2ac   : >> { %3800 = vmatpush.bf16.msrb.mxu0 %v6515_v20 }
 0x2ad   : >> { %v3173_v39 = vadd.f32 %v8015_v27, %v3159_v48 }
 0x2ae   : >> { %v2820_v37 = vpop.f32.mrf.mxu2 }
 0x2af   : >> { %v3009_v56 = vpop.f32.mrf.mxu3  ;;  %v2843_v35 = vadd.f32 %v2820_v37, %v2720_v31  ;;  %v3182_v0 = vmax.f32 %v3173_v39, 0.0  ;;  %v6528_v37 = vld [vmem:[%s7681_s25 + $0x5b8] sm:$0xff] }
 0x2b0   : >> { %3801 = vmatpush.bf16.msrb.mxu0 %v6514_v58  ;;  %3915 = vmatpush.bf16.msrb.mxu1 %v6528_v37  ;;  %v6526_v37 = vld [vmem:[%s7681_s25 + $0x5a8] sm:$0xff] }
 0x2b1   : >> { %v3032_v62 = vadd.f32 %v3009_v56, %v2843_v35  ;;  %v3191_v13 = vmul.f32 %v3182_v0, %v7630_v14 }
 0x2b3   : >> { %v3160_v6 = vadd.f32 %v3137_v36, %v3032_v62  ;;  %v8024_v26 = vpop.f32.mrf.mxu0  ;;  %v3296_v36 = vshrl.u32 %v3290_v10, 16 }
 0x2b4   : >> { %3802 = vmatpush.bf16.msrb.mxu0 %v6513_v28 }
 0x2b5   : >> { %v3174_v34 = vadd.f32 %v8015_v27, %v3160_v6  ;;  %v3298_v48 = vrot.slane %v3296_v36, 3 }
 0x2b6   : >> { %v2823_v52 = vpop.f32.mrf.mxu2 }
 0x2b7   : >> { %v3012_v4 = vpop.f32.mrf.mxu3  ;;  %v3183_v7 = vmax.f32 %v3174_v34, 0.0  ;;  %v2844_v53 = vadd.f32 %v2823_v52, %v7953_v11  ;;  %v2722_v11 = vadd.f32 %v7938_v16, %v2533_v42  ;;  %v2221_v16 = vadd.f32 %v7967_v46, %v7905_v24  ;;  %v6527_v34 = vld [vmem:[%s7681_s25 + $0x5b0] sm:$0xff] }
 0x2b8   : >> { %3916 = vmatpush.bf16.msrb.mxu1 %v6527_v34 }
 0x2b9   : >> { %v3192_v5 = vmul.f32 %v3183_v7, %v7637_v43  ;;  %v3033_v9 = vadd.f32 %v3012_v4, %v2844_v53  ;;  %v2415_v46 = vadd.f32 %v7969_v49, %v2221_v16  ;;  %v6973_v49 = vld [vmem:[#allocation3 + $0x4] sm:$0x8] }
 0x2bb   : >> { %v8034_v47 = vpack.c.bf16 %v3192_v5, %v3191_v13  ;;  %v8036_v31 = vpop.f32.mrf.mxu0  ;;  %v3161_v17 = vadd.f32 %v3140_v23, %v3033_v9  ;;  %v3302_v23 = vor.u32 %v3301_v50, %v3298_v48  ;;  %v2535_v5 = vadd.f32 %v7949_v1, %v2415_v46 }
 0x2bc   : >> { %3917 = vmatpush.bf16.msrb.mxu1 %v6526_v37 }
 0x2bd   : >> { %6861 = vst [vmem:[#allocation3 + $0x8] sm:$0xff] %v8034_v47   ;;  %v3429_v2 = vrot.slane %v8034_v47, 3  ;;  %v6707_v25 = vunpack.c.l.b16 %v8034_v47  ;;  %v3304_v45 = vshrl.u32 %v8034_v47, 16  ;;  %v3307_v29 = vshll.u32 %v8034_v47, 16 }
 0x2be   : >> { %v2825_v56 = vpop.f32.mrf.mxu2  ;;  %v3175_v10 = vadd.f32 %v8015_v27, %v3161_v17  ;;  %v2724_v50 = vadd.f32 %v7951_v3, %v2535_v5 }
 0x2bf   : >> { %v3014_v35 = vpop.f32.mrf.mxu3  ;;  %v2845_v38 = vadd.f32 %v2825_v56, %v2722_v11  ;;  %v3430_v39 = vsel %vm559_vm1, %v3428_v33, %v3429_v2  ;;  %v3543_v62 = vpack.c.b16 %v6707_v25, %v3281_v55  ;;  %v3306_v20 = vrot.slane %v3304_v45, 3 }
 0x2c0   : >> { %3498 = vmatmul.bf16.vlgmr.msrb.gmra.mxu2 %v3430_v39  ;;  %v3309_v6 = vrot.slane %v3307_v29, 4  ;;  %v4017_v19 = vrot.slane %v3307_v29, 1  ;;  %v3184_v7 = vmax.f32 %v3175_v10, 0.0  ;;  %v2099_v56 = vadd.f32 %v7919_v15, %v7917_v12 }
 0x2c1   : >> { %v3034_v0 = vadd.f32 %v3014_v35, %v2845_v38  ;;  %3609 = vmatmul.bf16.vlgmr.msrb.gmra.mxu3 %v3543_v62 }
 0x2c2   : >> { %v3310_v58 = vor.u32 %v3309_v6, %v3306_v20  ;;  %v4018_v52 = vor.u32 %v4017_v19, %v3304_v45 }
 0x2c3   : >> { %v3162_v4 = vadd.f32 %v8012_v40, %v3034_v0  ;;  %v8051_v24 = vpop.f32.mrf.mxu0  ;;  %v3193_v40 = vmul.f32 %v3184_v7, %v7642_v18 }
 0x2c4   : >> { %v3311_v55 = vsel %vm425_vm0, %v3302_v23, %v3310_v58  ;;  %v7067_v33 = vld [vmem:[#allocation3 + $0x4] sm:$0xf0]  }
 0x2c5   : >> { %v3176_v53 = vadd.f32 %v8015_v27, %v3162_v4  ;;  %3400 = vmatmul.bf16.vlgmr.msra.gmra.mxu1 %v3311_v55  ;;  %v6974_v17 = vor.u32 %v7067_v33, %v6973_v49 }
 0x2c6   : >> { %v2828_v42 = vpop.f32.mrf.mxu2 }
 0x2c7   : >> { %v3017_v36 = vpop.f32.mrf.mxu3  ;;  %v3185_v61 = vmax.f32 %v3176_v53, 0.0  ;;  %v2846_v13 = vadd.f32 %v2828_v42, %v7965_v54  ;;  %v3699_v6 = vshrl.u32 %v6974_v17, 16  ;;  %v3702_v15 = vshll.u32 %v6974_v17, 16  ;;  %v6544_v17 = vld [vmem:[%s7681_s25 + $0x638] sm:$0xff] }
 0x2c8   : >> { %4227 = vmatpush.bf16.msra.mxu3 %v6544_v17  ;;  %v6533_v17 = vld [vmem:[%s7681_s25 + $0x5e0] sm:$0xff] }
 0x2c9   : >> { %v3194_v9 = vmul.f32 %v3185_v61, %v7647_v57  ;;  %v3035_v28 = vadd.f32 %v3017_v36, %v2846_v13  ;;  %v3704_v36 = vrot.slane %v3702_v15, 4 }
 0x2cb   : >> { %v8060_v11 = vpack.c.bf16 %v3194_v9, %v3193_v40  ;;  %v8062_v48 = vpop.f32.mrf.mxu0  ;;  %v3163_v54 = vadd.f32 %v8024_v26, %v3035_v28  ;;  %v2223_v26 = vadd.f32 %v7983_v59, %v2099_v56  ;;  %v6536_v56 = vld [vmem:[%s7681_s25 + $0x5f8] sm:$0xff] }
 0x2cc   : >> { %4104 = vmatpush.bf16.msra.mxu2 %v6536_v56 }
 0x2cd   : >> { %6862 = vst [vmem:[#allocation3 + $0x10] sm:$0xff] %v8060_v11   ;;  %v3431_v1 = vrot.slane %v8060_v11, 3  ;;  %v3313_v25 = vshrl.u32 %v8060_v11, 16  ;;  %v3316_v45 = vshll.u32 %v8060_v11, 16  ;;  %v3177_v23 = vadd.f32 %v8015_v27, %v3163_v54 }
 0x2ce   : >> { %v2830_v35 = vpop.f32.mrf.mxu2  ;;  %v2417_v59 = vadd.f32 %v7985_v63, %v2223_v26 }
 0x2cf   : >> { %v3019_v29 = vpop.f32.mrf.mxu3  ;;  %v2847_v16 = vadd.f32 %v2830_v35, %v2724_v50  ;;  %v3432_v3 = vsel %vm559_vm1, %v3429_v2, %v3431_v1  ;;  %v3315_v38 = vrot.slane %v3313_v25, 3  ;;  %v3318_v39 = vrot.slane %v3316_v45, 4 }
 0x2d0   : >> { %3503 = vmatmul.bf16.gmra.mxu2 %v3432_v3  ;;  %v4022_v62 = vrot.slane %v3316_v45, 1  ;;  %v3186_v55 = vmax.f32 %v3177_v23, 0.0  ;;  %v2537_v40 = vadd.f32 %v7961_v21, %v2417_v59  ;;  %v6523_v59 = vld [vmem:[%s7681_s25 + $0x590] sm:$0xff] }
 0x2d1   : >> { %v3036_v20 = vadd.f32 %v3019_v29, %v2847_v16  ;;  %v8078_v12 = vor.u32 %v3318_v39, %v3315_v38  ;;  %v6543_v38 = vld [vmem:[%s7681_s25 + $0x630] sm:$0xff] }
 0x2d2   : >> { %v8081_v19 = vsel %vm1132_vm2, %v4018_v52, %v4022_v62  ;;  %v8083_v10 = vor.u32 %v4022_v62, %v3313_v25  ;;  %v6525_v52 = vld [vmem:[%s7681_s25 + $0x5a0] sm:$0xff]  ;;  %v3195_v49 = vmul.f32 %v3186_v55, %v7652_v44  ;;  %v2726_v37 = vadd.f32 %v7963_v41, %v2537_v40  ;;  %4228 = vmatpush.bf16.msra.mxu3 %v6543_v38 }
 0x2d3   : >> { %v3164_v2 = vadd.f32 %v8036_v31, %v3036_v20  ;;  %v8086_v0 = vpop.f32.mrf.mxu0  ;;  %v3320_v4 = vsel %vm425_vm0, %v3310_v58, %v8078_v12  ;;  %v3701_v31 = vrot.slane %v3699_v6, 3  ;;  %3918 = vmatpush.bf16.msrb.mxu1 %v6525_v52  ;;  %v6524_v58 = vld [vmem:[%s7681_s25 + $0x598] sm:$0xff]  ;;  %v7289_v6 = vld [vmem:[#allocation3 + $0xc] sm:$0xe]  ;;  %v6534_v52 = vld [vmem:[%s7681_s25 + $0x5e8] sm:$0xff] }
 0x2d4   : >> { %v6969_v34 = vld [vmem:[#allocation3 + $0xc] sm:$0xff]  }
 0x2d5   : >> { %v7069_v46 = vld [vmem:[#allocation3 + $0xc] sm:$0xff]   ;;  %v3178_v7 = vadd.f32 %v8015_v27, %v3164_v2  ;;  %3405 = vmatmul.bf16.gmra.mxu1 %v3320_v4  ;;  %3614 = vmatmul.bf16.gmra.mxu3 %v6969_v34  ;;  %v3705_v54 = vor.u32 %v3704_v36, %v3701_v31  ;;  %v6535_v2 = vld [vmem:[%s7681_s25 + $0x5f0] sm:$0xff]  ;;  %v6542_v34 = vld [vmem:[%s7681_s25 + $0x628] sm:$0xff] }
 0x2d6   : >> { %v2833_v53 = vpop.f32.mrf.mxu2  ;;  %v3707_v61 = vshrl.u32 %v7069_v46, 16  ;;  %v3710_v13 = vshll.u32 %v7069_v46, 16  ;;  %v8113_v41 = vld [vmem:[#allocation3 + $0xc] sm:$0xff]   ;;  %4105 = vmatpush.bf16.msra.mxu2 %v6535_v2  ;;  %4229 = vmatpush.bf16.msra.mxu3 %v6542_v34  ;;  %v6538_v2 = vld [vmem:[%s7681_s25 + $0x608] sm:$0xff] }
 0x2d7   : >> { %v3022_v42 = vpop.f32.mrf.mxu3  ;;  %v3187_v63 = vmax.f32 %v3178_v7, 0.0  ;;  %v2848_v5 = vadd.f32 %v2833_v53, %v7981_v30  ;;  %3919 = vmatpush.bf16.msrb.mxu1 %v6524_v58  ;;  %v7288_v26 = vld [vmem:[#allocation3 + $0xc] sm:$0xf0] }
 0x2d8   : >> { %v3709_v9 = vrot.slane %v3707_v61, 3  ;;  %v3712_v28 = vrot.slane %v3710_v13, 4  ;;  %v6541_v31 = vld [vmem:[%s7681_s25 + $0x620] sm:$0xff] }
 0x2d9   : >> { %v3196_v33 = vmul.f32 %v3187_v63, %v7657_v32  ;;  %v3037_v50 = vadd.f32 %v3022_v42, %v2848_v5  ;;  %v7290_v63 = vor.u32 %v7289_v6, %v7288_v26 }
 0x2da   : >> { %v8099_v25 = vor.u32 %v3712_v28, %v3709_v9  ;;  %4106 = vmatpush.bf16.msra.mxu2 %v6534_v52  ;;  %4230 = vmatpush.bf16.msra.mxu3 %v6541_v31  ;;  %v6554_v52 = vld [vmem:[%s7681_s25 + $0x668] sm:$0xff] }
 0x2db   : >> { %v8101_v45 = vpack.c.bf16 %v3196_v33, %v3195_v49  ;;  %v3157_v30 = vpop.f32.mrf.mxu0  ;;  %v3165_v35 = vadd.f32 %v8051_v24, %v3037_v50  ;;  %3920 = vmatpush.bf16.msrb.mxu1 %v6523_v59  ;;  %v6555_v59 = vld [vmem:[%s7681_s25 + $0x670] sm:$0xff] }
 0x2dc   : >> { %v3714_v21 = vsel %vm425_vm0, %v3705_v54, %v8099_v25  ;;  %v4482_v54 = vrot.slane %v7290_v63, 1 }
 0x2dd   : >> { %6863 = vst [vmem:[#allocation3 + $0x18] sm:$0xff] %v8101_v45   ;;  %3803 = vmatmul.bf16.vlgmr.msrb.gmra.mxu0 %v3714_v21  ;;  %v3433_v29 = vrot.slane %v8101_v45, 3  ;;  %v3322_v16 = vshrl.u32 %v8101_v45, 16  ;;  %v3325_v3 = vshll.u32 %v8101_v45, 16  ;;  %v3179_v46 = vadd.f32 %v8015_v27, %v3165_v35  ;;  %v6540_v35 = vld [vmem:[%s7681_s25 + $0x618] sm:$0xff] }
 0x2de   : >> { %v2835_v39 = vpop.f32.mrf.mxu2  ;;  %4107 = vmatpush.bf16.msra.mxu2 %v6533_v17  ;;  %4231 = vmatpush.bf16.msra.mxu3 %v6540_v35 }
 0x2df   : >> { %v3024_v62 = vpop.f32.mrf.mxu3  ;;  %v2849_v23 = vadd.f32 %v2835_v39, %v2726_v37  ;;  %v3434_v24 = vsel %vm559_vm1, %v3431_v1, %v3433_v29  ;;  %v3324_v20 = vrot.slane %v3322_v16, 3  ;;  %v3327_v15 = vrot.slane %v3325_v3, 4  ;;  %v6522_v39 = vld [vmem:[%s7681_s25 + $0x588] sm:$0xff] }
 0x2e0   : >> { %3508 = vmatmul.bf16.gmra.mxu2 %v3434_v24  ;;  %v4030_v4 = vrot.slane %v3325_v3, 1  ;;  %v3188_v5 = vmax.f32 %v3179_v46, 0.0  ;;  %v6539_v24 = vld [vmem:[%s7681_s25 + $0x610] sm:$0xff]  ;;  %3921 = vmatpush.bf16.msrb.mxu1 %v6522_v39 }
 0x2e1   : >> { %v3038_v55 = vadd.f32 %v3024_v62, %v2849_v23  ;;  %v8124_v7 = vor.u32 %v3327_v15, %v3324_v20  ;;  %v6532_v62 = vld [vmem:[%s7681_s25 + $0x5d8] sm:$0xff]  ;;  %v6531_v15 = vld [vmem:[%s7681_s25 + $0x5d0] sm:$0xff] }
 0x2e2   : >> { %v8129_v1 = vsel %vm1132_vm2, %v8083_v10, %v4030_v4  ;;  %v8131_v53 = vor.u32 %v4030_v4, %v3322_v16  ;;  %v3197_v37 = vmul.f32 %v3188_v5, %v7665_v51  ;;  %v6556_v20 = vld [vmem:[%s7681_s25 + $0x678] sm:$0xff]  ;;  %4108 = vmatpush.bf16.msra.mxu2 %v6532_v62  ;;  %4232 = vmatpush.bf16.msra.mxu3 %v6539_v24  ;;  %v6521_v4 = vld [vmem:[%s7681_s25 + $0x580] sm:$0xff] }
 0x2e3   : >> { %v3166_v42 = vadd.f32 %v8062_v48, %v3038_v55  ;;  %v3329_v61 = vsel %vm425_vm0, %v8078_v12, %v8124_v7  ;;  %4416 = vmatpush.bf16.msra.mxu0 %v6556_v20  ;;  %v6537_v55 = vld [vmem:[%s7681_s25 + $0x600] sm:$0xff] }
 0x2e4   : >> { %v6970_v36 = vld [vmem:[#allocation3 + $0x14] sm:$0xff]   ;;  %3922 = vmatpush.bf16.msrb.mxu1 %v6521_v4 }
 0x2e5   : >> { %v7071_v13 = vld [vmem:[#allocation3 + $0x14] sm:$0xff]   ;;  %v3180_v58 = vadd.f32 %v8015_v27, %v3166_v42  ;;  %3410 = vmatmul.bf16.gmra.mxu1 %v3329_v61  ;;  %3619 = vmatmul.bf16.gmra.mxu3 %v6970_v36  ;;  %v6716_v61 = vunpack.c.h.b16 %v8101_v45 }
 0x2e6   : >> { %v8139_v10 = vld [vmem:[#allocation3 + $0x14] sm:$0xff]  ;;  %v2838_v40 = vpop.f32.mrf.mxu2  ;;  %v3716_v48 = vshrl.u32 %v7071_v13, 16  ;;  %v3719_v28 = vshll.u32 %v7071_v13, 16  ;;  %4109 = vmatpush.bf16.msra.mxu2 %v6531_v15  ;;  %4233 = vmatpush.bf16.msra.mxu3 %v6538_v2  ;;  %v6564_v15 = vld [vmem:[%s7681_s25 + $0x6b8] sm:$0xff]  ;;  %v6551_v2 = vld [vmem:[%s7681_s25 + $0x650] sm:$0xff] }
 0x2e7   : >> { %v3027_v9 = vpop.f32.mrf.mxu3  ;;  %v3189_v49 = vmax.f32 %v3180_v58, 0.0  ;;  %v2850_v33 = vadd.f32 %v2838_v40, %v8000_v22  ;;  %v4483_v30 = vrot.slane %v8139_v10, 1  ;;  %4417 = vmatpush.bf16.msra.mxu0 %v6555_v59 }
 0x2e8   : >> { %v3718_v12 = vrot.slane %v3716_v48, 3  ;;  %v3721_v50 = vrot.slane %v3719_v28, 4  ;;  %v6529_v48 = vld [vmem:[%s7681_s25 + $0x5c0] sm:$0xff]  ;;  %4544 = vmatpush.bf16.msra.mxu1 %v6564_v15 }
 0x2e9   : >> { %v3198_v21 = vmul.f32 %v3189_v49, %v7667_v8  ;;  %v3039_v56 = vadd.f32 %v3027_v9, %v2850_v33  ;;  %v8152_v22 = vsel %vm1594_vm3, %v4482_v54, %v4483_v30  ;;  %v6557_v15 = vld [vmem:[%s7681_s25 + $0x680] sm:$0xff] }
 0x2ea   : >> { %v8147_v16 = vor.u32 %v3721_v50, %v3718_v12  ;;  %4234 = vmatpush.bf16.msra.mxu3 %v6537_v55 }
 0x2eb   : >> { %v8154_v3 = vpack.c.bf16 %v3198_v21, %v3197_v37  ;;  %v3167_v38 = vadd.f32 %v8086_v0, %v3039_v56  ;;  %4418 = vmatpush.bf16.msra.mxu0 %v6554_v52  ;;  %v6553_v37 = vld [vmem:[%s7681_s25 + $0x660] sm:$0xff] }
 0x2ec   : >> { %v3723_v26 = vsel %vm425_vm0, %v8099_v25, %v8147_v16 }
 0x2ed   : >> { %6864 = vst [vmem:[#allocation3 + $0x20] sm:$0xff] %v8154_v3   ;;  %v3181_v23 = vadd.f32 %v8015_v27, %v3167_v38  ;;  %3808 = vmatmul.bf16.gmra.mxu0 %v3723_v26  ;;  %v6530_v27 = vld [vmem:[%s7681_s25 + $0x5c8] sm:$0xff]  ;;  %v6732_v20 = vunpack.c.h.b16 %v8154_v3 }
 0x2ee   : >> { %v2840_v0 = vpop.f32.mrf.mxu2  ;;  %4110 = vmatpush.bf16.msra.mxu2 %v6530_v27 }
 0x2ef   : >> { %v3029_v6 = vpop.f32.mrf.mxu3  ;;  %v3190_v25 = vmax.f32 %v3181_v23, 0.0  ;;  %4419 = vmatpush.bf16.msra.mxu0 %v6553_v37 }
 0x2f1   : >> { %v3199_v34 = vmul.f32 %v3190_v25, %v7672_v60 }
 0x2f2   : >> { %4111 = vmatpush.bf16.msra.mxu2 %v6529_v48 }
 0x2f3   : >> { %v3208_v46 = vpack.c.bf16 %v3199_v34, %v3199_v34 }
 0x2f4   : >> { %v3227_v42 = vld [vmem:[#allocation3 + $0x20] sm:$0xff]  }
 0x2f5   : >> { %v3228_v31 = vld [vmem:[#allocation3 + $0x24] sm:$0x7]  ;;  %v7072_v36 = vld [vmem:[#allocation3 + $0x1c] sm:$0xff]   ;;  %3217 = vst [vmem:[#allocation3 + $0x28] sm:$0xf] %v3208_v46  ;;  %v3288_v13 = vunpack.c.l.b16 %v3227_v42  ;;  %v3289_v5 = vunpack.c.h.b16 %v3227_v42  ;;  %v3331_v17 = vshrl.u32 %v3227_v42, 16 }
 0x2f6   : >> { %v3426_v63 = vunpack.c.l.b16 %v3228_v31  ;;  %v8175_v58 = vld [vmem:[#allocation3 + $0x1c] sm:$0xff]  ;;  %v3725_v40 = vshrl.u32 %v7072_v36, 16  ;;  %v3728_v9 = vshll.u32 %v7072_v36, 16  ;;  %v3334_v54 = vshll.u32 %v3227_v42, 16  ;;  %v6550_v46 = vld [vmem:[%s7681_s25 + $0x648] sm:$0xff]  ;;  %v6549_v31 = vld [vmem:[%s7681_s25 + $0x640] sm:$0xff] }
 0x2f7   : >> { %v3546_v28 = vpack.c.b16 %v3288_v13, %v6716_v61  ;;  %v4485_v21 = vrot.slane %v8175_v58, 1  ;;  %v3333_v38 = vrot.slane %v3331_v17, 3  ;;  %v3547_v55 = vpack.c.b16 %v3289_v5, %v3289_v5  ;;  %v6563_v42 = vld [vmem:[%s7681_s25 + $0x6b0] sm:$0xff]  ;;  %v6562_v61 = vld [vmem:[%s7681_s25 + $0x6a8] sm:$0xff]  ;;  %v6560_v5 = vld [vmem:[%s7681_s25 + $0x698] sm:$0xff] }
 0x2f8   : >> { %v3427_v49 = vpack.c.b16 %v3426_v63, %v3288_v13  ;;  %v3727_v33 = vrot.slane %v3725_v40, 3  ;;  %v3730_v12 = vrot.slane %v3728_v9, 4  ;;  %v3336_v26 = vrot.slane %v3334_v54, 4  ;;  %4545 = vmatpush.bf16.msra.mxu1 %v6563_v42  ;;  %v6992_v13 = vld [vmem:[#allocation3 + $0xc] sm:$0xff]   ;;  %v6995_v54 = vld [vmem:[#allocation3 + $0x1c] sm:$0xff]  }
 0x2f9   : >> { %3624 = vmatmul.bf16.gmra.mxu3 %v3546_v28  ;;  %v8186_v39 = vsel %vm1594_vm3, %v4483_v30, %v4485_v21  ;;  %v6552_v30 = vld [vmem:[%s7681_s25 + $0x658] sm:$0xff]  ;;  %v6561_v63 = vld [vmem:[%s7681_s25 + $0x6a0] sm:$0xff]  ;;  %v4327_v40 = vshll.u32 %v8113_v41, 16  ;;  %v4332_v9 = vshll.u32 %v8139_v10, 16  ;;  %v6994_v28 = vld [vmem:[#allocation3 + $0x14] sm:$0xff]   ;;  %v4340_v17 = vshll.u32 %v8175_v58, 16 }
 0x2fa   : >> { %v3435_v50 = vrot.slane %v3427_v49, 3  ;;  %v3731_v56 = vor.u32 %v3730_v12, %v3727_v33  ;;  %4420 = vmatpush.bf16.msra.mxu0 %v6552_v30  ;;  %v4325_v49 = vshrl.u32 %v8113_v41, 16  ;;  %v4336_v41 = vshrl.u32 %v8139_v10, 16 }
 0x2fb   : >> { %v4329_v48 = vrot.slane %v4327_v40, 1  ;;  %v4334_v33 = vrot.slane %v4332_v9, 1  ;;  %v6200_v40 = vld [vmem:[#allocation3 + $0x2c] sm:$0xf]  ;;  %v6548_v9 = vld [vmem:[#allocation3 + $0x2c] sm:$0x10] }
 0x2fc   : >> { %v3436_v35 = vsel %vm559_vm1, %v3433_v29, %v3435_v50  ;;  %v3732_v62 = vsel %vm425_vm0, %v8147_v16, %v3731_v56  ;;  %v8190_v23 = vld [vmem:[#allocation3 + $0x28] sm:$0xff]   ;;  %v3337_v29 = vor.u32 %v3336_v26, %v3333_v38  ;;  %4546 = vmatpush.bf16.msra.mxu1 %v6562_v61 }
 0x2fd   : >> { %3513 = vmatmul.bf16.gmra.mxu2 %v3436_v35  ;;  %v8192_v24 = vld [vmem:[#allocation3 + $0x24] sm:$0xff]  ;;  %3813 = vmatmul.bf16.gmra.mxu0 %v3732_v62  ;;  %v8196_v0 = vunpack.c.l.b16 %v8190_v23  ;;  %v4330_v12 = vor.u32 %v4329_v48, %v4325_v49  ;;  %v3966_v35 = vld [vmem:[#allocation3 + $0x2c] sm:$0x1]  ;;  %v8245_v48 = vor.u32 %v6548_v9, %v6200_v40  ;;  %v4168_v49 = vunpack.c.h.b16 %v8190_v23 }
 0x2fe   : >> { %v4487_v6 = vrot.slane %v8192_v24, 1  ;;  %v3338_v25 = vsel %vm425_vm0, %v8124_v7, %v3337_v29  ;;  %4421 = vmatpush.bf16.msra.mxu0 %v6551_v2  ;;  %v4006_v26 = vunpack.c.l.b16 %v3966_v35 }
 0x2ff   : >> { %v3697_v16 = vpack.c.b16 %v8196_v0, %v6732_v20  ;;  %3415 = vmatmul.bf16.gmra.mxu1 %v3338_v25 }
 0x300   : >> { %v8210_v59 = vsel %vm1594_vm3, %v4485_v21, %v4487_v6  ;;  %4547 = vmatpush.bf16.msra.mxu1 %v6561_v63  ;;  %v4342_v21 = vrot.slane %v4340_v17, 1 }
 0x301   : >> { %v3734_v34 = vshrl.u32 %v3697_v16, 16  ;;  %v3737_v4 = vshll.u32 %v3697_v16, 16 }
 0x302   : >> { %4422 = vmatpush.bf16.msra.mxu0 %v6550_v46 }
 0x303   : >> { %v3736_v27 = vrot.slane %v3734_v34, 3  ;;  %v3739_v7 = vrot.slane %v3737_v4, 4  ;;  %v4348_v4 = vshll.u32 %v8192_v24, 16 }
 0x304   : >> { %4548 = vmatpush.bf16.msra.mxu1 %v6560_v5 }
 0x305   : >> { %v3740_v52 = vor.u32 %v3739_v7, %v3736_v27  ;;  %v4040_v7 = vshrl.u32 %v8154_v3, 16 }
 0x306   : >> { %4423 = vmatpush.bf16.msra.mxu0 %v6549_v31 }
 0x307   : >> { %v3741_v36 = vsel %vm425_vm0, %v3731_v56, %v3740_v52  ;;  %v3965_v56 = vld [vmem:[#allocation3 + $0x28] sm:$0xf] }
 0x308   : >> { %v4005_v38 = vunpack.c.l.b16 %v3965_v56 }
 0x309   : >> { %3629 = vmatmul.bf16.gmra.mxu3 %v3547_v55  ;;  %v4344_v55 = vshrl.u32 %v8175_v58, 16 }
 0x30a   : >> { %v4011_v30 = vpack.c.b16 %v4006_v26, %v4005_v38  ;;  %v4172_v27 = vpack.c.b16 %v4005_v38, %v6732_v20 }
 0x30b   : >> { %v4346_v42 = vor.u32 %v4344_v55, %v4342_v21 }
 0x30c   : >> { %v4044_v16 = vshll.u32 %v4011_v30, 16 }
 0x30d   : >> { %3518 = vmatmul.bf16.gmra.mxu2 %v3435_v50  ;;  %3818 = vmatmul.bf16.gmra.mxu0 %v3741_v36  ;;  %v4036_v50 = vshll.u32 %v8154_v3, 16 }
 0x30e   : >> { %v4046_v46 = vrot.slane %v4044_v16, 1 }
 0x30f   : >> { %3420 = vmatmul.bf16.gmra.mxu1 %v3337_v29  ;;  %v4038_v37 = vrot.slane %v4036_v50, 1  ;;  %v6558_v29 = vld [vmem:[%s7681_s25 + $0x688] sm:$0xff]  ;;  %v4048_v50 = vshrl.u32 %v4011_v30, 16 }
 0x319   : >> { %4235 = vmatmul.bf16.vlgmr.msra.gmra.mxu3 %v6992_v13 }
 0x31d   : >> { %4112 = vmatmul.bf16.vlgmr.msra.gmra.mxu2 %v8081_v19  ;;  %3823 = vmatmul.bf16.gmra.mxu0 %v3740_v52  ;;  %v4335_v19 = vsel %vm1132_vm2, %v4330_v12, %v4334_v33  ;;  %v4350_v52 = vrot.slane %v4348_v4, 1  ;;  %v4356_v12 = vshll.u32 %v8245_v48, 16 }
 0x31f   : >> { %3923 = vmatmul.bf16.vlgmr.msrb.gmra.mxu1 %v8034_v47  ;;  %v6559_v47 = vld [vmem:[%s7681_s25 + $0x690] sm:$0xff]  ;;  %v4351_v13 = vsel %vm1132_vm2, %v4346_v42, %v4350_v52 }
 0x320   : >> { %4549 = vmatpush.bf16.msra.mxu1 %v6559_v47  ;;  %v4173_v47 = vpack.c.b16 %v4168_v49, %v4168_v49 }
 0x324   : >> { %4550 = vmatpush.bf16.msra.mxu1 %v6558_v29 }
 0x328   : >> { %4551 = vmatpush.bf16.msra.mxu1 %v6557_v15  ;;  %v4360_v15 = vshrl.u32 %v8245_v48, 16 }
 0x329   : >> { %4240 = vmatmul.bf16.gmra.mxu3 %v6994_v28 }
 0x32d   : >> { %4117 = vmatmul.bf16.gmra.mxu2 %v8129_v1  ;;  %4424 = vmatmul.bf16.vlgmr.msra.gmra.mxu0 %v4335_v19  ;;  %v4338_v1 = vor.u32 %v4336_v41, %v4334_v33  ;;  %v4352_v19 = vshrl.u32 %v8192_v24, 16 }
 0x32f   : >> { %3928 = vmatmul.bf16.gmra.mxu1 %v8060_v11  ;;  %v4039_v11 = vsel %vm1132_vm2, %v8131_v53, %v4038_v37  ;;  %v4343_v62 = vsel %vm1132_vm2, %v4338_v1, %v4342_v21  ;;  %v4354_v17 = vor.u32 %v4352_v19, %v4350_v52 }
 0x339   : >> { %4245 = vmatmul.bf16.gmra.mxu3 %v6995_v54  ;;  %v4358_v54 = vrot.slane %v4356_v12, 1 }
 0x33b   : >> { %v4359_v23 = vsel %vm1132_vm2, %v4354_v17, %v4358_v54 }
 0x33d   : >> { %4122 = vmatmul.bf16.gmra.mxu2 %v4039_v11  ;;  %4429 = vmatmul.bf16.gmra.mxu0 %v4343_v62  ;;  %v3861_v11 = vpack.c.b16 %v8196_v0, %v8196_v0 }
 0x33f   : >> { %3933 = vmatmul.bf16.gmra.mxu1 %v8101_v45  ;;  %v4042_v45 = vor.u32 %v4040_v7, %v4038_v37 }
 0x341   : >> { %v4047_v36 = vsel %vm1132_vm2, %v4042_v45, %v4046_v46 }
 0x342   : >> { %v3401_v10 = vpop.f32.mrf.mxu1 }
 0x343   : >> { %v3499_v25 = vpop.f32.mrf.mxu2 }
 0x344   : >> { %v3500_v2 = vadd.f32 %v3499_v25, %v3401_v10  ;;  %v3610_v34 = vpop.f32.mrf.mxu3 }
 0x346   : >> { %v3634_v53 = vadd.f32 %v3610_v34, %v3500_v2  ;;  %v4362_v34 = vor.u32 %v4360_v15, %v4358_v54 }
 0x349   : >> { %4250 = vmatmul.bf16.gmra.mxu3 %v4172_v27 }
 0x34a   : >> { %v3403_v31 = vpop.f32.mrf.mxu1 }
 0x34b   : >> { %v3501_v61 = vpop.f32.mrf.mxu2 }
 0x34c   : >> { %v3502_v63 = vadd.f32 %v3501_v61, %v3403_v31  ;;  %v3612_v5 = vpop.f32.mrf.mxu3 }
 0x34d   : >> { %4127 = vmatmul.bf16.gmra.mxu2 %v4047_v36  ;;  %4434 = vmatmul.bf16.gmra.mxu0 %v4351_v13 }
 0x34e   : >> { %v3635_v20 = vadd.f32 %v3612_v5, %v3502_v63 }
 0x34f   : >> { %3938 = vmatmul.bf16.gmra.mxu1 %v8154_v3  ;;  %v4050_v3 = vor.u32 %v4048_v50, %v4046_v46 }
 0x352   : >> { %v3406_v58 = vpop.f32.mrf.mxu1 }
 0x353   : >> { %v3504_v28 = vpop.f32.mrf.mxu2 }
 0x354   : >> { %v3505_v33 = vadd.f32 %v3504_v28, %v3406_v58 }
 0x358   : >> { %v3615_v37 = vpop.f32.mrf.mxu3 }
 0x359   : >> { %4255 = vmatmul.bf16.gmra.mxu3 %v4173_v47  ;;  %v3636_v21 = vadd.f32 %v3615_v37, %v3505_v33 }
 0x35a   : >> { %v3804_v41 = vpop.f32.mrf.mxu0  ;;  %v3408_v56 = vpop.f32.mrf.mxu1 }
 0x35b   : >> { %v8250_v35 = vadd.f32 %v3804_v41, %v3634_v53  ;;  %v3506_v1 = vpop.f32.mrf.mxu2 }
 0x35c   : >> { %v3507_v38 = vadd.f32 %v3506_v1, %v3408_v56 }
 0x35d   : >> { %4132 = vmatmul.bf16.gmra.mxu2 %v4050_v3  ;;  %4439 = vmatmul.bf16.gmra.mxu0 %v4359_v23 }
 0x35f   : >> { %3943 = vmatmul.bf16.gmra.mxu1 %v3861_v11  ;;  %v4489_v11 = vrot.slane %v8245_v48, 1 }
 0x360   : >> { %v3617_v26 = vpop.f32.mrf.mxu3 }
 0x361   : >> { %v3637_v29 = vadd.f32 %v3617_v26, %v3507_v38 }
 0x362   : >> { %v3806_v62 = vpop.f32.mrf.mxu0  ;;  %v3411_v10 = vpop.f32.mrf.mxu1 }
 0x363   : >> { %v3829_v30 = vadd.f32 %v3806_v62, %v3635_v20  ;;  %v3509_v25 = vpop.f32.mrf.mxu2 }
 0x364   : >> { %v3510_v16 = vadd.f32 %v3509_v25, %v3411_v10 }
 0x368   : >> { %v3620_v2 = vpop.f32.mrf.mxu3 }
 0x369   : >> { %v3638_v53 = vadd.f32 %v3620_v2, %v3510_v16 }
 0x36a   : >> { %v3809_v4 = vpop.f32.mrf.mxu0  ;;  %v3413_v46 = vpop.f32.mrf.mxu1 }
 0x36b   : >> { %v3830_v27 = vadd.f32 %v3809_v4, %v3636_v21  ;;  %v3511_v7 = vpop.f32.mrf.mxu2 }
 0x36c   : >> { %v3512_v0 = vadd.f32 %v3511_v7, %v3413_v46 }
 0x36d   : >> { %4444 = vmatmul.bf16.gmra.mxu0 %v4362_v34 }
 0x36f   : >> { %4552 = vmatmul.bf16.vlgmr.msra.gmra.mxu1 %v8152_v22 }
 0x370   : >> { %v3622_v55 = vpop.f32.mrf.mxu3 }
 0x371   : >> { %v3639_v45 = vadd.f32 %v3622_v55, %v3512_v0 }
 0x372   : >> { %v3811_v52 = vpop.f32.mrf.mxu0 }
 0x373   : >> { %v3831_v42 = vadd.f32 %v3811_v52, %v3637_v29 }
 0x37a   : >> { %v3814_v31 = vpop.f32.mrf.mxu0 }
 0x37b   : >> { %v8257_v36 = vadd.f32 %v3814_v31, %v3638_v53 }
 0x37c   : >> { %v3625_v61 = vpop.f32.mrf.mxu3  ;;  %v3416_v13 = vpop.f32.mrf.mxu1 }
 0x37f   : >> { %4557 = vmatmul.bf16.gmra.mxu1 %v8186_v39 }
 0x380   : >> { %v3514_v63 = vpop.f32.mrf.mxu2 }
 0x381   : >> { %v3515_v5 = vadd.f32 %v3514_v63, %v3416_v13 }
 0x382   : >> { %v3816_v20 = vpop.f32.mrf.mxu0 }
 0x383   : >> { %v3640_v40 = vadd.f32 %v3625_v61, %v3515_v5  ;;  %v8260_v9 = vadd.f32 %v3816_v20, %v3639_v45 }
 0x384   : >> { %v3627_v58 = vpop.f32.mrf.mxu3  ;;  %v3418_v22 = vpop.f32.mrf.mxu1 }
 0x388   : >> { %v3516_v28 = vpop.f32.mrf.mxu2 }
 0x389   : >> { %v3517_v49 = vadd.f32 %v3516_v28, %v3418_v22 }
 0x38a   : >> { %v3819_v33 = vpop.f32.mrf.mxu0 }
 0x38b   : >> { %v3641_v12 = vadd.f32 %v3627_v58, %v3517_v49  ;;  %v8262_v19 = vadd.f32 %v3819_v33, %v3640_v40 }
 0x38c   : >> { %v3630_v47 = vpop.f32.mrf.mxu3  ;;  %v3421_v50 = vpop.f32.mrf.mxu1 }
 0x38f   : >> { %4562 = vmatmul.bf16.gmra.mxu1 %v8210_v59  ;;  %v4490_v59 = vsel %vm1594_vm3, %v4487_v6, %v4489_v11 }
 0x390   : >> { %v3519_v17 = vpop.f32.mrf.mxu2 }
 0x391   : >> { %v3520_v54 = vadd.f32 %v3519_v17, %v3421_v50 }
 0x392   : >> { %v3821_v37 = vpop.f32.mrf.mxu0 }
 0x393   : >> { %v3642_v39 = vadd.f32 %v3630_v47, %v3520_v54  ;;  %v8265_v41 = vadd.f32 %v3821_v37, %v3641_v12 }
 0x394   : >> { %v3632_v21 = vpop.f32.mrf.mxu3  ;;  %v3423_v3 = vpop.f32.mrf.mxu1 }
 0x398   : >> { %v3521_v56 = vpop.f32.mrf.mxu2 }
 0x39a   : >> { %v3824_v1 = vpop.f32.mrf.mxu0 }
 0x39b   : >> { %v8267_v23 = vadd.f32 %v3824_v1, %v3642_v39 }
 0x39c   : >> { %v4236_v38 = vpop.f32.mrf.mxu3  ;;  %v3924_v26 = vpop.f32.mrf.mxu1 }
 0x39d   : >> { %v3948_v62 = vadd.f32 %v3924_v26, %v8250_v35 }
 0x39f   : >> { %4567 = vmatmul.bf16.gmra.mxu1 %v4490_v59 }
 0x3a0   : >> { %v4113_v29 = vpop.f32.mrf.mxu2 }
 0x3a1   : >> { %v4137_v10 = vadd.f32 %v4113_v29, %v3948_v62 }
 0x3a2   : >> { %v3826_v25 = vpop.f32.mrf.mxu0 }
 0x3a3   : >> { %v4260_v16 = vadd.f32 %v4236_v38, %v4137_v10 }
 0x3a4   : >> { %v4238_v15 = vpop.f32.mrf.mxu3  ;;  %v3926_v2 = vpop.f32.mrf.mxu1 }
 0x3a5   : >> { %v3949_v34 = vadd.f32 %v3926_v2, %v3829_v30 }
 0x3a8   : >> { %v4115_v4 = vpop.f32.mrf.mxu2 }
 0x3a9   : >> { %v4138_v53 = vadd.f32 %v4115_v4, %v3949_v34 }
 0x3aa   : >> { %v4425_v7 = vpop.f32.mrf.mxu0 }
 0x3ab   : >> { %v4261_v48 = vadd.f32 %v4238_v15, %v4138_v53  ;;  %v8274_v46 = vadd.f32 %v4425_v7, %v4260_v16 }
 0x3ac   : >> { %v4241_v0 = vpop.f32.mrf.mxu3  ;;  %v3929_v35 = vpop.f32.mrf.mxu1 }
 0x3ad   : >> { %v3950_v55 = vadd.f32 %v3929_v35, %v3830_v27 }
 0x3af   : >> { %4572 = vmatmul.bf16.gmra.mxu1 %v4489_v11 }
 0x3b0   : >> { %v4118_v52 = vpop.f32.mrf.mxu2 }
 0x3b1   : >> { %v4139_v24 = vadd.f32 %v4118_v52, %v3950_v55 }
 0x3b2   : >> { %v4427_v6 = vpop.f32.mrf.mxu0 }
 0x3b3   : >> { %v4262_v45 = vadd.f32 %v4241_v0, %v4139_v24  ;;  %v8276_v31 = vadd.f32 %v4427_v6, %v4261_v48 }
 0x3b4   : >> { %v4243_v61 = vpop.f32.mrf.mxu3  ;;  %v3931_v13 = vpop.f32.mrf.mxu1 }
 0x3b5   : >> { %v3951_v63 = vadd.f32 %v3931_v13, %v3831_v42 }
 0x3b8   : >> { %v4120_v30 = vpop.f32.mrf.mxu2 }
 0x3b9   : >> { %v4140_v5 = vadd.f32 %v4120_v30, %v3951_v63  ;;  %v8299_v30 = vld [vmem:[%s7903_s12 + $0x2] ss:$0 sm:$0xff] }
 0x3ba   : >> { %v4430_v20 = vpop.f32.mrf.mxu0 }
 0x3bb   : >> { %v4263_v40 = vadd.f32 %v4243_v61, %v4140_v5  ;;  %v8278_v58 = vadd.f32 %v4430_v20, %v4262_v45  ;;  %v6901_v5 = vld [vmem:[#allocation2 + $0x8] sm:$0xff]  }
 0x3bc   : >> { %v4246_v22 = vpop.f32.mrf.mxu3  ;;  %v3934_v28 = vpop.f32.mrf.mxu1  ;;  %v6751_v20 = vunpack.c.l.bf16 %v6901_v5 }
 0x3bd   : >> { %v3952_v27 = vadd.f32 %v3934_v28, %v8257_v36 }
 0x3c0   : >> { %v4123_v49 = vpop.f32.mrf.mxu2 }
 0x3c1   : >> { %v4141_v33 = vadd.f32 %v4123_v49, %v3952_v27  ;;  %v6752_v49 = vunpack.c.h.bf16 %v6901_v5 }
 0x3c2   : >> { %v4432_v12 = vpop.f32.mrf.mxu0 }
 0x3c3   : >> { %v4264_v47 = vadd.f32 %v4246_v22, %v4141_v33  ;;  %v8281_v50 = vadd.f32 %v4432_v12, %v4263_v40 }
 0x3c4   : >> { %v4248_v17 = vpop.f32.mrf.mxu3  ;;  %v3936_v54 = vpop.f32.mrf.mxu1 }
 0x3c5   : >> { %v3953_v42 = vadd.f32 %v3936_v54, %v8260_v9 }
 0x3c8   : >> { %v4125_v37 = vpop.f32.mrf.mxu2 }
 0x3c9   : >> { %v4142_v39 = vadd.f32 %v4125_v37, %v3953_v42 }
 0x3ca   : >> { %v4435_v21 = vpop.f32.mrf.mxu0 }
 0x3cb   : >> { %v4265_v3 = vadd.f32 %v4248_v17, %v4142_v39  ;;  %v8284_v56 = vadd.f32 %v4435_v21, %v4264_v47  ;;  %v6902_v39 = vld [vmem:[#allocation2 + $0x10] sm:$0xff]  }
 0x3cc   : >> { %v4251_v1 = vpop.f32.mrf.mxu3  ;;  %v3939_v11 = vpop.f32.mrf.mxu1 }
 0x3cd   : >> { %v3954_v36 = vadd.f32 %v3939_v11, %v8262_v19 }
 0x3d0   : >> { %v4128_v38 = vpop.f32.mrf.mxu2 }
 0x3d1   : >> { %v4143_v26 = vadd.f32 %v4128_v38, %v3954_v36  ;;  %v6756_v38 = vunpack.c.h.bf16 %v6902_v39 }
 0x3d2   : >> { %v4437_v62 = vpop.f32.mrf.mxu0 }
 0x3d3   : >> { %v4266_v29 = vadd.f32 %v4251_v1, %v4143_v26  ;;  %v8287_v59 = vadd.f32 %v4437_v62, %v4265_v3  ;;  %v6755_v1 = vunpack.c.l.bf16 %v6902_v39 }
 0x3d4   : >> { %v4253_v10 = vpop.f32.mrf.mxu3  ;;  %v3941_v25 = vpop.f32.mrf.mxu1 }
 0x3d5   : >> { %v3955_v9 = vadd.f32 %v3941_v25, %v8265_v41 }
 0x3d8   : >> { %v4130_v16 = vpop.f32.mrf.mxu2 }
 0x3d9   : >> { %v4144_v15 = vadd.f32 %v4130_v16, %v3955_v9 }
 0x3da   : >> { %v4440_v2 = vpop.f32.mrf.mxu0 }
 0x3db   : >> { %v4267_v34 = vadd.f32 %v4253_v10, %v4144_v15  ;;  %v8290_v4 = vadd.f32 %v4440_v2, %v4266_v29  ;;  %v6903_v15 = vld [vmem:[#allocation2 + $0x18] sm:$0xff]  }
 0x3dc   : >> { %v4256_v53 = vpop.f32.mrf.mxu3  ;;  %v3944_v7 = vpop.f32.mrf.mxu1 }
 0x3dd   : >> { %v3956_v19 = vadd.f32 %v3944_v7, %v8267_v23 }
 0x3e0   : >> { %v4133_v48 = vpop.f32.mrf.mxu2 }
 0x3e1   : >> { %v4145_v0 = vadd.f32 %v4133_v48, %v3956_v19  ;;  %v6760_v48 = vunpack.c.h.bf16 %v6903_v15 }
 0x3e2   : >> { %v4442_v55 = vpop.f32.mrf.mxu0 }
 0x3e3   : >> { %v4268_v35 = vadd.f32 %v4256_v53, %v4145_v0  ;;  %v8293_v52 = vadd.f32 %v4442_v55, %v4267_v34  ;;  %v6759_v53 = vunpack.c.l.bf16 %v6903_v15 }
 0x3e4   : >> { %v4258_v24 = vpop.f32.mrf.mxu3  ;;  %v3946_v6 = vpop.f32.mrf.mxu1 }
 0x3e8   : >> { %v4135_v41 = vpop.f32.mrf.mxu2 }
 0x3ea   : >> { %v4445_v45 = vpop.f32.mrf.mxu0 }
 0x3eb   : >> { %v8295_v61 = vadd.f32 %v4445_v45, %v4268_v35 }
 0x3ec   : >> { %v4553_v13 = vpop.f32.mrf.mxu1 }
 0x3ed   : >> { %v4577_v63 = vadd.f32 %v4553_v13, %v8274_v46  ;;  %v6904_v13 = vld [vmem:[#allocation2 + $0x20] sm:$0xff]  }
 0x3ef   : >> { %v4591_v23 = vadd.f32 %v8299_v30, %v4577_v63 }
 0x3f1   : >> { %v4618_v28 = vadd.f32 %v6751_v20, %v4591_v23  ;;  %v6763_v23 = vunpack.c.l.bf16 %v6904_v13 }
 0x3f2   : >> { %v4447_v40 = vpop.f32.mrf.mxu0 }
 0x3f3   : >> { %v4627_v12 = vmax.f32 %v4618_v28, 0.0 }
 0x3f4   : >> { %v4555_v22 = vpop.f32.mrf.mxu1 }
 0x3f5   : >> { %v4578_v27 = vadd.f32 %v4555_v22, %v8276_v31  ;;  %v4636_v46 = vmul.f32 %v4627_v12, %v7630_v14  ;;  %v6764_v22 = vunpack.c.h.bf16 %v6904_v13  ;;  %v6571_v14 = vld [vmem:[#allocation8 + $0x10] sm:$0xff] (%p1795_p7) }
 0x3f7   : >> { %v4592_v33 = vadd.f32 %v8299_v30, %v4578_v27 }
 0x3f9   : >> { %v4619_v47 = vadd.f32 %v6752_v49, %v4592_v33  ;;  %v4608_v33 = vld [vmem:[#allocation2 + $0x28] sm:$0xf] }
 0x3fb   : >> { %v4628_v17 = vmax.f32 %v4619_v47, 0.0 }
 0x3fc   : >> { %v4558_v54 = vpop.f32.mrf.mxu1 }
 0x3fd   : >> { %v4637_v42 = vmul.f32 %v4628_v17, %v7637_v43  ;;  %v4579_v37 = vadd.f32 %v4558_v54, %v8278_v58  ;;  %v6570_v43 = vld [vmem:[#allocation8 + $0x8] sm:$0xff] (%p1795_p7) }
 0x3ff   : >> { %v6768_v21 = vpack.c.bf16 %v4637_v42, %v4636_v46  ;;  %v4593_v3 = vadd.f32 %v8299_v30, %v4579_v37  ;;  %v4617_v46 = vunpack.c.l.bf16 %v4608_v33 }
 0x401   : >> { %6905 = vst [vmem:[#allocation2 + $0x8] sm:$0xff] %v6768_v21   ;;  %v4620_v11 = vadd.f32 %v6755_v1, %v4593_v3 }
 0x403   : >> { %v4629_v62 = vmax.f32 %v4620_v11, 0.0  ;;  %v6573_v11 = vld [vmem:[#allocation8 + $0x20] sm:$0xff] (%p1795_p7) }
 0x404   : >> { %v4560_v31 = vpop.f32.mrf.mxu1 }
 0x405   : >> { %v4580_v36 = vadd.f32 %v4560_v31, %v8281_v50  ;;  %v4638_v9 = vmul.f32 %v4629_v62, %v7642_v18  ;;  %v6576_v31 = vld [vmem:[#allocation8 + $0x38] sm:$0xff] (%p1795_p7)  ;;  %v6569_v18 = vld [vmem:[#allocation8] sm:$0xff] (%p1795_p7) }
 0x406   : > { %7030 = vmatpush.bf16.msra.mxu3 (%p1795_p7), %v6576_v31  ;;  %7029 = vmatpush.bf16.msra.mxu2 (%p1795_p7), %v6576_v31 }
 0x407   : >> { %v4594_v26 = vadd.f32 %v8299_v30, %v4580_v36  ;;  %4768 = vmatpush.bf16.msra.mxu0 (%p1795_p7), %v6576_v31  ;;  %7028 = vmatpush.bf16.msra.mxu1 (%p1795_p7), %v6576_v31  ;;  %v6572_v36 = vld [vmem:[#allocation8 + $0x18] sm:$0xff] (%p1795_p7) }
 0x409   : >> { %v4621_v29 = vadd.f32 %v6756_v38, %v4594_v26  ;;  %v7141_v26 = vld [vmem:[#allocation9] ss:$0 sm:$0xff] (%p1795_p7) }
 0x40b   : >> { %v4630_v10 = vmax.f32 %v4621_v29, 0.0 }
 0x40c   : >> { %v4563_v25 = vpop.f32.mrf.mxu1 }
 0x40d   : >> { %v4639_v58 = vmul.f32 %v4630_v10, %v7647_v57  ;;  %v4581_v16 = vadd.f32 %v4563_v25, %v8284_v56 }
 0x40f   : >> { %v6773_v2 = vpack.c.bf16 %v4639_v58, %v4638_v9  ;;  %v4595_v34 = vadd.f32 %v8299_v30, %v4581_v16 }
 0x411   : >> { %6906 = vst [vmem:[#allocation2 + $0x10] sm:$0xff] %v6773_v2   ;;  %v4622_v7 = vadd.f32 %v6759_v53, %v4595_v34 }
 0x413   : >> { %v4631_v35 = vmax.f32 %v4622_v7, 0.0 }
 0x414   : >> { %v4565_v50 = vpop.f32.mrf.mxu1 }
 0x415   : >> { %v4582_v19 = vadd.f32 %v4565_v50, %v8287_v59  ;;  %v4640_v41 = vmul.f32 %v4631_v35, %v7652_v44 }
 0x417   : >> { %v4596_v0 = vadd.f32 %v8299_v30, %v4582_v19 }
 0x419   : >> { %v4623_v55 = vadd.f32 %v6760_v48, %v4596_v0 }
 0x41b   : >> { %v4632_v24 = vmax.f32 %v4623_v55, 0.0 }
 0x41c   : >> { %v4568_v6 = vpop.f32.mrf.mxu1 }
 0x41d   : >> { %v4641_v56 = vmul.f32 %v4632_v24, %v7657_v32  ;;  %v4583_v45 = vadd.f32 %v4568_v6, %v8290_v4  ;;  %v6565_v32 = vld [vmem:[#allocation2 + $0x8] sm:$0xff] (%p1795_p7) }
 0x41f   : >> { %v6778_v63 = vpack.c.bf16 %v4641_v56, %v4640_v41  ;;  %v4597_v5 = vadd.f32 %v8299_v30, %v4583_v45 }
 0x421   : >> { %6907 = vst [vmem:[#allocation2 + $0x18] sm:$0xff] %v6778_v63   ;;  %v4624_v20 = vadd.f32 %v6763_v23, %v4597_v5 }
 0x423   : >> { %v4633_v27 = vmax.f32 %v4624_v20, 0.0 }
 0x424   : >> { %v4570_v59 = vpop.f32.mrf.mxu1 }
 0x425   : >> { %v4584_v40 = vadd.f32 %v4570_v59, %v8293_v52  ;;  %v4642_v4 = vmul.f32 %v4633_v27, %v7665_v51  ;;  %v6566_v51 = vld [vmem:[#allocation2 + $0x10] sm:$0xff] (%p1795_p7) }
 0x427   : >> { %v4598_v28 = vadd.f32 %v8299_v30, %v4584_v40 }
 0x428   : > { %v6567_v44 = vld [vmem:[#allocation2 + $0x18] sm:$0xff] (%p1795_p7) }
 0x429   : >> { %v4625_v49 = vadd.f32 %v6764_v22, %v4598_v28 }
 0x42b   : >> { %v4634_v12 = vmax.f32 %v4625_v49, 0.0 }
 0x42c   : >> { %v4573_v47 = vpop.f32.mrf.mxu1 }
 0x42d   : >> { %v4643_v17 = vmul.f32 %v4634_v12, %v7667_v8  ;;  %v4585_v54 = vadd.f32 %v4573_v47, %v8295_v61  ;;  %v6575_v61 = vld [vmem:[#allocation8 + $0x30] sm:$0xff] (%p1795_p7) }
 0x42e   : > { %7033 = vmatpush.bf16.msra.mxu3 (%p1795_p7), %v6575_v61  ;;  %7032 = vmatpush.bf16.msra.mxu2 (%p1795_p7), %v6575_v61 }
 0x42f   : >> { %v6783_v42 = vpack.c.bf16 %v4643_v17, %v4642_v4  ;;  %v4599_v37 = vadd.f32 %v8299_v30, %v4585_v54  ;;  %v6574_v30 = vld [vmem:[#allocation8 + $0x28] sm:$0xff] (%p1795_p7)  ;;  %4769 = vmatpush.bf16.msra.mxu0 (%p1795_p7), %v6575_v61  ;;  %7031 = vmatpush.bf16.msra.mxu1 (%p1795_p7), %v6575_v61 }
 0x431   : >> { %6908 = vst [vmem:[#allocation2 + $0x20] sm:$0xff] %v6783_v42   ;;  %v4626_v52 = vadd.f32 %v4617_v46, %v4599_v37 }
 0x432   : > { %7036 = vmatpush.bf16.msra.mxu3 (%p1795_p7), %v6574_v30  ;;  %7035 = vmatpush.bf16.msra.mxu2 (%p1795_p7), %v6574_v30 }
 0x433   : >> { %v4635_v39 = vmax.f32 %v4626_v52, 0.0  ;;  %4770 = vmatpush.bf16.msra.mxu0 (%p1795_p7), %v6574_v30  ;;  %7034 = vmatpush.bf16.msra.mxu1 (%p1795_p7), %v6574_v30 }
 0x434   : >> { %v4575_v21 = vpop.f32.mrf.mxu1 }
 0x435   : >> { %v4644_v3 = vmul.f32 %v4635_v39, %v7672_v60  ;;  %1797 = sbr.rel (!%p1795_p7) target bundleno = 384 (0x180), region = 126 }
 0x436   : > { %7039 = vmatpush.bf16.msra.mxu3 (%p1795_p7), %v6573_v11  ;;  %7038 = vmatpush.bf16.msra.mxu2 (%p1795_p7), %v6573_v11 }
 0x437   : >> { %v4653_v1 = vpack.c.bf16 %v4644_v3, %v4644_v3  ;;  %4771 = vmatpush.bf16.msra.mxu0 (%p1795_p7), %v6573_v11  ;;  %7037 = vmatpush.bf16.msra.mxu1 (%p1795_p7), %v6573_v11 }
 0x438   : > { %v6568_v57 = vld [vmem:[#allocation2 + $0x20] sm:$0xff] (%p1795_p7) }
 0x439   : >> { %4662 = vst [vmem:[#allocation2 + $0x28] sm:$0xf] %v4653_v1 }
 0x43a   : > { %7042 = vmatpush.bf16.msra.mxu3 %v6572_v36  ;;  %7041 = vmatpush.bf16.msra.mxu2 %v6572_v36 }
 0x43b   : > { %4772 = vmatpush.bf16.msra.mxu0 %v6572_v36  ;;  %7040 = vmatpush.bf16.msra.mxu1 %v6572_v36 }
 0x43e   : > { %7045 = vmatpush.bf16.msra.mxu3 %v6571_v14  ;;  %7044 = vmatpush.bf16.msra.mxu2 %v6571_v14 }
 0x43f   : > { %4773 = vmatpush.bf16.msra.mxu0 %v6571_v14  ;;  %7043 = vmatpush.bf16.msra.mxu1 %v6571_v14 }
 0x440   : > { %v4671_v8 = vld [vmem:[#allocation2 + $0x28] sm:$0xf] }
 0x441   : > { %v4709_v60 = vunpack.c.l.b16 %v4671_v8 }
 0x442   : > { %7048 = vmatpush.bf16.msra.mxu3 %v6570_v43  ;;  %7047 = vmatpush.bf16.msra.mxu2 %v6570_v43 }
 0x443   : > { %4774 = vmatpush.bf16.msra.mxu0 %v6570_v43  ;;  %7046 = vmatpush.bf16.msra.mxu1 %v6570_v43  ;;  %v4714_v38 = vpack.c.b16 %v4709_v60, %v4709_v60 }
 0x446   : > { %7051 = vmatpush.bf16.msra.mxu3 %v6569_v18  ;;  %7050 = vmatpush.bf16.msra.mxu2 %v6569_v18 }
 0x447   : > { %4775 = vmatpush.bf16.msra.mxu0 %v6569_v18  ;;  %7049 = vmatpush.bf16.msra.mxu1 %v6569_v18 }
 0x449   : > { %4791 = vmatmul.bf16.vlgmr.msra.gmra.mxu3 %v6568_v57  ;;  %4786 = vmatmul.bf16.vlgmr.msra.gmra.mxu2 %v6567_v44 }
 0x44a   : > { %4776 = vmatmul.bf16.vlgmr.msra.gmra.mxu0 %v6565_v32  ;;  %4781 = vmatmul.bf16.vlgmr.msra.gmra.mxu1 %v6566_v51 }
 0x459   : > { %4796 = vmatmul.bf16.gmra.mxu3 %v4714_v38 }
 0x4c7   : > { %v4777_v62 = vpop.f32.mrf.mxu0  ;;  %v4782_v29 = vpop.f32.mrf.mxu1 }
 0x4c8   : > { %v4778_v10 = vadd.f32 %v7141_v26, %v4777_v62  ;;  %v4783_v25 = vadd.f32 %v7141_v26, %v4782_v29 }
 0x4ca   : > { %v4801_v9 = vmax.f32 %v4778_v10, 0.0  ;;  %v4803_v58 = vmax.f32 %v4783_v25, 0.0 }
 0x4cc   : > { %v4792_v16 = vpop.f32.mrf.mxu3  ;;  %4811 = vst.msk [vmem:[%s7413_s11] sm:$0xff] %vm4810_vm4, %v4801_v9  ;;  %v4787_v15 = vpop.f32.mrf.mxu2 }
 0x4cd   : > { %v4793_v2 = vadd.f32 %v7141_v26, %v4792_v16  ;;  %4813 = vst.msk [vmem:[%s7413_s11 + $0x10] sm:$0xff] %vm4810_vm4, %v4803_v58  ;;  %v4788_v34 = vadd.f32 %v7141_v26, %v4787_v15 }
 0x4cf   : > { %v4807_v53 = vmax.f32 %v4793_v2, 0.0  ;;  %v4805_v50 = vmax.f32 %v4788_v34, 0.0  ;;  %v4779_v7 = vpop.f32.mrf.mxu0  ;;  %v4784_v19 = vpop.f32.mrf.mxu1 }
 0x4d0   : > { %v4780_v48 = vadd.f32 %v7141_v26, %v4779_v7  ;;  %v4785_v0 = vadd.f32 %v7141_v26, %v4784_v19 }
 0x4d1   : > { %4817 = vst.msk [vmem:[%s7413_s11 + $0x30] sm:$0xff] %vm4810_vm4, %v4807_v53 }
 0x4d2   : > { %4815 = vst.msk [vmem:[%s7413_s11 + $0x20] sm:$0xff] %vm4810_vm4, %v4805_v50  ;;  %v4802_v35 = vmax.f32 %v4780_v48, 0.0  ;;  %v4804_v55 = vmax.f32 %v4785_v0, 0.0 }
 0x4d4   : > { %v4794_v24 = vpop.f32.mrf.mxu3  ;;  %4812 = vst.msk [vmem:[%s7413_s11 + $0x8] sm:$0xff] %vm4810_vm4, %v4802_v35  ;;  %v4789_v6 = vpop.f32.mrf.mxu2 }
 0x4d5   : > { %v4795_v41 = vadd.f32 %v7141_v26, %v4794_v24  ;;  %4814 = vst.msk [vmem:[%s7413_s11 + $0x18] sm:$0xff] %vm4810_vm4, %v4804_v55  ;;  %v4790_v56 = vadd.f32 %v7141_v26, %v4789_v6 }
 0x4d7   : > { %v4808_v45 = vmax.f32 %v4795_v41, 0.0  ;;  %v4806_v13 = vmax.f32 %v4790_v56, 0.0 }
 0x4d9   : > { %4818 = vst.msk [vmem:[%s7413_s11 + $0x38] sm:$0xff] %vm4810_vm4, %v4808_v45 }
 0x4da   : > { %4816 = vst.msk [vmem:[%s7413_s11 + $0x28] sm:$0xff] %vm4810_vm4, %v4806_v13 }
 0x4dc   : > { %v4797_v63 = vpop.f32.mrf.mxu3 }
 0x4dd   : > { %v4798_v5 = vadd.f32 %v7141_v26, %v4797_v63 }
 0x4df   : > { %v4809_v23 = vmax.f32 %v4798_v5, 0.0 }
 0x4e1   : > { %4819 = vst.msk [vmem:[%s7413_s11 + $0x40] sm:$0xff] %vm4810_vm4, %v4809_v23 }
 0x4e4   : > { %v4799_v59 = vpop.f32.mrf.mxu3 }
 0x4e5 PF: > { %s19_s21 = sadd.s32 1, %s7293_s21  }
 0x4e6   : > { %p16_p8 = scmp.ge.s32.totalorder %s19_s21, 4  }
 0x4e8   :  { %18 = sbr.rel (!%p16_p8) target bundleno = 3 (0x3), region = 137 }
 0x4ed   :  { %4842 = vsyncpa [#allocation5], 1 }
 0x4ee   :  { %4844 = vsyncpa [#allocation5 + $0x1], 1 }
 0x4ef   :  { %4845 = vsyncpa [#allocation7], 1 }
 0x4f0   :  { %4846 = vsyncpa [#allocation10], 1 }

</bundles_post_ra>
